<compile_context>
chip_gen: v7x
topology: tpu7x:2x2x1
jax: 0.10.0
libtpu: 0.0.40
codegen_flags: <defaults>
</compile_context>

<pallas_src>
import jax
import jax.numpy as jnp
from jax.experimental import pallas as pl
from jax.experimental.pallas import tpu as pltpu

IMAGE_SIZE = 28 * 28          # 784
PADDED_IN = 896               # 7 * 128 -- lane-aligned input feature dim
HIDDEN = (1024, 512, 256, 1)
LEAKY_SLOPE = 0.2


def _round_up(x, m):
    return ((x + m - 1) // m) * m


def _leaky_relu(x, slope=LEAKY_SLOPE):
    return jnp.where(x > 0, x, slope * x)


def discriminator_kernel(
    x_ref,
    w1_ref, b1_ref,
    w2_ref, b2_ref,
    w3_ref, b3_ref,
    w4_ref, b4_ref,
    o_ref,
):
    """One batch tile of the MLP. Weights (bf16) are resident across the grid;
    all accumulation is fp32."""
    x = x_ref[...].astype(jnp.bfloat16)                      # (B_TILE, 896)

    h = jnp.dot(x, w1_ref[...], preferred_element_type=jnp.float32) + b1_ref[...]
    h = _leaky_relu(h)

    h = jnp.dot(h.astype(jnp.bfloat16), w2_ref[...],
                preferred_element_type=jnp.float32) + b2_ref[...]
    h = _leaky_relu(h)

    h = jnp.dot(h.astype(jnp.bfloat16), w3_ref[...],
                preferred_element_type=jnp.float32) + b3_ref[...]
    h = _leaky_relu(h)

    # Final layer (256 -> 1): N=1 matmul would waste the MXU and pad the
    # weight to 128 lanes, so do a VPU broadcast-multiply + lane reduction.
    w4_row = w4_ref[...].astype(jnp.float32)                 # (1, 256)
    logits = jnp.sum(h * w4_row, axis=-1, keepdims=True) + b4_ref[...]
    o_ref[...] = jax.nn.sigmoid(logits)


def discriminator_forward(img, params, *, b_tile=128):
    """img: (B, 1, 28, 28) NCHW float32. Returns (B, 1) probabilities."""
    b = img.shape[0]
    x = img.reshape(b, IMAGE_SIZE).astype(jnp.float32)       # == torch .view(-1, 784)
    # Zero-pad features to a lane-aligned width (w1 padded to match below).
    x = jnp.pad(x, ((0, 0), (0, PADDED_IN - IMAGE_SIZE)))

    # Batch tile: multiple of 8 sublanes, capped at 128 (MXU row dim).
    b_tile = min(b_tile, _round_up(b, 8))
    b_pad = _round_up(b, b_tile)
    if b_pad != b:
        x = jnp.pad(x, ((0, b_pad - b), (0, 0)))

    (w1, b1), (w2, b2), (w3, b3), (w4, b4) = params
    # bf16 weights -> half the HBM->VMEM traffic; biases stay fp32 (tiny).
    w1p = jnp.pad(w1, ((0, PADDED_IN - IMAGE_SIZE), (0, 0))).astype(jnp.bfloat16)
    w2p = w2.astype(jnp.bfloat16)
    w3p = w3.astype(jnp.bfloat16)
    w4_row = w4.T.astype(jnp.bfloat16)                       # (1, 256)

    grid = (b_pad // b_tile,)
    const = lambda i: (0, 0)     # weights/biases: same block every step (resident)

    weight_bytes = 2 * (w1p.size + w2p.size + w3p.size + w4_row.size)
    bias_bytes = 4 * (b1.size + b2.size + b3.size + b4.size)
    flops = 2 * b_pad * (PADDED_IN * 1024 + 1024 * 512 + 512 * 256 + 256)
    cost = pl.CostEstimate(
        flops=int(flops),
        transcendentals=int(b_pad),
        bytes_accessed=int(weight_bytes + bias_bytes + 4 * x.size + 4 * b_pad),
    )

    out = pl.pallas_call(
        discriminator_kernel,
        out_shape=jax.ShapeDtypeStruct((b_pad, 1), jnp.float32),
        grid=grid,
        in_specs=[
            pl.BlockSpec((b_tile, PADDED_IN), lambda i: (i, 0)),  # x tile streams
            pl.BlockSpec(w1p.shape, const),
            pl.BlockSpec(b1.shape, const),
            pl.BlockSpec(w2p.shape, const),
            pl.BlockSpec(b2.shape, const),
            pl.BlockSpec(w3p.shape, const),
            pl.BlockSpec(b3.shape, const),
            pl.BlockSpec(w4_row.shape, const),
            pl.BlockSpec(b4.shape, const),
        ],
        out_specs=pl.BlockSpec((b_tile, 1), lambda i: (i, 0)),
        compiler_params=pltpu.CompilerParams(
            dimension_semantics=("parallel",),
        ),
        cost_estimate=cost,
    )(x, w1p, b1, w2p, b2, w3p, b3, w4_row, b4)

    return out[:b]


def init_params(key):
    """Deterministic synthetic init. Weights stored as (in, out); biases as (1, out)."""
    dims = (IMAGE_SIZE,) + HIDDEN
    params = []
    for i in range(len(dims) - 1):
        key, kw, kb = jax.random.split(key, 3)
        fan_in = dims[i]
        scale = 1.0 / jnp.sqrt(jnp.float32(fan_in))
        w = jax.random.uniform(
            kw, (dims[i], dims[i + 1]), jnp.float32, minval=-scale, maxval=scale
        )
        bias = jax.random.uniform(
            kb, (1, dims[i + 1]), jnp.float32, minval=-scale, maxval=scale
        )
        params.append((w, bias))
    return params


def reference_forward(img, params):
    """Pure-JAX fp32 reference for correctness check."""
    b = img.shape[0]
    h = img.reshape(b, IMAGE_SIZE).astype(jnp.float32)
    for i, (w, bias) in enumerate(params):
        h = h @ w + bias
        if i < len(params) - 1:
            h = jnp.where(h > 0, h, LEAKY_SLOPE * h)
    return jax.nn.sigmoid(h)


if __name__ == "__main__":
    key = jax.random.PRNGKey(0)
    key, k_img = jax.random.split(key)

    batch = 8
    img = jax.random.normal(k_img, (batch, 1, 28, 28), jnp.float32)  # NCHW

    params = init_params(jax.random.PRNGKey(0))

    out = discriminator_forward(img, params)
    out = jax.block_until_ready(out)

    ref = reference_forward(img, params)
    assert out.shape == (batch, 1), out.shape
    # bf16 weights/activations inside the kernel (fp32 accumulation) -> loosen tol.
    assert jnp.allclose(out, ref, atol=2e-2, rtol=2e-2), (
        f"max abs diff {jnp.max(jnp.abs(out - ref))}"
    )

    print("KERNEL_OK")
</pallas_src>

<mosaic_0001>
module attributes {stable_mosaic.version = 11 : i64} {
  func.func @discriminator_kernel(%arg0: i32, %arg1: memref<8x896xf32, #tpu.memory_space<vmem>>, %arg2: memref<896x1024xbf16, #tpu.memory_space<vmem>>, %arg3: memref<1x1024xf32, #tpu.memory_space<vmem>>, %arg4: memref<1024x512xbf16, #tpu.memory_space<vmem>>, %arg5: memref<1x512xf32, #tpu.memory_space<vmem>>, %arg6: memref<512x256xbf16, #tpu.memory_space<vmem>>, %arg7: memref<1x256xf32, #tpu.memory_space<vmem>>, %arg8: memref<1x256xbf16, #tpu.memory_space<vmem>>, %arg9: memref<1x1xf32, #tpu.memory_space<vmem>>, %arg10: memref<8x1xf32, #tpu.memory_space<vmem>>) attributes {dimension_semantics = [#tpu.dimension_semantics<parallel>], iteration_bounds = array<i64: 1>, scalar_prefetch = 0 : i64, scratch_operands = 0 : i64, tpu.core_type = #tpu.core_type<tc>, window_params = [{transform_indices = @transform_0, window_bounds = array<i64: 8, 896>}, {pipeline_mode = #tpu.pipeline_mode<synchronous>, transform_indices = @transform_1, window_bounds = array<i64: 896, 1024>}, {pipeline_mode = #tpu.pipeline_mode<synchronous>, transform_indices = @transform_2, window_bounds = array<i64: 1, 1024>}, {pipeline_mode = #tpu.pipeline_mode<synchronous>, transform_indices = @transform_3, window_bounds = array<i64: 1024, 512>}, {pipeline_mode = #tpu.pipeline_mode<synchronous>, transform_indices = @transform_4, window_bounds = array<i64: 1, 512>}, {pipeline_mode = #tpu.pipeline_mode<synchronous>, transform_indices = @transform_5, window_bounds = array<i64: 512, 256>}, {pipeline_mode = #tpu.pipeline_mode<synchronous>, transform_indices = @transform_6, window_bounds = array<i64: 1, 256>}, {pipeline_mode = #tpu.pipeline_mode<synchronous>, transform_indices = @transform_7, window_bounds = array<i64: 1, 256>}, {pipeline_mode = #tpu.pipeline_mode<synchronous>, transform_indices = @transform_8, window_bounds = array<i64: 1, 1>}, {transform_indices = @transform_9, window_bounds = array<i64: 8, 1>}]} {
    %c0 = arith.constant 0 : index
    %c0_0 = arith.constant 0 : index
    %0 = vector.load %arg1[%c0, %c0_0] : memref<8x896xf32, #tpu.memory_space<vmem>>, vector<8x896xf32>
    %1 = arith.truncf %0 : vector<8x896xf32> to vector<8x896xbf16>
    %c0_1 = arith.constant 0 : index
    %c0_2 = arith.constant 0 : index
    %2 = vector.load %arg2[%c0_1, %c0_2] : memref<896x1024xbf16, #tpu.memory_space<vmem>>, vector<896x1024xbf16>
    %cst = arith.constant dense<0.000000e+00> : vector<8x1024xf32>
    %3 = tpu.matmul %1, %2, %cst {dimension_numbers = #tpu.dot_dimension_numbers<[1], [0], [0], [1], [0, 0, 1, 1], [], []>} : vector<8x896xbf16>, vector<896x1024xbf16>, vector<8x1024xf32> -> vector<8x1024xf32>
    %c0_3 = arith.constant 0 : index
    %c0_4 = arith.constant 0 : index
    %4 = vector.load %arg3[%c0_3, %c0_4] : memref<1x1024xf32, #tpu.memory_space<vmem>>, vector<1x1024xf32>
    %5 = vector.broadcast %4 : vector<1x1024xf32> to vector<8x1024xf32>
    %6 = arith.addf %3, %5 : vector<8x1024xf32>
    %cst_5 = arith.constant 0.000000e+00 : f32
    %7 = vector.broadcast %cst_5 : f32 to vector<8x1024xf32>
    %8 = arith.cmpf ogt, %6, %7 : vector<8x1024xf32>
    %cst_6 = arith.constant 2.000000e-01 : f32
    %9 = vector.broadcast %cst_6 : f32 to vector<8x1024xf32>
    %10 = arith.mulf %9, %6 : vector<8x1024xf32>
    %11 = arith.select %8, %6, %10 : vector<8x1024xi1>, vector<8x1024xf32>
    %12 = arith.truncf %11 : vector<8x1024xf32> to vector<8x1024xbf16>
    %c0_7 = arith.constant 0 : index
    %c0_8 = arith.constant 0 : index
    %13 = vector.load %arg4[%c0_7, %c0_8] : memref<1024x512xbf16, #tpu.memory_space<vmem>>, vector<1024x512xbf16>
    %cst_9 = arith.constant dense<0.000000e+00> : vector<8x512xf32>
    %14 = tpu.matmul %12, %13, %cst_9 {dimension_numbers = #tpu.dot_dimension_numbers<[1], [0], [0], [1], [0, 0, 1, 1], [], []>} : vector<8x1024xbf16>, vector<1024x512xbf16>, vector<8x512xf32> -> vector<8x512xf32>
    %c0_10 = arith.constant 0 : index
    %c0_11 = arith.constant 0 : index
    %15 = vector.load %arg5[%c0_10, %c0_11] : memref<1x512xf32, #tpu.memory_space<vmem>>, vector<1x512xf32>
    %16 = vector.broadcast %15 : vector<1x512xf32> to vector<8x512xf32>
    %17 = arith.addf %14, %16 : vector<8x512xf32>
    %cst_12 = arith.constant 0.000000e+00 : f32
    %18 = vector.broadcast %cst_12 : f32 to vector<8x512xf32>
    %19 = arith.cmpf ogt, %17, %18 : vector<8x512xf32>
    %cst_13 = arith.constant 2.000000e-01 : f32
    %20 = vector.broadcast %cst_13 : f32 to vector<8x512xf32>
    %21 = arith.mulf %20, %17 : vector<8x512xf32>
    %22 = arith.select %19, %17, %21 : vector<8x512xi1>, vector<8x512xf32>
    %23 = arith.truncf %22 : vector<8x512xf32> to vector<8x512xbf16>
    %c0_14 = arith.constant 0 : index
    %c0_15 = arith.constant 0 : index
    %24 = vector.load %arg6[%c0_14, %c0_15] : memref<512x256xbf16, #tpu.memory_space<vmem>>, vector<512x256xbf16>
    %cst_16 = arith.constant dense<0.000000e+00> : vector<8x256xf32>
    %25 = tpu.matmul %23, %24, %cst_16 {dimension_numbers = #tpu.dot_dimension_numbers<[1], [0], [0], [1], [0, 0, 1, 1], [], []>} : vector<8x512xbf16>, vector<512x256xbf16>, vector<8x256xf32> -> vector<8x256xf32>
    %c0_17 = arith.constant 0 : index
    %c0_18 = arith.constant 0 : index
    %26 = vector.load %arg7[%c0_17, %c0_18] : memref<1x256xf32, #tpu.memory_space<vmem>>, vector<1x256xf32>
    %27 = vector.broadcast %26 : vector<1x256xf32> to vector<8x256xf32>
    %28 = arith.addf %25, %27 : vector<8x256xf32>
    %cst_19 = arith.constant 0.000000e+00 : f32
    %29 = vector.broadcast %cst_19 : f32 to vector<8x256xf32>
    %30 = arith.cmpf ogt, %28, %29 : vector<8x256xf32>
    %cst_20 = arith.constant 2.000000e-01 : f32
    %31 = vector.broadcast %cst_20 : f32 to vector<8x256xf32>
    %32 = arith.mulf %31, %28 : vector<8x256xf32>
    %33 = arith.select %30, %28, %32 : vector<8x256xi1>, vector<8x256xf32>
    %c0_21 = arith.constant 0 : index
    %c0_22 = arith.constant 0 : index
    %34 = vector.load %arg8[%c0_21, %c0_22] : memref<1x256xbf16, #tpu.memory_space<vmem>>, vector<1x256xbf16>
    %35 = arith.extf %34 : vector<1x256xbf16> to vector<1x256xf32>
    %36 = vector.broadcast %35 : vector<1x256xf32> to vector<8x256xf32>
    %37 = arith.mulf %33, %36 : vector<8x256xf32>
    %cst_23 = arith.constant dense<0.000000e+00> : vector<8xf32>
    %38 = vector.multi_reduction <add>, %37, %cst_23 [1] : vector<8x256xf32> to vector<8xf32>
    %39 = vector.shape_cast %38 : vector<8xf32> to vector<8x1xf32>
    %c0_24 = arith.constant 0 : index
    %c0_25 = arith.constant 0 : index
    %40 = vector.load %arg9[%c0_24, %c0_25] : memref<1x1xf32, #tpu.memory_space<vmem>>, vector<1x1xf32>
    %41 = vector.broadcast %40 : vector<1x1xf32> to vector<8x1xf32>
    %42 = arith.addf %39, %41 : vector<8x1xf32>
    %43 = arith.negf %42 : vector<8x1xf32>
    %44 = math.exp %43 : vector<8x1xf32>
    %cst_26 = arith.constant 1.000000e+00 : f32
    %45 = vector.broadcast %cst_26 : f32 to vector<8x1xf32>
    %46 = arith.addf %45, %44 : vector<8x1xf32>
    %47 = arith.divf %45, %46 : vector<8x1xf32>
    %c0_27 = arith.constant 0 : index
    %c0_28 = arith.constant 0 : index
    %48 = vector.load %arg10[%c0_27, %c0_28] : memref<8x1xf32, #tpu.memory_space<vmem>>, vector<8x1xf32>
    tpu.vector_store %arg10[%c0_27, %c0_28], %47 {strides = array<i32>} : memref<8x1xf32, #tpu.memory_space<vmem>>, vector<8x1xf32>,
    return
  }
  func.func @transform_0(%arg0: i32) -> (i32, i32) {
    %c0_i32 = arith.constant 0 : i32
    %c0_i32_0 = arith.constant 0 : i32
    return %arg0, %c0_i32 : i32, i32
  }
  func.func @transform_1(%arg0: i32) -> (i32, i32) {
    %c0_i32 = arith.constant 0 : i32
    %c0_i32_0 = arith.constant 0 : i32
    %c0_i32_1 = arith.constant 0 : i32
    return %c0_i32, %c0_i32_0 : i32, i32
  }
  func.func @transform_2(%arg0: i32) -> (i32, i32) {
    %c0_i32 = arith.constant 0 : i32
    %c0_i32_0 = arith.constant 0 : i32
    %c0_i32_1 = arith.constant 0 : i32
    return %c0_i32, %c0_i32_0 : i32, i32
  }
  func.func @transform_3(%arg0: i32) -> (i32, i32) {
    %c0_i32 = arith.constant 0 : i32
    %c0_i32_0 = arith.constant 0 : i32
    %c0_i32_1 = arith.constant 0 : i32
    return %c0_i32, %c0_i32_0 : i32, i32
  }
  func.func @transform_4(%arg0: i32) -> (i32, i32) {
    %c0_i32 = arith.constant 0 : i32
    %c0_i32_0 = arith.constant 0 : i32
    %c0_i32_1 = arith.constant 0 : i32
    return %c0_i32, %c0_i32_0 : i32, i32
  }
  func.func @transform_5(%arg0: i32) -> (i32, i32) {
    %c0_i32 = arith.constant 0 : i32
    %c0_i32_0 = arith.constant 0 : i32
    %c0_i32_1 = arith.constant 0 : i32
    return %c0_i32, %c0_i32_0 : i32, i32
  }
  func.func @transform_6(%arg0: i32) -> (i32, i32) {
    %c0_i32 = arith.constant 0 : i32
    %c0_i32_0 = arith.constant 0 : i32
    %c0_i32_1 = arith.constant 0 : i32
    return %c0_i32, %c0_i32_0 : i32, i32
  }
  func.func @transform_7(%arg0: i32) -> (i32, i32) {
    %c0_i32 = arith.constant 0 : i32
    %c0_i32_0 = arith.constant 0 : i32
    %c0_i32_1 = arith.constant 0 : i32
    return %c0_i32, %c0_i32_0 : i32, i32
  }
  func.func @transform_8(%arg0: i32) -> (i32, i32) {
    %c0_i32 = arith.constant 0 : i32
    %c0_i32_0 = arith.constant 0 : i32
    %c0_i32_1 = arith.constant 0 : i32
    return %c0_i32, %c0_i32_0 : i32, i32
  }
  func.func @transform_9(%arg0: i32) -> (i32, i32) {
    %c0_i32 = arith.constant 0 : i32
    %c0_i32_0 = arith.constant 0 : i32
    return %arg0, %c0_i32 : i32, i32
  }
}

</mosaic_0001>

<bundles_post_ra>
// kernel: tpu_custom_call.1
= control target key start
LH: loop header
LB: loop body
LE: loop exit
PB: predicated region body
PF: predicated region fallthrough
CT: control target
= control target key end

     0   :  { %s7849_s0 = inlined_call_operand.hbm [shape: f32[8,896], index: 0, kind: input, shape index: {}]   ;;  %s7850_s1 = inlined_call_operand.hbm [shape: bf16[896,1024], index: 1, kind: input, shape index: {}]   ;;  %s7851_s2 = inlined_call_operand.hbm [shape: f32[1,1024], index: 2, kind: input, shape index: {}]   ;;  %s7852_s3 = inlined_call_operand.hbm [shape: bf16[1024,512], index: 3, kind: input, shape index: {}]   ;;  %s7853_s4 = inlined_call_operand.hbm [shape: f32[1,512], index: 4, kind: input, shape index: {}]   ;;  %s7854_s5 = inlined_call_operand.hbm [shape: bf16[512,256], index: 5, kind: input, shape index: {}]   ;;  %s7855_s6 = inlined_call_operand.hbm [shape: f32[1,256], index: 6, kind: input, shape index: {}]   ;;  %s7856_s7 = inlined_call_operand.hbm [shape: bf16[1,256], index: 7, kind: input, shape index: {}]   ;;  %s7857_s8 = inlined_call_operand.<no memory space> [shape: f32[1,1], index: 8, kind: input, shape index: {}]   ;;  %s7858_s9 = inlined_call_operand.vmem [shape: f32[8,1], index: 9, kind: output, shape index: {}]  }
   0x1   :  { %v14_v0 = vstv %s7857_s8 }
   0x2   :  { %15 = vst [vmem:[#allocation2] sm:$0x1] %v14_v0 }
   0x3   :  { %16 = vsyncpa [#allocation4], 0 }
   0x4   :  { %17 = vsyncpa [#allocation6], 0 }
   0x5   :  { %18 = vsyncpa [#allocation9], 0 }
   0x6   :  { %19 = vsyncpa [#allocation12], 0 }
   0x7   :  { %20 = vsyncpa [#allocation15], 0  ;;  %s7547_s11 = smov [#allocation5]   ;;  %s7361_s15 = scalar_lea.hbm %s7850_s1, 57344 }
   0x8   :  { %s36_s12 = sshll.u32 %s7547_s11, 4  ;;  %p7362_p0 = scmp.ne.s32.totalorder %s7850_s1, %s7361_s15  ;;  %s37_s12 = int_to_ptr.vmem [resolvable:$true] %s36_s12 }
   0x9   :  { %p7365_p1 = scmp.lt.u32.totalorder %s7361_s15, %s7850_s1 }
   0xb   :  { %p7367_p2 = pnand %p7365_p1, %p7362_p0 }
   0xd   :  { %7370 = shalt.err (!%p7367_p2)
}
   0xe   :  { %s7371_s8 = scalar_lea.vmem %s37_s12, 57344  ;;  %p7376_p4 = scmp.lt.s32.totalorder %s37_s12, %s37_s12 }
   0xf   :  { %p7372_p3 = scmp.ne.s32.totalorder %s37_s12, %s7371_s8  ;;  %p7377_p5 = scmp.lt.s32.totalorder %s7371_s8, %s7371_s8 }
  0x11   :  { %p7378_p6 = por %p7377_p5, %p7376_p4 }
  0x13   :  { %p7379_p7 = pnand %p7378_p6, %p7372_p3 }
  0x15   :  { %7382 = shalt.err (!%p7379_p7)
}
  0x16   :  { %s7548_s20 = smov 512   ;;  %s7549_s21 = smov 32  }
  0x17   :  { %42 = dma.hbm_to_vmem [thread:$0]  %s7850_s1, 57344, %s37_s12, [#allocation6], %s7548_s20, %s7548_s20, %s7549_s21  }
  0x18   :  { %s7550_s24 = smov [#allocation8]   ;;  %s7383_s28 = scalar_lea.hbm %s7852_s3, 32768 }
  0x19   :  { %s58_s25 = sshll.u32 %s7550_s24, 4  ;;  %p7384_p8 = scmp.ne.s32.totalorder %s7852_s3, %s7383_s28  ;;  %s59_s25 = int_to_ptr.vmem [resolvable:$true] %s58_s25 }
  0x1a   :  { %p7387_p9 = scmp.lt.u32.totalorder %s7383_s28, %s7852_s3 }
  0x1c   :  { %p7389_p10 = pnand %p7387_p9, %p7384_p8 }
  0x1e   :  { %7392 = shalt.err (!%p7389_p10)
}
  0x1f   :  { %s7393_s13 = scalar_lea.vmem %s59_s25, 32768  ;;  %p7398_p12 = scmp.lt.s32.totalorder %s59_s25, %s59_s25 }
  0x20   :  { %p7394_p11 = scmp.ne.s32.totalorder %s59_s25, %s7393_s13  ;;  %p7399_p13 = scmp.lt.s32.totalorder %s7393_s13, %s7393_s13 }
  0x22   :  { %p7400_p0 = por %p7399_p13, %p7398_p12 }
  0x24   :  { %p7401_p1 = pnand %p7400_p0, %p7394_p11 }
  0x26   :  { %7404 = shalt.err (!%p7401_p1)
}
  0x27   :  { %s7551_s1 = smov 256   ;;  %s7552_s12 = smov 16  }
  0x28   :  { %64 = dma.hbm_to_vmem [thread:$0]  %s7852_s3, 32768, %s59_s25, [#allocation9], %s7551_s1, %s7551_s1, %s7552_s12  }
  0x29   :  { %s7553_s16 = smov [#allocation11]   ;;  %s7405_s8 = scalar_lea.hbm %s7854_s5, 8192 }
  0x2a   :  { %s80_s17 = sshll.u32 %s7553_s16, 4  ;;  %p7406_p2 = scmp.ne.s32.totalorder %s7854_s5, %s7405_s8  ;;  %s81_s17 = int_to_ptr.vmem [resolvable:$true] %s80_s17 }
  0x2b   :  { %p7409_p3 = scmp.lt.u32.totalorder %s7405_s8, %s7854_s5 }
  0x2d   :  { %p7411_p4 = pnand %p7409_p3, %p7406_p2 }
  0x2f   :  { %7414 = shalt.err (!%p7411_p4)
}
  0x30   :  { %s7415_s24 = scalar_lea.vmem %s81_s17, 8192  ;;  %p7420_p6 = scmp.lt.s32.totalorder %s81_s17, %s81_s17 }
  0x31   :  { %p7416_p5 = scmp.ne.s32.totalorder %s81_s17, %s7415_s24  ;;  %p7421_p7 = scmp.lt.s32.totalorder %s7415_s24, %s7415_s24 }
  0x33   :  { %p7422_p8 = por %p7421_p7, %p7420_p6 }
  0x35   :  { %p7423_p9 = pnand %p7422_p8, %p7416_p5 }
  0x37   :  { %7426 = shalt.err (!%p7423_p9)
}
  0x38   :  { %s7554_s3 = smov 128   ;;  %s7555_s25 = smov 8  }
  0x39   :  { %86 = dma.hbm_to_vmem [thread:$0]  %s7854_s5, 8192, %s81_s17, [#allocation12], %s7554_s3, %s7554_s3, %s7555_s25  }
  0x3a   :  { %s7556_s28 = smov [#allocation3]   ;;  %s7557_s30 = smov [#allocation7]  }
  0x3b   :  { %s27_s29 = sshll.u32 %s7556_s28, 4  ;;  %s49_s10 = sshll.u32 %s7557_s30, 4  ;;  %s28_s29 = int_to_ptr.vmem [resolvable:$true] %s27_s29  ;;  %s50_s10 = int_to_ptr.vmem [resolvable:$true] %s49_s10 }
  0x3c   :  { %s7427_s1 = scalar_lea.hbm %s7849_s0, 896 }
  0x3d   :  { %p7428_p10 = scmp.ne.s32.totalorder %s7849_s0, %s7427_s1  ;;  %p7431_p11 = scmp.lt.u32.totalorder %s7427_s1, %s7849_s0 }
  0x3f   :  { %p7433_p12 = pnand %p7431_p11, %p7428_p10 }
  0x41   :  { %7436 = shalt.err (!%p7433_p12)
}
  0x42   :  { %s7437_s5 = scalar_lea.vmem %s28_s29, 896  ;;  %p7442_p0 = scmp.lt.s32.totalorder %s28_s29, %s28_s29 }
  0x43   :  { %p7438_p13 = scmp.ne.s32.totalorder %s28_s29, %s7437_s5  ;;  %p7443_p1 = scmp.lt.s32.totalorder %s7437_s5, %s7437_s5 }
  0x45   :  { %p7444_p2 = por %p7443_p1, %p7442_p0 }
  0x47   :  { %p7445_p3 = pnand %p7444_p2, %p7438_p13 }
  0x49   :  { %7448 = shalt.err (!%p7445_p3)
}
  0x4a   :  { %30 = dma.hbm_to_vmem [thread:$0]  %s7849_s0, 896, %s28_s29, [#allocation4]  }
  0x4b   :  { %s7449_s20 = scalar_lea.hbm %s7851_s2, 128 }
  0x4c   :  { %p7450_p4 = scmp.ne.s32.totalorder %s7851_s2, %s7449_s20  ;;  %p7453_p5 = scmp.lt.u32.totalorder %s7449_s20, %s7851_s2 }
  0x4e   :  { %p7455_p6 = pnand %p7453_p5, %p7450_p4 }
  0x50   :  { %7458 = shalt.err (!%p7455_p6)
}
  0x51   :  { %s7459_s3 = scalar_lea.vmem %s50_s10, 128  ;;  %p7464_p8 = scmp.lt.s32.totalorder %s50_s10, %s50_s10 }
  0x52   :  { %p7460_p7 = scmp.ne.s32.totalorder %s50_s10, %s7459_s3  ;;  %p7465_p9 = scmp.lt.s32.totalorder %s7459_s3, %s7459_s3 }
  0x54   :  { %p7466_p10 = por %p7465_p9, %p7464_p8 }
  0x56   :  { %p7467_p11 = pnand %p7466_p10, %p7460_p7 }
  0x58   :  { %7470 = shalt.err (!%p7467_p11)
}
  0x59   :  { %52 = dma.hbm_to_vmem [thread:$0]  %s7851_s2, 128, %s50_s10, [#allocation6]  }
  0x5a   :  { %s7558_s26 = smov [#allocation10]   ;;  %s7559_s28 = smov [#allocation13]  }
  0x5b   :  { %s71_s27 = sshll.u32 %s7558_s26, 4  ;;  %s93_s29 = sshll.u32 %s7559_s28, 4  ;;  %s72_s27 = int_to_ptr.vmem [resolvable:$true] %s71_s27  ;;  %s94_s29 = int_to_ptr.vmem [resolvable:$true] %s93_s29 }
  0x5c   :  { %s7471_s13 = scalar_lea.hbm %s7853_s4, 64 }
  0x5d   :  { %p7472_p12 = scmp.ne.s32.totalorder %s7853_s4, %s7471_s13  ;;  %p7475_p13 = scmp.lt.u32.totalorder %s7471_s13, %s7853_s4 }
  0x5f   :  { %p7477_p0 = pnand %p7475_p13, %p7472_p12 }
  0x61   :  { %7480 = shalt.err (!%p7477_p0)
}
  0x62   :  { %s7481_s2 = scalar_lea.vmem %s72_s27, 64  ;;  %p7486_p2 = scmp.lt.s32.totalorder %s72_s27, %s72_s27 }
  0x63   :  { %p7482_p1 = scmp.ne.s32.totalorder %s72_s27, %s7481_s2  ;;  %p7487_p3 = scmp.lt.s32.totalorder %s7481_s2, %s7481_s2 }
  0x65   :  { %p7488_p4 = por %p7487_p3, %p7486_p2 }
  0x67   :  { %p7489_p5 = pnand %p7488_p4, %p7482_p1 }
  0x69   :  { %7492 = shalt.err (!%p7489_p5)
}
  0x6a   :  { %74 = dma.hbm_to_vmem [thread:$0]  %s7853_s4, 64, %s72_s27, [#allocation9]  }
  0x6b   :  { %s7493_s18 = scalar_lea.hbm %s7855_s6, 32 }
  0x6c   :  { %p7494_p6 = scmp.ne.s32.totalorder %s7855_s6, %s7493_s18  ;;  %p7497_p7 = scmp.lt.u32.totalorder %s7493_s18, %s7855_s6 }
  0x6e   :  { %p7499_p8 = pnand %p7497_p7, %p7494_p6 }
  0x70   :  { %7502 = shalt.err (!%p7499_p8)
}
  0x71   :  { %s7503_s22 = scalar_lea.vmem %s94_s29, 32  ;;  %p7508_p10 = scmp.lt.s32.totalorder %s94_s29, %s94_s29 }
  0x72   :  { %p7504_p9 = scmp.ne.s32.totalorder %s94_s29, %s7503_s22  ;;  %p7509_p11 = scmp.lt.s32.totalorder %s7503_s22, %s7503_s22 }
  0x74   :  { %p7510_p12 = por %p7509_p11, %p7508_p10 }
  0x76   :  { %p7511_p13 = pnand %p7510_p12, %p7504_p9 }
  0x78   :  { %7514 = shalt.err (!%p7511_p13)
}
  0x79   :  { %96 = dma.hbm_to_vmem [thread:$0]  %s7855_s6, 32, %s94_s29, [#allocation12]  }
  0x7a   :  { %s7560_s24 = smov [#allocation14]   ;;  %s7515_s26 = scalar_lea.hbm %s7856_s7, 32 }
  0x7b   :  { %s103_s3 = sshll.u32 %s7560_s24, 4  ;;  %p7516_p0 = scmp.ne.s32.totalorder %s7856_s7, %s7515_s26  ;;  %s104_s3 = int_to_ptr.vmem [resolvable:$true] %s103_s3 }
  0x7c   :  { %p7519_p1 = scmp.lt.u32.totalorder %s7515_s26, %s7856_s7 }
  0x7e   :  { %p7521_p2 = pnand %p7519_p1, %p7516_p0 }
  0x80   :  { %7524 = shalt.err (!%p7521_p2)
}
  0x81   :  { %s7525_s13 = scalar_lea.vmem %s104_s3, 32  ;;  %p7530_p4 = scmp.lt.s32.totalorder %s104_s3, %s104_s3 }
  0x82   :  { %p7526_p3 = scmp.ne.s32.totalorder %s104_s3, %s7525_s13  ;;  %p7531_p5 = scmp.lt.s32.totalorder %s7525_s13, %s7525_s13 }
  0x84   :  { %p7532_p6 = por %p7531_p5, %p7530_p4 }
  0x86   :  { %p7533_p7 = pnand %p7532_p6, %p7526_p3 }
  0x88   :  { %7536 = shalt.err (!%p7533_p7)
}
  0x89   :  { %106 = dma.hbm_to_vmem [thread:$0]  %s7856_s7, 32, %s104_s3, [#allocation15]  }
  0x8a   :  { %7537 = dma.done.wait [#allocation4], 896  }
  0x8b   :  { %7538 = vsyncadd [#allocation4], 4294966400 }
  0x8c   :  { %7539 = dma.done.wait [#allocation6], 57472  }
  0x8d   :  { %7540 = vsyncadd [#allocation6], 4294909824 }
  0x8e   :  { %7541 = dma.done.wait [#allocation9], 32832  }
  0x8f   :  { %7542 = vsyncadd [#allocation9], 4294934464 }
  0x90   :  { %7543 = dma.done.wait [#allocation12], 8224  }
  0x91   :  { %7544 = vsyncadd [#allocation12], 4294959072 }
  0x92   :  { %7545 = dma.done.wait [#allocation15], 32  }
  0x93   :  { %7546 = vsyncadd [#allocation15], 4294967264  ;;  %v148_v1 = vld [vmem:[#allocation5] sm:$0xff]  ;;  %v135_v54 = vld [vmem:[#allocation3 + $0x8] sm:$0xff]  ;;  %vm5992_vm14 = vcmask 7168  }
  0x94   :  { %v152_v2 = vld [vmem:[#allocation5 + $0x20] sm:$0xff]  ;;  %v7711_v58 = vpack.c.bf16 %v135_v54, %v135_v54 }
  0x95   :  { %v276_v3 = vld [vmem:[#allocation5 + $0x400] sm:$0xff]  ;;  %v6004_v4 = vcombine.high %v148_v1, %v152_v2  ;;  %v6003_v6 = vcombine.low %v148_v1, %v152_v2 }
  0x96   :  { %v280_v5 = vld [vmem:[#allocation5 + $0x420] sm:$0xff]  ;;  %2910 = vmatprep.mubr.bf16.mxu1 %v7711_v58 }
  0x97   :  { %v156_v7 = vld [vmem:[#allocation5 + $0x40] sm:$0xff]  ;;  %v6132_v9 = vcombine.high %v276_v3, %v280_v5  ;;  %v6131_v10 = vcombine.low %v276_v3, %v280_v5  ;;  %2878 = vmatprep.subr.bf16.mxu1 %v6004_v4 }
  0x98   :  { %v160_v8 = vld [vmem:[#allocation5 + $0x60] sm:$0xff]  ;;  %2879 = vmatpush1.bf16.msra.mxu1 %v6003_v6 }
  0x99   :  { %v6012_v11 = vcombine.high %v156_v7, %v160_v8  ;;  %v284_v12 = vld [vmem:[#allocation5 + $0x440] sm:$0xff]  ;;  %2919 = vmatprep.subr.bf16.mxu0 %v6132_v9  ;;  %v6011_v19 = vcombine.low %v156_v7, %v160_v8 }
  0x9a   :  { %v288_v13 = vld [vmem:[#allocation5 + $0x460] sm:$0xff]  ;;  %2920 = vmatpush1.bf16.msra.mxu0 %v6131_v10 }
  0x9b   :  { %v164_v14 = vld [vmem:[#allocation5 + $0x80] sm:$0xff]  ;;  %v6140_v15 = vcombine.high %v284_v12, %v288_v13  ;;  %2880 = vmatprep.subr.bf16.mxu1 %v6012_v11  ;;  %v6139_v20 = vcombine.low %v284_v12, %v288_v13 }
  0x9c   :  { %v168_v16 = vld [vmem:[#allocation5 + $0xa0] sm:$0xff]  ;;  %2881 = vmatpush1.bf16.msra.mxu1 %v6011_v19 }
  0x9d   :  { %v292_v17 = vld [vmem:[#allocation5 + $0x480] sm:$0xff]  ;;  %v6020_v21 = vcombine.high %v164_v14, %v168_v16  ;;  %2921 = vmatprep.subr.bf16.mxu0 %v6140_v15  ;;  %v6019_v27 = vcombine.low %v164_v14, %v168_v16 }
  0x9e   :  { %v296_v18 = vld [vmem:[#allocation5 + $0x4a0] sm:$0xff]  ;;  %2922 = vmatpush1.bf16.msra.mxu0 %v6139_v20 }
  0x9f   :  { %v6148_v22 = vcombine.high %v292_v17, %v296_v18  ;;  %v172_v23 = vld [vmem:[#allocation5 + $0xc0] sm:$0xff]  ;;  %2882 = vmatprep.subr.bf16.mxu1 %v6020_v21  ;;  %v6147_v28 = vcombine.low %v292_v17, %v296_v18 }
  0xa0   :  { %v176_v24 = vld [vmem:[#allocation5 + $0xe0] sm:$0xff]  ;;  %2883 = vmatpush1.bf16.msra.mxu1 %v6019_v27 }
  0xa1   :  { %v300_v25 = vld [vmem:[#allocation5 + $0x4c0] sm:$0xff]  ;;  %v6028_v29 = vcombine.high %v172_v23, %v176_v24  ;;  %2923 = vmatprep.subr.bf16.mxu0 %v6148_v22  ;;  %v6027_v35 = vcombine.low %v172_v23, %v176_v24 }
  0xa2   :  { %v304_v26 = vld [vmem:[#allocation5 + $0x4e0] sm:$0xff]  ;;  %2924 = vmatpush1.bf16.msra.mxu0 %v6147_v28 }
  0xa3   :  { %v6156_v30 = vcombine.high %v300_v25, %v304_v26  ;;  %v180_v31 = vld [vmem:[#allocation5 + $0x100] sm:$0xff]  ;;  %2884 = vmatprep.subr.bf16.mxu1 %v6028_v29  ;;  %v6155_v36 = vcombine.low %v300_v25, %v304_v26 }
  0xa4   :  { %v184_v32 = vld [vmem:[#allocation5 + $0x120] sm:$0xff]  ;;  %2885 = vmatpush1.bf16.msra.mxu1 %v6027_v35 }
  0xa5   :  { %v308_v33 = vld [vmem:[#allocation5 + $0x500] sm:$0xff]  ;;  %v6036_v37 = vcombine.high %v180_v31, %v184_v32  ;;  %2925 = vmatprep.subr.bf16.mxu0 %v6156_v30  ;;  %v6035_v43 = vcombine.low %v180_v31, %v184_v32 }
  0xa6   :  { %v312_v34 = vld [vmem:[#allocation5 + $0x520] sm:$0xff]  ;;  %2926 = vmatpush1.bf16.msra.mxu0 %v6155_v36 }
  0xa7   :  { %v6164_v38 = vcombine.high %v308_v33, %v312_v34  ;;  %v188_v39 = vld [vmem:[#allocation5 + $0x140] sm:$0xff]  ;;  %2886 = vmatprep.subr.bf16.mxu1 %v6036_v37  ;;  %v6163_v44 = vcombine.low %v308_v33, %v312_v34 }
  0xa8   :  { %v192_v40 = vld [vmem:[#allocation5 + $0x160] sm:$0xff]  ;;  %2887 = vmatpush1.bf16.msra.mxu1 %v6035_v43 }
  0xa9   :  { %v316_v41 = vld [vmem:[#allocation5 + $0x540] sm:$0xff]  ;;  %v6044_v45 = vcombine.high %v188_v39, %v192_v40  ;;  %2927 = vmatprep.subr.bf16.mxu0 %v6164_v38  ;;  %v6043_v51 = vcombine.low %v188_v39, %v192_v40 }
  0xaa   :  { %v320_v42 = vld [vmem:[#allocation5 + $0x560] sm:$0xff]  ;;  %2928 = vmatpush1.bf16.msra.mxu0 %v6163_v44 }
  0xab   :  { %v6172_v46 = vcombine.high %v316_v41, %v320_v42  ;;  %v196_v47 = vld [vmem:[#allocation5 + $0x180] sm:$0xff]  ;;  %2888 = vmatprep.subr.bf16.mxu1 %v6044_v45  ;;  %v6171_v52 = vcombine.low %v316_v41, %v320_v42 }
  0xac   :  { %v200_v48 = vld [vmem:[#allocation5 + $0x1a0] sm:$0xff]  ;;  %2889 = vmatpush1.bf16.msra.mxu1 %v6043_v51 }
  0xad   :  { %v324_v49 = vld [vmem:[#allocation5 + $0x580] sm:$0xff]  ;;  %v6052_v53 = vcombine.high %v196_v47, %v200_v48  ;;  %2929 = vmatprep.subr.bf16.mxu0 %v6172_v46  ;;  %v6051_v63 = vcombine.low %v196_v47, %v200_v48 }
  0xae   :  { %v328_v50 = vld [vmem:[#allocation5 + $0x5a0] sm:$0xff]  ;;  %2930 = vmatpush1.bf16.msra.mxu0 %v6171_v52 }
  0xaf   :  { %v6180_v55 = vcombine.high %v324_v49, %v328_v50  ;;  %v204_v56 = vld [vmem:[#allocation5 + $0x1c0] sm:$0xff]  ;;  %2890 = vmatprep.subr.bf16.mxu1 %v6052_v53  ;;  %v6179_v0 = vcombine.low %v324_v49, %v328_v50 }
  0xb0   :  { %v208_v57 = vld [vmem:[#allocation5 + $0x1e0] sm:$0xff]  ;;  %2891 = vmatpush1.bf16.msra.mxu1 %v6051_v63 }
  0xb1   :  { %v137_v59 = vld [vmem:[#allocation3 + $0x18] sm:$0xff]  ;;  %v6060_v1 = vcombine.high %v204_v56, %v208_v57  ;;  %2931 = vmatprep.subr.bf16.mxu0 %v6180_v55  ;;  %v6059_v7 = vcombine.low %v204_v56, %v208_v57 }
  0xb2   :  { %v332_v60 = vld [vmem:[#allocation5 + $0x5c0] sm:$0xff]  ;;  %v7713_v62 = vpack.c.bf16 %v137_v59, %v137_v59  ;;  %2932 = vmatpush1.bf16.msra.mxu0 %v6179_v0 }
  0xb3   :  { %v336_v61 = vld [vmem:[#allocation5 + $0x5e0] sm:$0xff]  ;;  %2892 = vmatprep.subr.bf16.mxu1 %v6060_v1 }
  0xb4   :  { %v6188_v2 = vcombine.high %v332_v60, %v336_v61  ;;  %v212_v3 = vld [vmem:[#allocation5 + $0x200] sm:$0xff]  ;;  %2951 = vmatprep.mubr.bf16.mxu0 %v7713_v62  ;;  %v6187_v8 = vcombine.low %v332_v60, %v336_v61  ;;  %2893 = vmatpush1.bf16.msra.mxu1 %v6059_v7 }
  0xb5   :  { %v216_v4 = vld [vmem:[#allocation5 + $0x220] sm:$0xff] }
  0xb6   :  { %v340_v5 = vld [vmem:[#allocation5 + $0x600] sm:$0xff]  ;;  %v6068_v9 = vcombine.high %v212_v3, %v216_v4  ;;  %2933 = vmatprep.subr.bf16.mxu0 %v6188_v2  ;;  %v6067_v15 = vcombine.low %v212_v3, %v216_v4 }
  0xb7   :  { %v344_v6 = vld [vmem:[#allocation5 + $0x620] sm:$0xff]  ;;  %2934 = vmatpush1.bf16.msra.mxu0 %v6187_v8 }
  0xb8   :  { %v6196_v10 = vcombine.high %v340_v5, %v344_v6  ;;  %v220_v11 = vld [vmem:[#allocation5 + $0x240] sm:$0xff]  ;;  %2894 = vmatprep.subr.bf16.mxu1 %v6068_v9  ;;  %v6195_v16 = vcombine.low %v340_v5, %v344_v6  ;;  %v149_v5 = vld [vmem:[#allocation5 + $0x8] sm:$0xff] }
  0xb9   :  { %v224_v12 = vld [vmem:[#allocation5 + $0x260] sm:$0xff]  ;;  %2895 = vmatpush1.bf16.msra.mxu1 %v6067_v15  ;;  %v153_v6 = vld [vmem:[#allocation5 + $0x28] sm:$0xff] }
  0xba   :  { %v348_v13 = vld [vmem:[#allocation5 + $0x640] sm:$0xff]  ;;  %v6076_v17 = vcombine.high %v220_v11, %v224_v12  ;;  %2935 = vmatprep.subr.bf16.mxu0 %v6196_v10  ;;  %v6075_v23 = vcombine.low %v220_v11, %v224_v12  ;;  %v134_v10 = vld [vmem:[#allocation3] sm:$0xff]  ;;  %v6006_v12 = vcombine.high %v149_v5, %v153_v6 }
  0xbb   :  { %v352_v14 = vld [vmem:[#allocation5 + $0x660] sm:$0xff]  ;;  %2936 = vmatpush1.bf16.msra.mxu0 %v6195_v16  ;;  %v157_v15 = vld [vmem:[#allocation5 + $0x48] sm:$0xff] }
  0xbc   :  { %v6204_v18 = vcombine.high %v348_v13, %v352_v14  ;;  %v228_v19 = vld [vmem:[#allocation5 + $0x280] sm:$0xff]  ;;  %2896 = vmatprep.subr.bf16.mxu1 %v6076_v17  ;;  %v6203_v24 = vcombine.low %v348_v13, %v352_v14  ;;  %v136_v13 = vld [vmem:[#allocation3 + $0x10] sm:$0xff]  ;;  %v161_v16 = vld [vmem:[#allocation5 + $0x68] sm:$0xff]  ;;  %v7717_v17 = vpack.c.bf16 %v134_v10, %v134_v10 }
  0xbd   :  { %v232_v20 = vld [vmem:[#allocation5 + $0x2a0] sm:$0xff]  ;;  %2897 = vmatpush1.bf16.msra.mxu1 %v6075_v23 }
  0xbe   :  { %v356_v21 = vld [vmem:[#allocation5 + $0x680] sm:$0xff]  ;;  %v6084_v25 = vcombine.high %v228_v19, %v232_v20  ;;  %2937 = vmatprep.subr.bf16.mxu0 %v6204_v18  ;;  %v6083_v31 = vcombine.low %v228_v19, %v232_v20  ;;  %v139_v20 = vld [vmem:[#allocation3 + $0x28] sm:$0xff] }
  0xbf   :  { %v360_v22 = vld [vmem:[#allocation5 + $0x6a0] sm:$0xff]  ;;  %2938 = vmatpush1.bf16.msra.mxu0 %v6203_v24  ;;  %v6014_v24 = vcombine.high %v157_v15, %v161_v16 }
  0xc0   :  { %v6212_v26 = vcombine.high %v356_v21, %v360_v22  ;;  %v236_v27 = vld [vmem:[#allocation5 + $0x2c0] sm:$0xff]  ;;  %2898 = vmatprep.subr.bf16.mxu1 %v6084_v25  ;;  %v6211_v32 = vcombine.low %v356_v21, %v360_v22  ;;  %v6005_v21 = vcombine.low %v149_v5, %v153_v6  ;;  %v7719_v22 = vpack.c.bf16 %v136_v13, %v136_v13  ;;  %v205_v6 = vld [vmem:[#allocation5 + $0x1c8] sm:$0xff] }
  0xc1   :  { %v240_v28 = vld [vmem:[#allocation5 + $0x2e0] sm:$0xff]  ;;  %2899 = vmatpush1.bf16.msra.mxu1 %v6083_v31  ;;  %v6013_v31 = vcombine.low %v157_v15, %v161_v16  ;;  %v217_v16 = vld [vmem:[#allocation5 + $0x228] sm:$0xff] }
  0xc2   :  { %v364_v29 = vld [vmem:[#allocation5 + $0x6c0] sm:$0xff]  ;;  %v6092_v33 = vcombine.high %v236_v27, %v240_v28  ;;  %2939 = vmatprep.subr.bf16.mxu0 %v6212_v26  ;;  %v6091_v39 = vcombine.low %v236_v27, %v240_v28  ;;  %v165_v26 = vld [vmem:[#allocation5 + $0x88] sm:$0xff]  ;;  %v7721_v28 = vpack.c.bf16 %v139_v20, %v139_v20 }
  0xc3   :  { %v368_v30 = vld [vmem:[#allocation5 + $0x6e0] sm:$0xff]  ;;  %2940 = vmatpush1.bf16.msra.mxu0 %v6211_v32  ;;  %v169_v27 = vld [vmem:[#allocation5 + $0xa8] sm:$0xff] }
  0xc4   :  { %v6220_v34 = vcombine.high %v364_v29, %v368_v30  ;;  %v244_v35 = vld [vmem:[#allocation5 + $0x300] sm:$0xff]  ;;  %2900 = vmatprep.subr.bf16.mxu1 %v6092_v33  ;;  %v6219_v40 = vcombine.low %v364_v29, %v368_v30  ;;  %v6022_v33 = vcombine.high %v165_v26, %v169_v27 }
  0xc5   :  { %v248_v36 = vld [vmem:[#allocation5 + $0x320] sm:$0xff]  ;;  %2901 = vmatpush1.bf16.msra.mxu1 %v6091_v39  ;;  %v6021_v39 = vcombine.low %v165_v26, %v169_v27  ;;  %v225_v26 = vld [vmem:[#allocation5 + $0x268] sm:$0xff] }
  0xc6   :  { %v372_v37 = vld [vmem:[#allocation5 + $0x700] sm:$0xff]  ;;  %v6100_v41 = vcombine.high %v244_v35, %v248_v36  ;;  %2941 = vmatprep.subr.bf16.mxu0 %v6220_v34  ;;  %v6099_v47 = vcombine.low %v244_v35, %v248_v36  ;;  %v173_v36 = vld [vmem:[#allocation5 + $0xc8] sm:$0xff] }
  0xc7   :  { %v376_v38 = vld [vmem:[#allocation5 + $0x720] sm:$0xff]  ;;  %2942 = vmatpush1.bf16.msra.mxu0 %v6219_v40 }
  0xc8   :  { %v6228_v42 = vcombine.high %v372_v37, %v376_v38  ;;  %v252_v43 = vld [vmem:[#allocation5 + $0x340] sm:$0xff]  ;;  %2902 = vmatprep.subr.bf16.mxu1 %v6100_v41  ;;  %v6227_v48 = vcombine.low %v372_v37, %v376_v38  ;;  %v177_v38 = vld [vmem:[#allocation5 + $0xe8] sm:$0xff] }
  0xc9   :  { %v256_v44 = vld [vmem:[#allocation5 + $0x360] sm:$0xff]  ;;  %2903 = vmatpush1.bf16.msra.mxu1 %v6099_v47  ;;  %v6030_v41 = vcombine.high %v173_v36, %v177_v38  ;;  %v6029_v47 = vcombine.low %v173_v36, %v177_v38 }
  0xca   :  { %v380_v45 = vld [vmem:[#allocation5 + $0x740] sm:$0xff]  ;;  %v6108_v49 = vcombine.high %v252_v43, %v256_v44  ;;  %2943 = vmatprep.subr.bf16.mxu0 %v6228_v42  ;;  %v6107_v55 = vcombine.low %v252_v43, %v256_v44  ;;  %v181_v44 = vld [vmem:[#allocation5 + $0x108] sm:$0xff] }
  0xcb   :  { %v384_v46 = vld [vmem:[#allocation5 + $0x760] sm:$0xff]  ;;  %2944 = vmatpush1.bf16.msra.mxu0 %v6227_v48 }
  0xcc   :  { %v6236_v50 = vcombine.high %v380_v45, %v384_v46  ;;  %v260_v51 = vld [vmem:[#allocation5 + $0x380] sm:$0xff]  ;;  %2904 = vmatprep.subr.bf16.mxu1 %v6108_v49  ;;  %v6235_v56 = vcombine.low %v380_v45, %v384_v46  ;;  %v185_v46 = vld [vmem:[#allocation5 + $0x128] sm:$0xff] }
  0xcd   :  { %v264_v52 = vld [vmem:[#allocation5 + $0x3a0] sm:$0xff]  ;;  %2905 = vmatpush1.bf16.msra.mxu1 %v6107_v55  ;;  %v6038_v49 = vcombine.high %v181_v44, %v185_v46  ;;  %v6037_v55 = vcombine.low %v181_v44, %v185_v46 }
  0xce   :  { %v388_v53 = vld [vmem:[#allocation5 + $0x780] sm:$0xff]  ;;  %v6116_v57 = vcombine.high %v260_v51, %v264_v52  ;;  %2945 = vmatprep.subr.bf16.mxu0 %v6236_v50  ;;  %v6115_v1 = vcombine.low %v260_v51, %v264_v52  ;;  %v189_v52 = vld [vmem:[#allocation5 + $0x148] sm:$0xff] }
  0xcf   :  { %v392_v54 = vld [vmem:[#allocation5 + $0x7a0] sm:$0xff]  ;;  %2946 = vmatpush1.bf16.msra.mxu0 %v6235_v56 }
  0xd0   :  { %v6244_v59 = vcombine.high %v388_v53, %v392_v54  ;;  %v268_v60 = vld [vmem:[#allocation5 + $0x3c0] sm:$0xff]  ;;  %2906 = vmatprep.subr.bf16.mxu1 %v6116_v57  ;;  %v6243_v2 = vcombine.low %v388_v53, %v392_v54  ;;  %v193_v54 = vld [vmem:[#allocation5 + $0x168] sm:$0xff] }
  0xd1   :  { %v272_v61 = vld [vmem:[#allocation5 + $0x3e0] sm:$0xff]  ;;  %2907 = vmatpush1.bf16.msra.mxu1 %v6115_v1  ;;  %v6046_v57 = vcombine.high %v189_v52, %v193_v54  ;;  %v6045_v1 = vcombine.low %v189_v52, %v193_v54 }
  0xd2   :  { %v396_v63 = vld [vmem:[#allocation5 + $0x7c0] sm:$0xff]  ;;  %v6124_v3 = vcombine.high %v268_v60, %v272_v61  ;;  %2947 = vmatprep.subr.bf16.mxu0 %v6244_v59  ;;  %v6123_v9 = vcombine.low %v268_v60, %v272_v61  ;;  %v197_v61 = vld [vmem:[#allocation5 + $0x188] sm:$0xff] }
  0xd3   :  { %v400_v0 = vld [vmem:[#allocation5 + $0x7e0] sm:$0xff]  ;;  %2948 = vmatpush1.bf16.msra.mxu0 %v6243_v2 }
  0xd4   :  { %v6252_v4 = vcombine.high %v396_v63, %v400_v0  ;;  %v404_v7 = vld [vmem:[#allocation5 + $0x800] sm:$0xff]  ;;  %2908 = vmatprep.subr.bf16.mxu1 %v6124_v3  ;;  %v6251_v11 = vcombine.low %v396_v63, %v400_v0  ;;  %v201_v0 = vld [vmem:[#allocation5 + $0x1a8] sm:$0xff] }
  0xd5   :  { %v408_v8 = vld [vmem:[#allocation5 + $0x820] sm:$0xff]  ;;  %2909 = vmatpush1.bf16.msra.mxu1 %v6123_v9  ;;  %v6054_v3 = vcombine.high %v197_v61, %v201_v0  ;;  %v6053_v9 = vcombine.low %v197_v61, %v201_v0 }
  0xd6   :  { %2949 = vmatprep.subr.bf16.mxu0 %v6252_v4  ;;  %v6260_v14 = vcombine.high %v404_v7, %v408_v8  ;;  %v412_v18 = vld [vmem:[#allocation5 + $0x840] sm:$0xff]  ;;  %v6259_v23 = vcombine.low %v404_v7, %v408_v8  ;;  %3042 = vmatprep.subr.bf16.mxu1 %v6006_v12  ;;  %v209_v8 = vld [vmem:[#allocation5 + $0x1e8] sm:$0xff] }
  0xd7   :  { %v416_v19 = vld [vmem:[#allocation5 + $0x860] sm:$0xff]  ;;  %2950 = vmatpush1.bf16.msra.mxu0 %v6251_v11  ;;  %v6062_v11 = vcombine.high %v205_v6, %v209_v8 }
  0xd8   :  { %2960 = vmatprep.subr.bf16.mxu0 %v6260_v14  ;;  %v6268_v25 = vcombine.high %v412_v18, %v416_v19  ;;  %2911 = vmatmul.mubr.bf16.vlgmr.msra.gmra.mrb[0].mxu1 %v7717_v17  ;;  %v420_v29 = vld [vmem:[#allocation5 + $0x880] sm:$0xff]  ;;  %v6267_v32 = vcombine.low %v412_v18, %v416_v19  ;;  %v213_v14 = vld [vmem:[#allocation5 + $0x208] sm:$0xff]  ;;  %v6061_v18 = vcombine.low %v205_v6, %v209_v8 }
  0xd9   :  { %v424_v30 = vld [vmem:[#allocation5 + $0x8a0] sm:$0xff]  ;;  %3043 = vmatpush1.bf16.msra.mxu1 %v6005_v21  ;;  %3074 = vmatprep.mubr.bf16.mxu1 %v7711_v58  ;;  %v6070_v20 = vcombine.high %v213_v14, %v217_v16  ;;  %v6069_v27 = vcombine.low %v213_v14, %v217_v16 }
  0xda   :  { %2952 = vmatmul.mubr.bf16.vlgmr.msra.gmra.mrb[0].mxu0 %v7719_v22  ;;  %3044 = vmatprep.subr.bf16.mxu1 %v6014_v24  ;;  %v428_v34 = vld [vmem:[#allocation5 + $0x8c0] sm:$0xff]  ;;  %v6276_v37 = vcombine.high %v420_v29, %v424_v30  ;;  %v6275_v40 = vcombine.low %v420_v29, %v424_v30  ;;  %v221_v24 = vld [vmem:[#allocation5 + $0x248] sm:$0xff] }
  0xdb   :  { %2961 = vmatpush1.bf16.msra.mxu0 %v6259_v23  ;;  %v432_v35 = vld [vmem:[#allocation5 + $0x8e0] sm:$0xff]  ;;  %2992 = vmatprep.mubr.bf16.mxu0 %v7721_v28  ;;  %v6078_v30 = vcombine.high %v221_v24, %v225_v26  ;;  %v6077_v36 = vcombine.low %v221_v24, %v225_v26  ;;  %v138_v24 = vld [vmem:[#allocation3 + $0x20] sm:$0xff] }
  0xdc   :  { %2962 = vmatprep.subr.bf16.mxu0 %v6268_v25  ;;  %v436_v42 = vld [vmem:[#allocation5 + $0x900] sm:$0xff]  ;;  %v6284_v45 = vcombine.high %v428_v34, %v432_v35  ;;  %v6283_v48 = vcombine.low %v428_v34, %v432_v35  ;;  %v233_v35 = vld [vmem:[#allocation5 + $0x2a8] sm:$0xff] }
  0xdd   :  { %3045 = vmatpush1.bf16.msra.mxu1 %v6013_v31  ;;  %v440_v43 = vld [vmem:[#allocation5 + $0x920] sm:$0xff] }
  0xde   :  { %3046 = vmatprep.subr.bf16.mxu1 %v6022_v33  ;;  %v444_v50 = vld [vmem:[#allocation5 + $0x940] sm:$0xff]  ;;  %v6292_v53 = vcombine.high %v436_v42, %v440_v43  ;;  %v6291_v56 = vcombine.low %v436_v42, %v440_v43  ;;  %v229_v33 = vld [vmem:[#allocation5 + $0x288] sm:$0xff] }
  0xdf   :  { %2963 = vmatpush1.bf16.msra.mxu0 %v6267_v32  ;;  %v448_v51 = vld [vmem:[#allocation5 + $0x960] sm:$0xff]  ;;  %v6086_v38 = vcombine.high %v229_v33, %v233_v35  ;;  %v241_v43 = vld [vmem:[#allocation5 + $0x2e8] sm:$0xff]  ;;  %v6085_v44 = vcombine.low %v229_v33, %v233_v35  ;;  %v7727_v35 = vpack.c.bf16 %v138_v24, %v138_v24 }
  0xe0   :  { %2964 = vmatprep.subr.bf16.mxu0 %v6276_v37  ;;  %v452_v59 = vld [vmem:[#allocation5 + $0x980] sm:$0xff]  ;;  %v6300_v63 = vcombine.high %v444_v50, %v448_v51  ;;  %v6299_v2 = vcombine.low %v444_v50, %v448_v51  ;;  %v249_v51 = vld [vmem:[#allocation5 + $0x328] sm:$0xff] }
  0xe1   :  { %3047 = vmatpush1.bf16.msra.mxu1 %v6021_v39  ;;  %v456_v60 = vld [vmem:[#allocation5 + $0x9a0] sm:$0xff]  ;;  %v289_v33 = vld [vmem:[#allocation5 + $0x468] sm:$0xff] }
  0xe2   :  { %3048 = vmatprep.subr.bf16.mxu1 %v6030_v41  ;;  %v460_v4 = vld [vmem:[#allocation5 + $0x9c0] sm:$0xff]  ;;  %v6308_v7 = vcombine.high %v452_v59, %v456_v60  ;;  %v6307_v10 = vcombine.low %v452_v59, %v456_v60  ;;  %v237_v41 = vld [vmem:[#allocation5 + $0x2c8] sm:$0xff] }
  0xe3   :  { %2965 = vmatpush1.bf16.msra.mxu0 %v6275_v40  ;;  %v464_v5 = vld [vmem:[#allocation5 + $0x9e0] sm:$0xff]  ;;  %v6094_v46 = vcombine.high %v237_v41, %v241_v43  ;;  %v6093_v52 = vcombine.low %v237_v41, %v241_v43  ;;  %v257_v60 = vld [vmem:[#allocation5 + $0x368] sm:$0xff] }
  0xe4   :  { %2966 = vmatprep.subr.bf16.mxu0 %v6284_v45  ;;  %v468_v12 = vld [vmem:[#allocation5 + $0xa00] sm:$0xff]  ;;  %v6316_v15 = vcombine.high %v460_v4, %v464_v5  ;;  %v6315_v19 = vcombine.low %v460_v4, %v464_v5  ;;  %v265_v5 = vld [vmem:[#allocation5 + $0x3a8] sm:$0xff] }
  0xe5   :  { %3049 = vmatpush1.bf16.msra.mxu1 %v6029_v47  ;;  %v472_v13 = vld [vmem:[#allocation5 + $0xa20] sm:$0xff] }
  0xe6   :  { %3050 = vmatprep.subr.bf16.mxu1 %v6038_v49  ;;  %v476_v21 = vld [vmem:[#allocation5 + $0xa40] sm:$0xff]  ;;  %v6324_v25 = vcombine.high %v468_v12, %v472_v13  ;;  %v6323_v29 = vcombine.low %v468_v12, %v472_v13  ;;  %v245_v49 = vld [vmem:[#allocation5 + $0x308] sm:$0xff] }
  0xe7   :  { %2967 = vmatpush1.bf16.msra.mxu0 %v6283_v48  ;;  %v480_v23 = vld [vmem:[#allocation5 + $0xa60] sm:$0xff]  ;;  %v6102_v54 = vcombine.high %v245_v49, %v249_v51  ;;  %v6101_v61 = vcombine.low %v245_v49, %v249_v51  ;;  %v273_v13 = vld [vmem:[#allocation5 + $0x3e8] sm:$0xff]  ;;  %v7561_v51 = vmov 0  }
  0xe8   :  { %2968 = vmatprep.subr.bf16.mxu0 %v6292_v53  ;;  %v484_v31 = vld [vmem:[#allocation5 + $0xa80] sm:$0xff]  ;;  %v6332_v34 = vcombine.high %v476_v21, %v480_v23  ;;  %v6331_v37 = vcombine.low %v476_v21, %v480_v23  ;;  %v281_v23 = vld [vmem:[#allocation5 + $0x428] sm:$0xff] }
  0xe9   :  { %3051 = vmatpush1.bf16.msra.mxu1 %v6037_v55  ;;  %v488_v32 = vld [vmem:[#allocation5 + $0xaa0] sm:$0xff] }
  0xea   :  { %3052 = vmatprep.subr.bf16.mxu1 %v6046_v57  ;;  %v492_v39 = vld [vmem:[#allocation5 + $0xac0] sm:$0xff]  ;;  %v6340_v42 = vcombine.high %v484_v31, %v488_v32  ;;  %v6339_v45 = vcombine.low %v484_v31, %v488_v32  ;;  %v253_v57 = vld [vmem:[#allocation5 + $0x348] sm:$0xff] }
  0xeb   :  { %2969 = vmatpush1.bf16.msra.mxu0 %v6291_v56  ;;  %v496_v40 = vld [vmem:[#allocation5 + $0xae0] sm:$0xff]  ;;  %v6110_v0 = vcombine.high %v253_v57, %v257_v60  ;;  %v6109_v6 = vcombine.low %v253_v57, %v257_v60  ;;  %v285_v31 = vld [vmem:[#allocation5 + $0x448] sm:$0xff] }
  0xec   :  { %2970 = vmatprep.subr.bf16.mxu0 %v6300_v63  ;;  %v500_v47 = vld [vmem:[#allocation5 + $0xb00] sm:$0xff]  ;;  %v6348_v50 = vcombine.high %v492_v39, %v496_v40  ;;  %v6347_v53 = vcombine.low %v492_v39, %v496_v40  ;;  %v293_v40 = vld [vmem:[#allocation5 + $0x488] sm:$0xff]  ;;  %v6141_v43 = vcombine.low %v285_v31, %v289_v33 }
  0xed   :  { %3053 = vmatpush1.bf16.msra.mxu1 %v6045_v1  ;;  %v504_v48 = vld [vmem:[#allocation5 + $0xb20] sm:$0xff]  ;;  %v309_v57 = vld [vmem:[#allocation5 + $0x508] sm:$0xff] }
  0xee   :  { %3054 = vmatprep.subr.bf16.mxu1 %v6054_v3  ;;  %v508_v55 = vld [vmem:[#allocation5 + $0xb40] sm:$0xff]  ;;  %v6356_v59 = vcombine.high %v500_v47, %v504_v48  ;;  %v6355_v63 = vcombine.low %v500_v47, %v504_v48  ;;  %v261_v3 = vld [vmem:[#allocation5 + $0x388] sm:$0xff] }
  0xef   :  { %2971 = vmatpush1.bf16.msra.mxu0 %v6299_v2  ;;  %v512_v56 = vld [vmem:[#allocation5 + $0xb60] sm:$0xff]  ;;  %v6118_v8 = vcombine.high %v261_v3, %v265_v5  ;;  %v6117_v14 = vcombine.low %v261_v3, %v265_v5  ;;  %v301_v48 = vld [vmem:[#allocation5 + $0x4c8] sm:$0xff] }
  0xf0   :  { %2972 = vmatprep.subr.bf16.mxu0 %v6308_v7  ;;  %v516_v1 = vld [vmem:[#allocation5 + $0xb80] sm:$0xff]  ;;  %v6364_v4 = vcombine.high %v508_v55, %v512_v56  ;;  %v6363_v7 = vcombine.low %v508_v55, %v512_v56  ;;  %v313_v60 = vld [vmem:[#allocation5 + $0x528] sm:$0xff] }
  0xf1   :  { %3055 = vmatpush1.bf16.msra.mxu1 %v6053_v9  ;;  %v520_v2 = vld [vmem:[#allocation5 + $0xba0] sm:$0xff]  ;;  %v317_v3 = vld [vmem:[#allocation5 + $0x548] sm:$0xff] }
  0xf2   :  { %3056 = vmatprep.subr.bf16.mxu1 %v6062_v11  ;;  %v524_v9 = vld [vmem:[#allocation5 + $0xbc0] sm:$0xff]  ;;  %v269_v11 = vld [vmem:[#allocation5 + $0x3c8] sm:$0xff]  ;;  %v6372_v12 = vcombine.high %v516_v1, %v520_v2 }
  0xf3   :  { %2973 = vmatpush1.bf16.msra.mxu0 %v6307_v10  ;;  %v528_v10 = vld [vmem:[#allocation5 + $0xbe0] sm:$0xff]  ;;  %v6126_v16 = vcombine.high %v269_v11, %v273_v13  ;;  %v321_v5 = vld [vmem:[#allocation5 + $0x568] sm:$0xff] }
  0xf4   :  { %2974 = vmatprep.subr.bf16.mxu0 %v6316_v15  ;;  %v6371_v15 = vcombine.low %v516_v1, %v520_v2  ;;  %v6380_v21 = vcombine.high %v524_v9, %v528_v10  ;;  %v6379_v26 = vcombine.low %v524_v9, %v528_v10  ;;  %v552_v39 = vld [vmem:[#allocation5 + $0xca0] sm:$0xff] }
  0xf5   :  { %3057 = vmatpush1.bf16.msra.mxu1 %v6061_v18  ;;  %v532_v18 = vld [vmem:[#allocation5 + $0xc00] sm:$0xff] }
  0xf6   :  { %3058 = vmatprep.subr.bf16.mxu1 %v6070_v20  ;;  %v277_v20 = vld [vmem:[#allocation5 + $0x408] sm:$0xff]  ;;  %v560_v47 = vld [vmem:[#allocation5 + $0xce0] sm:$0xff] }
  0xf7   :  { %2975 = vmatpush1.bf16.msra.mxu0 %v6315_v19  ;;  %v536_v19 = vld [vmem:[#allocation5 + $0xc20] sm:$0xff] }
  0xf8   :  { %2976 = vmatprep.subr.bf16.mxu0 %v6324_v25  ;;  %v6125_v25 = vcombine.low %v269_v11, %v273_v13  ;;  %v6388_v32 = vcombine.high %v532_v18, %v536_v19  ;;  %v564_v55 = vld [vmem:[#allocation5 + $0xd00] sm:$0xff]  ;;  %v325_v11 = vld [vmem:[#allocation5 + $0x588] sm:$0xff] }
  0xf9   :  { %3059 = vmatpush1.bf16.msra.mxu1 %v6069_v27  ;;  %v6134_v27 = vcombine.high %v277_v20, %v281_v23  ;;  %v568_v56 = vld [vmem:[#allocation5 + $0xd20] sm:$0xff]  ;;  %v329_v13 = vld [vmem:[#allocation5 + $0x5a8] sm:$0xff] }
  0xfa   :  { %3060 = vmatprep.subr.bf16.mxu1 %v6078_v30  ;;  %v544_v30 = vld [vmem:[#allocation5 + $0xc60] sm:$0xff]  ;;  %v6181_v24 = vcombine.low %v325_v11, %v329_v13 }
  0xfb   :  { %2977 = vmatpush1.bf16.msra.mxu0 %v6323_v29  ;;  %v540_v29 = vld [vmem:[#allocation5 + $0xc40] sm:$0xff] }
  0xfc   :  { %2978 = vmatprep.subr.bf16.mxu0 %v6332_v34  ;;  %v6133_v34 = vcombine.low %v277_v20, %v281_v23  ;;  %v6396_v41 = vcombine.high %v540_v29, %v544_v30  ;;  %v572_v1 = vld [vmem:[#allocation5 + $0xd40] sm:$0xff]  ;;  %v337_v23 = vld [vmem:[#allocation5 + $0x5e8] sm:$0xff] }
  0xfd   :  { %3061 = vmatpush1.bf16.msra.mxu1 %v6077_v36  ;;  %v6387_v36 = vcombine.low %v532_v18, %v536_v19  ;;  %v576_v2 = vld [vmem:[#allocation5 + $0xd60] sm:$0xff] }
  0xfe   :  { %3062 = vmatprep.subr.bf16.mxu1 %v6086_v38  ;;  %v548_v38 = vld [vmem:[#allocation5 + $0xc80] sm:$0xff] }
  0xff   :  { %2979 = vmatpush1.bf16.msra.mxu0 %v6331_v37  ;;  %v6142_v37 = vcombine.high %v285_v31, %v289_v33  ;;  %v6404_v49 = vcombine.high %v548_v38, %v552_v39  ;;  %v580_v9 = vld [vmem:[#allocation5 + $0xd80] sm:$0xff]  ;;  %v140_v33 = vld [vmem:[#allocation3 + $0x30] sm:$0xff] }
 0x100   :  { %2980 = vmatprep.subr.bf16.mxu0 %v6340_v42  ;;  %v297_v42 = vld [vmem:[#allocation5 + $0x4a8] sm:$0xff]  ;;  %v584_v10 = vld [vmem:[#allocation5 + $0xda0] sm:$0xff] }
 0x101   :  { %3063 = vmatpush1.bf16.msra.mxu1 %v6085_v44  ;;  %v6395_v44 = vcombine.low %v540_v29, %v544_v30  ;;  %v588_v18 = vld [vmem:[#allocation5 + $0xdc0] sm:$0xff]  ;;  %v6436_v20 = vcombine.high %v580_v9, %v584_v10  ;;  %v345_v29 = vld [vmem:[#allocation5 + $0x628] sm:$0xff]  ;;  %v150_v30 = vld [vmem:[#allocation5 + $0x10] sm:$0xff] }
 0x102   :  { %3064 = vmatprep.subr.bf16.mxu1 %v6094_v46  ;;  %v556_v46 = vld [vmem:[#allocation5 + $0xcc0] sm:$0xff] }
 0x103   :  { %2981 = vmatpush1.bf16.msra.mxu0 %v6339_v45  ;;  %v6150_v45 = vcombine.high %v293_v40, %v297_v42  ;;  %v592_v19 = vld [vmem:[#allocation5 + $0xde0] sm:$0xff] }
 0x104   :  { %2982 = vmatprep.subr.bf16.mxu0 %v6348_v50  ;;  %v305_v50 = vld [vmem:[#allocation5 + $0x4e8] sm:$0xff]  ;;  %v6444_v31 = vcombine.high %v588_v18, %v592_v19 }
 0x105   :  { %3065 = vmatpush1.bf16.msra.mxu1 %v6093_v52  ;;  %v6149_v52 = vcombine.low %v293_v40, %v297_v42  ;;  %v158_v40 = vld [vmem:[#allocation5 + $0x50] sm:$0xff] }
 0x106   :  { %3066 = vmatprep.subr.bf16.mxu1 %v6102_v54  ;;  %v6158_v54 = vcombine.high %v301_v48, %v305_v50  ;;  %v162_v42 = vld [vmem:[#allocation5 + $0x70] sm:$0xff] }
 0x107   :  { %2983 = vmatpush1.bf16.msra.mxu0 %v6347_v53  ;;  %v6403_v53 = vcombine.low %v548_v38, %v552_v39  ;;  %v349_v38 = vld [vmem:[#allocation5 + $0x648] sm:$0xff] }
 0x108   :  { %2984 = vmatprep.subr.bf16.mxu0 %v6356_v59  ;;  %v6412_v59 = vcombine.high %v556_v46, %v560_v47  ;;  %v353_v39 = vld [vmem:[#allocation5 + $0x668] sm:$0xff] }
 0x109   :  { %3067 = vmatpush1.bf16.msra.mxu1 %v6101_v61  ;;  %v6157_v61 = vcombine.low %v301_v48, %v305_v50  ;;  %v361_v48 = vld [vmem:[#allocation5 + $0x6a8] sm:$0xff]  ;;  %v6016_v50 = vcombine.high %v158_v40, %v162_v42 }
 0x10a   :  { %3068 = vmatprep.subr.bf16.mxu1 %v6110_v0  ;;  %v6166_v0 = vcombine.high %v309_v57, %v313_v60 }
 0x10b   :  { %2985 = vmatpush1.bf16.msra.mxu0 %v6355_v63  ;;  %v6411_v63 = vcombine.low %v556_v46, %v560_v47  ;;  %v6206_v46 = vcombine.high %v349_v38, %v353_v39  ;;  %v357_v47 = vld [vmem:[#allocation5 + $0x688] sm:$0xff] }
 0x10c   :  { %2986 = vmatprep.subr.bf16.mxu0 %v6364_v4  ;;  %v6420_v4 = vcombine.high %v564_v55, %v568_v56 }
 0x10d   :  { %3069 = vmatpush1.bf16.msra.mxu1 %v6109_v6  ;;  %v6165_v6 = vcombine.low %v309_v57, %v313_v60  ;;  %v369_v57 = vld [vmem:[#allocation5 + $0x6e8] sm:$0xff] }
 0x10e   :  { %3070 = vmatprep.subr.bf16.mxu1 %v6118_v8  ;;  %v6174_v8 = vcombine.high %v317_v3, %v321_v5 }
 0x10f   :  { %2987 = vmatpush1.bf16.msra.mxu0 %v6363_v7  ;;  %v6419_v7 = vcombine.low %v564_v55, %v568_v56  ;;  %v6214_v55 = vcombine.high %v357_v47, %v361_v48  ;;  %v365_v56 = vld [vmem:[#allocation5 + $0x6c8] sm:$0xff] }
 0x110   :  { %2988 = vmatprep.subr.bf16.mxu0 %v6372_v12  ;;  %v6428_v12 = vcombine.high %v572_v1, %v576_v2 }
 0x111   :  { %3071 = vmatpush1.bf16.msra.mxu1 %v6117_v14  ;;  %v6173_v14 = vcombine.low %v317_v3, %v321_v5  ;;  %v377_v3 = vld [vmem:[#allocation5 + $0x728] sm:$0xff] }
 0x112   :  { %3072 = vmatprep.subr.bf16.mxu1 %v6126_v16  ;;  %v6182_v16 = vcombine.high %v325_v11, %v329_v13  ;;  %v385_v11 = vld [vmem:[#allocation5 + $0x768] sm:$0xff] }
 0x113   :  { %2989 = vmatpush1.bf16.msra.mxu0 %v6371_v15  ;;  %v6427_v15 = vcombine.low %v572_v1, %v576_v2  ;;  %v6222_v1 = vcombine.high %v365_v56, %v369_v57  ;;  %v373_v2 = vld [vmem:[#allocation5 + $0x708] sm:$0xff] }
 0x114   :  { %2990 = vmatprep.subr.bf16.mxu0 %v6380_v21  ;;  %v333_v21 = vld [vmem:[#allocation5 + $0x5c8] sm:$0xff] }
 0x115   :  { %3073 = vmatpush1.bf16.msra.mxu1 %v6125_v25  ;;  %v6435_v25 = vcombine.low %v580_v9, %v584_v10  ;;  %v6230_v9 = vcombine.high %v373_v2, %v377_v3  ;;  %v381_v10 = vld [vmem:[#allocation5 + $0x748] sm:$0xff] }
 0x116   :  { %3083 = vmatprep.subr.bf16.mxu1 %v6134_v27  ;;  %v341_v27 = vld [vmem:[#allocation5 + $0x608] sm:$0xff] }
 0x117   :  { %2991 = vmatpush1.bf16.msra.mxu0 %v6379_v26  ;;  %v6190_v26 = vcombine.high %v333_v21, %v337_v23 }
 0x118   :  { %3001 = vmatprep.subr.bf16.mxu0 %v6388_v32  ;;  %3075 = vmatmul.mubr.bf16.vlgmr.msra.gmra.mrb[4].mxu1 %v7717_v17  ;;  %v154_v32 = vld [vmem:[#allocation5 + $0x30] sm:$0xff] }
 0x119   :  { %3084 = vmatpush1.bf16.msra.mxu1 %v6133_v34  ;;  %3115 = vmatprep.mubr.bf16.mxu1 %v7713_v62  ;;  %v6189_v34 = vcombine.low %v333_v21, %v337_v23  ;;  %v198_v21 = vld [vmem:[#allocation5 + $0x190] sm:$0xff] }
 0x11a   :  { %2993 = vmatmul.mubr.bf16.vlgmr.msra.gmra.mrb[0].mxu0 %v7727_v35  ;;  %3085 = vmatprep.subr.bf16.mxu1 %v6142_v37  ;;  %v6198_v37 = vcombine.high %v341_v27, %v345_v29 }
 0x11b   :  { %3002 = vmatpush1.bf16.msra.mxu0 %v6387_v36  ;;  %3033 = vmatprep.mubr.bf16.mxu0 %v7561_v51  ;;  %v6443_v36 = vcombine.low %v588_v18, %v592_v19  ;;  %v6238_v18 = vcombine.high %v381_v10, %v385_v11  ;;  %v389_v19 = vld [vmem:[#allocation5 + $0x788] sm:$0xff] }
 0x11c   :  { %3003 = vmatprep.subr.bf16.mxu0 %v6396_v41  ;;  %v6008_v41 = vcombine.high %v150_v30, %v154_v32 }
 0x11d   :  { %3086 = vmatpush1.bf16.msra.mxu1 %v6141_v43  ;;  %v7733_v43 = vpack.c.bf16 %v140_v33, %v140_v33  ;;  %v210_v33 = vld [vmem:[#allocation5 + $0x1f0] sm:$0xff] }
 0x11e   :  { %3087 = vmatprep.subr.bf16.mxu1 %v6150_v45  ;;  %v6007_v45 = vcombine.low %v150_v30, %v154_v32  ;;  %v401_v30 = vld [vmem:[#allocation5 + $0x7e8] sm:$0xff] }
 0x11f   :  { %3004 = vmatpush1.bf16.msra.mxu0 %v6395_v44  ;;  %v6197_v44 = vcombine.low %v341_v27, %v345_v29  ;;  %v397_v29 = vld [vmem:[#allocation5 + $0x7c8] sm:$0xff] }
 0x120   :  { %3005 = vmatprep.subr.bf16.mxu0 %v6404_v49  ;;  %v166_v49 = vld [vmem:[#allocation5 + $0x90] sm:$0xff] }
 0x121   :  { %3088 = vmatpush1.bf16.msra.mxu1 %v6149_v52  ;;  %v170_v52 = vld [vmem:[#allocation5 + $0xb0] sm:$0xff] }
 0x122   :  { %3089 = vmatprep.subr.bf16.mxu1 %v6158_v54  ;;  %v6015_v54 = vcombine.low %v158_v40, %v162_v42  ;;  %v6024_v60 = vcombine.high %v166_v49, %v170_v52  ;;  %v214_v40 = vld [vmem:[#allocation5 + $0x210] sm:$0xff] }
 0x123   :  { %3006 = vmatpush1.bf16.msra.mxu0 %v6403_v53  ;;  %v6205_v53 = vcombine.low %v349_v38, %v353_v39  ;;  %v405_v38 = vld [vmem:[#allocation5 + $0x808] sm:$0xff]  ;;  %v218_v42 = vld [vmem:[#allocation5 + $0x230] sm:$0xff] }
 0x124   :  { %3007 = vmatprep.subr.bf16.mxu0 %v6412_v59  ;;  %v174_v59 = vld [vmem:[#allocation5 + $0xd0] sm:$0xff]  ;;  %v409_v39 = vld [vmem:[#allocation5 + $0x828] sm:$0xff] }
 0x125   :  { %3090 = vmatpush1.bf16.msra.mxu1 %v6157_v61  ;;  %v178_v61 = vld [vmem:[#allocation5 + $0xf0] sm:$0xff] }
 0x126   :  { %3091 = vmatprep.subr.bf16.mxu1 %v6166_v0  ;;  %v6023_v0 = vcombine.low %v166_v49, %v170_v52  ;;  %v6032_v5 = vcombine.high %v174_v59, %v178_v61  ;;  %v222_v49 = vld [vmem:[#allocation5 + $0x250] sm:$0xff] }
 0x127   :  { %3008 = vmatpush1.bf16.msra.mxu0 %v6411_v63  ;;  %v6213_v63 = vcombine.low %v357_v47, %v361_v48  ;;  %v413_v47 = vld [vmem:[#allocation5 + $0x848] sm:$0xff]  ;;  %v226_v52 = vld [vmem:[#allocation5 + $0x270] sm:$0xff] }
 0x128   :  { %3009 = vmatprep.subr.bf16.mxu0 %v6420_v4  ;;  %v182_v4 = vld [vmem:[#allocation5 + $0x110] sm:$0xff]  ;;  %v417_v48 = vld [vmem:[#allocation5 + $0x868] sm:$0xff] }
 0x129   :  { %3092 = vmatpush1.bf16.msra.mxu1 %v6165_v6  ;;  %v186_v6 = vld [vmem:[#allocation5 + $0x130] sm:$0xff] }
 0x12a   :  { %3093 = vmatprep.subr.bf16.mxu1 %v6174_v8  ;;  %v6031_v8 = vcombine.low %v174_v59, %v178_v61  ;;  %v6040_v13 = vcombine.high %v182_v4, %v186_v6  ;;  %v230_v59 = vld [vmem:[#allocation5 + $0x290] sm:$0xff] }
 0x12b   :  { %3010 = vmatpush1.bf16.msra.mxu0 %v6419_v7  ;;  %v6221_v7 = vcombine.low %v365_v56, %v369_v57  ;;  %v421_v56 = vld [vmem:[#allocation5 + $0x888] sm:$0xff]  ;;  %v234_v61 = vld [vmem:[#allocation5 + $0x2b0] sm:$0xff] }
 0x12c   :  { %3011 = vmatprep.subr.bf16.mxu0 %v6428_v12  ;;  %v190_v12 = vld [vmem:[#allocation5 + $0x150] sm:$0xff]  ;;  %v425_v57 = vld [vmem:[#allocation5 + $0x8a8] sm:$0xff] }
 0x12d   :  { %3094 = vmatpush1.bf16.msra.mxu1 %v6173_v14  ;;  %v194_v14 = vld [vmem:[#allocation5 + $0x170] sm:$0xff] }
 0x12e   :  { %3095 = vmatprep.subr.bf16.mxu1 %v6182_v16  ;;  %v6039_v16 = vcombine.low %v182_v4, %v186_v6  ;;  %v6048_v23 = vcombine.high %v190_v12, %v194_v14  ;;  %v238_v4 = vld [vmem:[#allocation5 + $0x2d0] sm:$0xff] }
 0x12f   :  { %3012 = vmatpush1.bf16.msra.mxu0 %v6427_v15  ;;  %v6229_v15 = vcombine.low %v373_v2, %v377_v3  ;;  %v429_v2 = vld [vmem:[#allocation5 + $0x8c8] sm:$0xff]  ;;  %v242_v6 = vld [vmem:[#allocation5 + $0x2f0] sm:$0xff] }
 0x130   :  { %3013 = vmatprep.subr.bf16.mxu0 %v6436_v20  ;;  %v393_v20 = vld [vmem:[#allocation5 + $0x7a8] sm:$0xff] }
 0x131   :  { %3096 = vmatpush1.bf16.msra.mxu1 %v6181_v24  ;;  %v202_v24 = vld [vmem:[#allocation5 + $0x1b0] sm:$0xff]  ;;  %v6246_v27 = vcombine.high %v389_v19, %v393_v20  ;;  %v433_v3 = vld [vmem:[#allocation5 + $0x8e8] sm:$0xff] }
 0x132   :  { %3097 = vmatprep.subr.bf16.mxu1 %v6190_v26  ;;  %v6047_v26 = vcombine.low %v190_v12, %v194_v14  ;;  %v6056_v32 = vcombine.high %v198_v21, %v202_v24  ;;  %v246_v12 = vld [vmem:[#allocation5 + $0x310] sm:$0xff] }
 0x133   :  { %3014 = vmatpush1.bf16.msra.mxu0 %v6435_v25  ;;  %v6237_v25 = vcombine.low %v381_v10, %v385_v11  ;;  %v437_v10 = vld [vmem:[#allocation5 + $0x908] sm:$0xff]  ;;  %v250_v14 = vld [vmem:[#allocation5 + $0x330] sm:$0xff] }
 0x134   :  { %3015 = vmatprep.subr.bf16.mxu0 %v6444_v31  ;;  %v206_v31 = vld [vmem:[#allocation5 + $0x1d0] sm:$0xff]  ;;  %v441_v11 = vld [vmem:[#allocation5 + $0x928] sm:$0xff] }
 0x135   :  { %3098 = vmatpush1.bf16.msra.mxu1 %v6189_v34  ;;  %v6245_v34 = vcombine.low %v389_v19, %v393_v20  ;;  %v445_v19 = vld [vmem:[#allocation5 + $0x948] sm:$0xff] }
 0x136   :  { %3099 = vmatprep.subr.bf16.mxu1 %v6198_v37  ;;  %v6254_v37 = vcombine.high %v397_v29, %v401_v30  ;;  %v449_v20 = vld [vmem:[#allocation5 + $0x968] sm:$0xff] }
 0x137   :  { %3016 = vmatpush1.bf16.msra.mxu0 %v6443_v36  ;;  %v6055_v36 = vcombine.low %v198_v21, %v202_v24  ;;  %v254_v21 = vld [vmem:[#allocation5 + $0x350] sm:$0xff] }
 0x138   :  { %3206 = vmatprep.subr.bf16.mxu0 %v6008_v41  ;;  %v6064_v41 = vcombine.high %v206_v31, %v210_v33  ;;  %v258_v24 = vld [vmem:[#allocation5 + $0x370] sm:$0xff] }
 0x139   :  { %3100 = vmatpush1.bf16.msra.mxu1 %v6197_v44  ;;  %v6253_v44 = vcombine.low %v397_v29, %v401_v30  ;;  %v453_v29 = vld [vmem:[#allocation5 + $0x988] sm:$0xff] }
 0x13a   :  { %3034 = vmatmul.mubr.bf16.vlgmr.msra.gmra.mrb[0].mxu0 %v7733_v43  ;;  %3101 = vmatprep.subr.bf16.mxu1 %v6206_v46  ;;  %v6262_v46 = vcombine.high %v405_v38, %v409_v39  ;;  %v457_v30 = vld [vmem:[#allocation5 + $0x9a8] sm:$0xff] }
 0x13b   :  { %3207 = vmatpush1.bf16.msra.mxu0 %v6007_v45  ;;  %3238 = vmatprep.mubr.bf16.mxu0 %v7711_v58  ;;  %v6063_v45 = vcombine.low %v206_v31, %v210_v33  ;;  %v262_v31 = vld [vmem:[#allocation5 + $0x390] sm:$0xff] }
 0x13c   :  { %3208 = vmatprep.subr.bf16.mxu0 %v6016_v50  ;;  %v6072_v50 = vcombine.high %v214_v40, %v218_v42  ;;  %v266_v33 = vld [vmem:[#allocation5 + $0x3b0] sm:$0xff] }
 0x13d   :  { %3102 = vmatpush1.bf16.msra.mxu1 %v6205_v53  ;;  %v6261_v53 = vcombine.low %v405_v38, %v409_v39  ;;  %v461_v38 = vld [vmem:[#allocation5 + $0x9c8] sm:$0xff] }
 0x13e   :  { %3103 = vmatprep.subr.bf16.mxu1 %v6214_v55  ;;  %v6270_v55 = vcombine.high %v413_v47, %v417_v48  ;;  %v465_v39 = vld [vmem:[#allocation5 + $0x9e8] sm:$0xff] }
 0x13f   :  { %3209 = vmatpush1.bf16.msra.mxu0 %v6015_v54  ;;  %v6071_v54 = vcombine.low %v214_v40, %v218_v42  ;;  %v270_v40 = vld [vmem:[#allocation5 + $0x3d0] sm:$0xff] }
 0x140   :  { %3210 = vmatprep.subr.bf16.mxu0 %v6024_v60  ;;  %v6080_v60 = vcombine.high %v222_v49, %v226_v52  ;;  %v274_v42 = vld [vmem:[#allocation5 + $0x3f0] sm:$0xff] }
 0x141   :  { %3104 = vmatpush1.bf16.msra.mxu1 %v6213_v63  ;;  %v6269_v63 = vcombine.low %v413_v47, %v417_v48  ;;  %v469_v47 = vld [vmem:[#allocation5 + $0xa08] sm:$0xff] }
 0x142   :  { %3105 = vmatprep.subr.bf16.mxu1 %v6222_v1  ;;  %v6278_v1 = vcombine.high %v421_v56, %v425_v57  ;;  %v473_v48 = vld [vmem:[#allocation5 + $0xa28] sm:$0xff] }
 0x143   :  { %3211 = vmatpush1.bf16.msra.mxu0 %v6023_v0  ;;  %v6079_v0 = vcombine.low %v222_v49, %v226_v52  ;;  %v278_v49 = vld [vmem:[#allocation5 + $0x410] sm:$0xff] }
 0x144   :  { %3212 = vmatprep.subr.bf16.mxu0 %v6032_v5  ;;  %v6088_v5 = vcombine.high %v230_v59, %v234_v61  ;;  %v282_v52 = vld [vmem:[#allocation5 + $0x430] sm:$0xff] }
 0x145   :  { %3106 = vmatpush1.bf16.msra.mxu1 %v6221_v7  ;;  %v6277_v7 = vcombine.low %v421_v56, %v425_v57  ;;  %v477_v56 = vld [vmem:[#allocation5 + $0xa48] sm:$0xff] }
 0x146   :  { %3107 = vmatprep.subr.bf16.mxu1 %v6230_v9  ;;  %v6286_v9 = vcombine.high %v429_v2, %v433_v3  ;;  %v481_v57 = vld [vmem:[#allocation5 + $0xa68] sm:$0xff] }
 0x147   :  { %3213 = vmatpush1.bf16.msra.mxu0 %v6031_v8  ;;  %v6087_v8 = vcombine.low %v230_v59, %v234_v61  ;;  %v286_v59 = vld [vmem:[#allocation5 + $0x450] sm:$0xff] }
 0x148   :  { %3214 = vmatprep.subr.bf16.mxu0 %v6040_v13  ;;  %v6096_v13 = vcombine.high %v238_v4, %v242_v6  ;;  %v290_v61 = vld [vmem:[#allocation5 + $0x470] sm:$0xff] }
 0x149   :  { %3108 = vmatpush1.bf16.msra.mxu1 %v6229_v15  ;;  %v6285_v15 = vcombine.low %v429_v2, %v433_v3  ;;  %v485_v2 = vld [vmem:[#allocation5 + $0xa88] sm:$0xff] }
 0x14a   :  { %3109 = vmatprep.subr.bf16.mxu1 %v6238_v18  ;;  %v6294_v18 = vcombine.high %v437_v10, %v441_v11  ;;  %v489_v3 = vld [vmem:[#allocation5 + $0xaa8] sm:$0xff] }
 0x14b   :  { %3215 = vmatpush1.bf16.msra.mxu0 %v6039_v16  ;;  %v6095_v16 = vcombine.low %v238_v4, %v242_v6  ;;  %v294_v4 = vld [vmem:[#allocation5 + $0x490] sm:$0xff] }
 0x14c   :  { %3216 = vmatprep.subr.bf16.mxu0 %v6048_v23  ;;  %v6104_v23 = vcombine.high %v246_v12, %v250_v14  ;;  %v298_v6 = vld [vmem:[#allocation5 + $0x4b0] sm:$0xff] }
 0x14d   :  { %3110 = vmatpush1.bf16.msra.mxu1 %v6237_v25  ;;  %v6293_v25 = vcombine.low %v437_v10, %v441_v11  ;;  %v6152_v10 = vcombine.high %v294_v4, %v298_v6  ;;  %v493_v11 = vld [vmem:[#allocation5 + $0xac8] sm:$0xff] }
 0x14e   :  { %3111 = vmatprep.subr.bf16.mxu1 %v6246_v27  ;;  %v6302_v27 = vcombine.high %v445_v19, %v449_v20 }
 0x14f   :  { %3217 = vmatpush1.bf16.msra.mxu0 %v6047_v26  ;;  %v6103_v26 = vcombine.low %v246_v12, %v250_v14  ;;  %v497_v12 = vld [vmem:[#allocation5 + $0xae8] sm:$0xff]  ;;  %v306_v14 = vld [vmem:[#allocation5 + $0x4f0] sm:$0xff] }
 0x150   :  { %3218 = vmatprep.subr.bf16.mxu0 %v6056_v32  ;;  %v6112_v32 = vcombine.high %v254_v21, %v258_v24 }
 0x151   :  { %3112 = vmatpush1.bf16.msra.mxu1 %v6245_v34  ;;  %v6301_v34 = vcombine.low %v445_v19, %v449_v20  ;;  %v501_v20 = vld [vmem:[#allocation5 + $0xb08] sm:$0xff] }
 0x152   :  { %3113 = vmatprep.subr.bf16.mxu1 %v6254_v37  ;;  %v6310_v37 = vcombine.high %v453_v29, %v457_v30 }
 0x153   :  { %3219 = vmatpush1.bf16.msra.mxu0 %v6055_v36  ;;  %v6111_v36 = vcombine.low %v254_v21, %v258_v24  ;;  %v505_v21 = vld [vmem:[#allocation5 + $0xb28] sm:$0xff]  ;;  %v314_v24 = vld [vmem:[#allocation5 + $0x530] sm:$0xff] }
 0x154   :  { %3220 = vmatprep.subr.bf16.mxu0 %v6064_v41  ;;  %v6120_v41 = vcombine.high %v262_v31, %v266_v33 }
 0x155   :  { %3114 = vmatpush1.bf16.msra.mxu1 %v6253_v44  ;;  %v6309_v44 = vcombine.low %v453_v29, %v457_v30  ;;  %v509_v30 = vld [vmem:[#allocation5 + $0xb48] sm:$0xff] }
 0x156   :  { %3124 = vmatprep.subr.bf16.mxu1 %v6262_v46  ;;  %v6318_v46 = vcombine.high %v461_v38, %v465_v39 }
 0x157   :  { %3221 = vmatpush1.bf16.msra.mxu0 %v6063_v45  ;;  %v6119_v45 = vcombine.low %v262_v31, %v266_v33  ;;  %v513_v31 = vld [vmem:[#allocation5 + $0xb68] sm:$0xff]  ;;  %v322_v33 = vld [vmem:[#allocation5 + $0x570] sm:$0xff] }
 0x158   :  { %3222 = vmatprep.subr.bf16.mxu0 %v6072_v50  ;;  %3116 = vmatmul.mubr.bf16.vlgmr.msra.gmra.mrb[4].mxu1 %v7719_v22  ;;  %v6128_v50 = vcombine.high %v270_v40, %v274_v42 }
 0x159   :  { %3125 = vmatpush1.bf16.msra.mxu1 %v6261_v53  ;;  %3156 = vmatprep.mubr.bf16.mxu1 %v7721_v28  ;;  %v6317_v53 = vcombine.low %v461_v38, %v465_v39  ;;  %v517_v39 = vld [vmem:[#allocation5 + $0xb88] sm:$0xff] }
 0x15a   :  { %3126 = vmatprep.subr.bf16.mxu1 %v6270_v55  ;;  %v6326_v55 = vcombine.high %v469_v47, %v473_v48 }
 0x15b   :  { %3223 = vmatpush1.bf16.msra.mxu0 %v6071_v54  ;;  %v6127_v54 = vcombine.low %v270_v40, %v274_v42  ;;  %v521_v40 = vld [vmem:[#allocation5 + $0xba8] sm:$0xff]  ;;  %v330_v42 = vld [vmem:[#allocation5 + $0x5b0] sm:$0xff] }
 0x15c   :  { %3224 = vmatprep.subr.bf16.mxu0 %v6080_v60  ;;  %v6136_v60 = vcombine.high %v278_v49, %v282_v52 }
 0x15d   :  { %3127 = vmatpush1.bf16.msra.mxu1 %v6269_v63  ;;  %v6325_v63 = vcombine.low %v469_v47, %v473_v48  ;;  %v525_v48 = vld [vmem:[#allocation5 + $0xbc8] sm:$0xff] }
 0x15e   :  { %3128 = vmatprep.subr.bf16.mxu1 %v6278_v1  ;;  %v6334_v1 = vcombine.high %v477_v56, %v481_v57 }
 0x15f   :  { %3225 = vmatpush1.bf16.msra.mxu0 %v6079_v0  ;;  %v6135_v0 = vcombine.low %v278_v49, %v282_v52  ;;  %v529_v49 = vld [vmem:[#allocation5 + $0xbe8] sm:$0xff]  ;;  %v338_v52 = vld [vmem:[#allocation5 + $0x5f0] sm:$0xff] }
 0x160   :  { %3226 = vmatprep.subr.bf16.mxu0 %v6088_v5  ;;  %v6144_v5 = vcombine.high %v286_v59, %v290_v61 }
 0x161   :  { %3129 = vmatpush1.bf16.msra.mxu1 %v6277_v7  ;;  %v6333_v7 = vcombine.low %v477_v56, %v481_v57  ;;  %v533_v57 = vld [vmem:[#allocation5 + $0xc08] sm:$0xff] }
 0x162   :  { %3130 = vmatprep.subr.bf16.mxu1 %v6286_v9  ;;  %v6342_v9 = vcombine.high %v485_v2, %v489_v3 }
 0x163   :  { %3227 = vmatpush1.bf16.msra.mxu0 %v6087_v8  ;;  %v6143_v8 = vcombine.low %v286_v59, %v290_v61  ;;  %v537_v59 = vld [vmem:[#allocation5 + $0xc28] sm:$0xff]  ;;  %v346_v61 = vld [vmem:[#allocation5 + $0x630] sm:$0xff] }
 0x164   :  { %3228 = vmatprep.subr.bf16.mxu0 %v6096_v13  ;;  %v302_v13 = vld [vmem:[#allocation5 + $0x4d0] sm:$0xff] }
 0x165   :  { %3131 = vmatpush1.bf16.msra.mxu1 %v6285_v15  ;;  %v6341_v15 = vcombine.low %v485_v2, %v489_v3  ;;  %v6160_v19 = vcombine.high %v302_v13, %v306_v14  ;;  %v541_v3 = vld [vmem:[#allocation5 + $0xc48] sm:$0xff] }
 0x166   :  { %3132 = vmatprep.subr.bf16.mxu1 %v6294_v18  ;;  %v6350_v18 = vcombine.high %v493_v11, %v497_v12 }
 0x167   :  { %3229 = vmatpush1.bf16.msra.mxu0 %v6095_v16  ;;  %v6151_v16 = vcombine.low %v294_v4, %v298_v6  ;;  %v545_v4 = vld [vmem:[#allocation5 + $0xc68] sm:$0xff]  ;;  %v354_v6 = vld [vmem:[#allocation5 + $0x670] sm:$0xff] }
 0x168   :  { %3230 = vmatprep.subr.bf16.mxu0 %v6104_v23  ;;  %v310_v23 = vld [vmem:[#allocation5 + $0x510] sm:$0xff] }
 0x169   :  { %3133 = vmatpush1.bf16.msra.mxu1 %v6293_v25  ;;  %v6349_v25 = vcombine.low %v493_v11, %v497_v12  ;;  %v6168_v29 = vcombine.high %v310_v23, %v314_v24  ;;  %v549_v11 = vld [vmem:[#allocation5 + $0xc88] sm:$0xff] }
 0x16a   :  { %3134 = vmatprep.subr.bf16.mxu1 %v6302_v27  ;;  %v6358_v27 = vcombine.high %v501_v20, %v505_v21  ;;  %v553_v12 = vld [vmem:[#allocation5 + $0xca8] sm:$0xff] }
 0x16b   :  { %3231 = vmatpush1.bf16.msra.mxu0 %v6103_v26  ;;  %v6159_v26 = vcombine.low %v302_v13, %v306_v14  ;;  %v358_v13 = vld [vmem:[#allocation5 + $0x690] sm:$0xff] }
 0x16c   :  { %3232 = vmatprep.subr.bf16.mxu0 %v6112_v32  ;;  %v318_v32 = vld [vmem:[#allocation5 + $0x550] sm:$0xff] }
 0x16d   :  { %3135 = vmatpush1.bf16.msra.mxu1 %v6301_v34  ;;  %v6357_v34 = vcombine.low %v501_v20, %v505_v21  ;;  %v6176_v38 = vcombine.high %v318_v32, %v322_v33  ;;  %v362_v14 = vld [vmem:[#allocation5 + $0x6b0] sm:$0xff]  ;;  %v557_v20 = vld [vmem:[#allocation5 + $0xcc8] sm:$0xff] }
 0x16e   :  { %3136 = vmatprep.subr.bf16.mxu1 %v6310_v37  ;;  %v6366_v37 = vcombine.high %v509_v30, %v513_v31  ;;  %v561_v21 = vld [vmem:[#allocation5 + $0xce8] sm:$0xff] }
 0x16f   :  { %3233 = vmatpush1.bf16.msra.mxu0 %v6111_v36  ;;  %v6167_v36 = vcombine.low %v310_v23, %v314_v24  ;;  %v366_v23 = vld [vmem:[#allocation5 + $0x6d0] sm:$0xff] }
 0x170   :  { %3234 = vmatprep.subr.bf16.mxu0 %v6120_v41  ;;  %v326_v41 = vld [vmem:[#allocation5 + $0x590] sm:$0xff] }
 0x171   :  { %3137 = vmatpush1.bf16.msra.mxu1 %v6309_v44  ;;  %v6365_v44 = vcombine.low %v509_v30, %v513_v31  ;;  %v6184_v47 = vcombine.high %v326_v41, %v330_v42  ;;  %v370_v24 = vld [vmem:[#allocation5 + $0x6f0] sm:$0xff]  ;;  %v565_v30 = vld [vmem:[#allocation5 + $0xd08] sm:$0xff] }
 0x172   :  { %3138 = vmatprep.subr.bf16.mxu1 %v6318_v46  ;;  %v6374_v46 = vcombine.high %v517_v39, %v521_v40  ;;  %v569_v31 = vld [vmem:[#allocation5 + $0xd28] sm:$0xff] }
 0x173   :  { %3235 = vmatpush1.bf16.msra.mxu0 %v6119_v45  ;;  %v6175_v45 = vcombine.low %v318_v32, %v322_v33  ;;  %v374_v32 = vld [vmem:[#allocation5 + $0x710] sm:$0xff] }
 0x174   :  { %3236 = vmatprep.subr.bf16.mxu0 %v6128_v50  ;;  %v334_v50 = vld [vmem:[#allocation5 + $0x5d0] sm:$0xff] }
 0x175   :  { %3139 = vmatpush1.bf16.msra.mxu1 %v6317_v53  ;;  %v6373_v53 = vcombine.low %v517_v39, %v521_v40  ;;  %v6192_v56 = vcombine.high %v334_v50, %v338_v52  ;;  %v378_v33 = vld [vmem:[#allocation5 + $0x730] sm:$0xff]  ;;  %v573_v39 = vld [vmem:[#allocation5 + $0xd48] sm:$0xff] }
 0x176   :  { %3140 = vmatprep.subr.bf16.mxu1 %v6326_v55  ;;  %v6382_v55 = vcombine.high %v525_v48, %v529_v49  ;;  %v577_v40 = vld [vmem:[#allocation5 + $0xd68] sm:$0xff] }
 0x177   :  { %3237 = vmatpush1.bf16.msra.mxu0 %v6127_v54  ;;  %v6183_v54 = vcombine.low %v326_v41, %v330_v42  ;;  %v382_v41 = vld [vmem:[#allocation5 + $0x750] sm:$0xff] }
 0x178   :  { %3247 = vmatprep.subr.bf16.mxu0 %v6136_v60  ;;  %v342_v60 = vld [vmem:[#allocation5 + $0x610] sm:$0xff] }
 0x179   :  { %3141 = vmatpush1.bf16.msra.mxu1 %v6325_v63  ;;  %v6381_v63 = vcombine.low %v525_v48, %v529_v49  ;;  %v6200_v2 = vcombine.high %v342_v60, %v346_v61  ;;  %v386_v42 = vld [vmem:[#allocation5 + $0x770] sm:$0xff]  ;;  %v581_v48 = vld [vmem:[#allocation5 + $0xd88] sm:$0xff] }
 0x17a   :  { %3239 = vmatmul.mubr.bf16.vlgmr.msra.gmra.mrb[4].mxu0 %v7717_v17  ;;  %3142 = vmatprep.subr.bf16.mxu1 %v6334_v1  ;;  %v6390_v1 = vcombine.high %v533_v57, %v537_v59  ;;  %v585_v49 = vld [vmem:[#allocation5 + $0xda8] sm:$0xff] }
 0x17b   :  { %3248 = vmatpush1.bf16.msra.mxu0 %v6135_v0  ;;  %3279 = vmatprep.mubr.bf16.mxu0 %v7713_v62  ;;  %v6191_v0 = vcombine.low %v334_v50, %v338_v52  ;;  %v390_v50 = vld [vmem:[#allocation5 + $0x790] sm:$0xff] }
 0x17c   :  { %3249 = vmatprep.subr.bf16.mxu0 %v6144_v5  ;;  %v350_v5 = vld [vmem:[#allocation5 + $0x650] sm:$0xff] }
 0x17d   :  { %3143 = vmatpush1.bf16.msra.mxu1 %v6333_v7  ;;  %v6389_v7 = vcombine.low %v533_v57, %v537_v59  ;;  %v394_v52 = vld [vmem:[#allocation5 + $0x7b0] sm:$0xff]  ;;  %v589_v59 = vld [vmem:[#allocation5 + $0xdc8] sm:$0xff] }
 0x17e   :  { %3144 = vmatprep.subr.bf16.mxu1 %v6342_v9  ;;  %v6398_v9 = vcombine.high %v541_v3, %v545_v4  ;;  %v6248_v57 = vcombine.high %v390_v50, %v394_v52 }
 0x17f   :  { %3250 = vmatpush1.bf16.msra.mxu0 %v6143_v8  ;;  %v6199_v8 = vcombine.low %v342_v60, %v346_v61  ;;  %v593_v60 = vld [vmem:[#allocation5 + $0xde8] sm:$0xff] }
 0x180   :  { %3251 = vmatprep.subr.bf16.mxu0 %v6152_v10  ;;  %v6208_v10 = vcombine.high %v350_v5, %v354_v6 }
 0x181   :  { %3145 = vmatpush1.bf16.msra.mxu1 %v6341_v15  ;;  %v6397_v15 = vcombine.low %v541_v3, %v545_v4  ;;  %v6247_v4 = vcombine.low %v390_v50, %v394_v52  ;;  %v191_v52 = vld [vmem:[#allocation5 + $0x158] sm:$0xff] }
 0x182   :  { %3146 = vmatprep.subr.bf16.mxu1 %v6350_v18  ;;  %v6406_v18 = vcombine.high %v549_v11, %v553_v12 }
 0x183   :  { %3252 = vmatpush1.bf16.msra.mxu0 %v6151_v16  ;;  %v6207_v16 = vcombine.low %v350_v5, %v354_v6  ;;  %v6446_v5 = vcombine.high %v589_v59, %v593_v60 }
 0x184   :  { %3253 = vmatprep.subr.bf16.mxu0 %v6160_v19  ;;  %v6216_v19 = vcombine.high %v358_v13, %v362_v14 }
 0x185   :  { %3147 = vmatpush1.bf16.msra.mxu1 %v6349_v25  ;;  %v6405_v25 = vcombine.low %v549_v11, %v553_v12  ;;  %v6445_v11 = vcombine.low %v589_v59, %v593_v60 }
 0x186   :  { %3148 = vmatprep.subr.bf16.mxu1 %v6358_v27  ;;  %v6414_v27 = vcombine.high %v557_v20, %v561_v21 }
 0x187   :  { %3254 = vmatpush1.bf16.msra.mxu0 %v6159_v26  ;;  %v6215_v26 = vcombine.low %v358_v13, %v362_v14 }
 0x188   :  { %3255 = vmatprep.subr.bf16.mxu0 %v6168_v29  ;;  %v6224_v29 = vcombine.high %v366_v23, %v370_v24 }
 0x189   :  { %3149 = vmatpush1.bf16.msra.mxu1 %v6357_v34  ;;  %v6413_v34 = vcombine.low %v557_v20, %v561_v21 }
 0x18a   :  { %3150 = vmatprep.subr.bf16.mxu1 %v6366_v37  ;;  %v6422_v37 = vcombine.high %v565_v30, %v569_v31 }
 0x18b   :  { %3256 = vmatpush1.bf16.msra.mxu0 %v6167_v36  ;;  %v6223_v36 = vcombine.low %v366_v23, %v370_v24 }
 0x18c   :  { %3257 = vmatprep.subr.bf16.mxu0 %v6176_v38  ;;  %v6232_v38 = vcombine.high %v374_v32, %v378_v33 }
 0x18d   :  { %3151 = vmatpush1.bf16.msra.mxu1 %v6365_v44  ;;  %v6421_v44 = vcombine.low %v565_v30, %v569_v31 }
 0x18e   :  { %3152 = vmatprep.subr.bf16.mxu1 %v6374_v46  ;;  %v6430_v46 = vcombine.high %v573_v39, %v577_v40 }
 0x18f   :  { %3258 = vmatpush1.bf16.msra.mxu0 %v6175_v45  ;;  %v6231_v45 = vcombine.low %v374_v32, %v378_v33 }
 0x190   :  { %3259 = vmatprep.subr.bf16.mxu0 %v6184_v47  ;;  %v6240_v47 = vcombine.high %v382_v41, %v386_v42 }
 0x191   :  { %3153 = vmatpush1.bf16.msra.mxu1 %v6373_v53  ;;  %v6429_v53 = vcombine.low %v573_v39, %v577_v40 }
 0x192   :  { %3154 = vmatprep.subr.bf16.mxu1 %v6382_v55  ;;  %v6438_v55 = vcombine.high %v581_v48, %v585_v49 }
 0x193   :  { %3260 = vmatpush1.bf16.msra.mxu0 %v6183_v54  ;;  %v6239_v54 = vcombine.low %v382_v41, %v386_v42 }
 0x194   :  { %3261 = vmatprep.subr.bf16.mxu0 %v6192_v56 }
 0x195   :  { %3155 = vmatpush1.bf16.msra.mxu1 %v6381_v63  ;;  %v398_v63 = vld [vmem:[#allocation5 + $0x7d0] sm:$0xff] }
 0x196   :  { %3165 = vmatprep.subr.bf16.mxu1 %v6390_v1 }
 0x197   :  { %3262 = vmatpush1.bf16.msra.mxu0 %v6191_v0  ;;  %v402_v0 = vld [vmem:[#allocation5 + $0x7f0] sm:$0xff] }
 0x198   :  { %3263 = vmatprep.subr.bf16.mxu0 %v6200_v2  ;;  %3157 = vmatmul.mubr.bf16.vlgmr.msra.gmra.mrb[4].mxu1 %v7727_v35  ;;  %v6437_v2 = vcombine.low %v581_v48, %v585_v49  ;;  %v6256_v6 = vcombine.high %v398_v63, %v402_v0  ;;  %v6255_v12 = vcombine.low %v398_v63, %v402_v0  ;;  %v199_v0 = vld [vmem:[#allocation5 + $0x198] sm:$0xff] }
 0x199   :  { %3166 = vmatpush1.bf16.msra.mxu1 %v6389_v7  ;;  %3197 = vmatprep.mubr.bf16.mxu1 %v7561_v51  ;;  %v151_v7 = vld [vmem:[#allocation5 + $0x18] sm:$0xff] }
 0x19a   :  { %3167 = vmatprep.subr.bf16.mxu1 %v6398_v9  ;;  %v406_v9 = vld [vmem:[#allocation5 + $0x810] sm:$0xff] }
 0x19b   :  { %3264 = vmatpush1.bf16.msra.mxu0 %v6199_v8  ;;  %v155_v8 = vld [vmem:[#allocation5 + $0x38] sm:$0xff] }
 0x19c   :  { %3265 = vmatprep.subr.bf16.mxu0 %v6208_v10  ;;  %v410_v10 = vld [vmem:[#allocation5 + $0x830] sm:$0xff]  ;;  %v6010_v13 = vcombine.high %v151_v7, %v155_v8  ;;  %v6009_v20 = vcombine.low %v151_v7, %v155_v8  ;;  %v207_v8 = vld [vmem:[#allocation5 + $0x1d8] sm:$0xff] }
 0x19d   :  { %3168 = vmatpush1.bf16.msra.mxu1 %v6397_v15  ;;  %v6264_v14 = vcombine.high %v406_v9, %v410_v10  ;;  %v159_v15 = vld [vmem:[#allocation5 + $0x58] sm:$0xff]  ;;  %v6263_v21 = vcombine.low %v406_v9, %v410_v10  ;;  %v462_v10 = vld [vmem:[#allocation5 + $0x9d0] sm:$0xff] }
 0x19e   :  { %3169 = vmatprep.subr.bf16.mxu1 %v6406_v18  ;;  %v414_v18 = vld [vmem:[#allocation5 + $0x850] sm:$0xff]  ;;  %v211_v9 = vld [vmem:[#allocation5 + $0x1f8] sm:$0xff] }
 0x19f   :  { %3266 = vmatpush1.bf16.msra.mxu0 %v6207_v16  ;;  %v163_v16 = vld [vmem:[#allocation5 + $0x78] sm:$0xff] }
 0x1a0   :  { %3267 = vmatprep.subr.bf16.mxu0 %v6216_v19  ;;  %v418_v19 = vld [vmem:[#allocation5 + $0x870] sm:$0xff]  ;;  %v6018_v23 = vcombine.high %v159_v15, %v163_v16  ;;  %v6017_v30 = vcombine.low %v159_v15, %v163_v16  ;;  %v215_v16 = vld [vmem:[#allocation5 + $0x218] sm:$0xff] }
 0x1a1   :  { %3170 = vmatpush1.bf16.msra.mxu1 %v6405_v25  ;;  %v6272_v24 = vcombine.high %v414_v18, %v418_v19  ;;  %v167_v25 = vld [vmem:[#allocation5 + $0x98] sm:$0xff]  ;;  %v6271_v31 = vcombine.low %v414_v18, %v418_v19  ;;  %v470_v19 = vld [vmem:[#allocation5 + $0xa10] sm:$0xff] }
 0x1a2   :  { %3171 = vmatprep.subr.bf16.mxu1 %v6414_v27  ;;  %v422_v27 = vld [vmem:[#allocation5 + $0x890] sm:$0xff]  ;;  %v219_v18 = vld [vmem:[#allocation5 + $0x238] sm:$0xff] }
 0x1a3   :  { %3268 = vmatpush1.bf16.msra.mxu0 %v6215_v26  ;;  %v171_v26 = vld [vmem:[#allocation5 + $0xb8] sm:$0xff] }
 0x1a4   :  { %3269 = vmatprep.subr.bf16.mxu0 %v6224_v29  ;;  %v426_v29 = vld [vmem:[#allocation5 + $0x8b0] sm:$0xff]  ;;  %v6026_v32 = vcombine.high %v167_v25, %v171_v26  ;;  %v6025_v39 = vcombine.low %v167_v25, %v171_v26  ;;  %v223_v26 = vld [vmem:[#allocation5 + $0x258] sm:$0xff] }
 0x1a5   :  { %3172 = vmatpush1.bf16.msra.mxu1 %v6413_v34  ;;  %v6280_v33 = vcombine.high %v422_v27, %v426_v29  ;;  %v175_v34 = vld [vmem:[#allocation5 + $0xd8] sm:$0xff]  ;;  %v6279_v40 = vcombine.low %v422_v27, %v426_v29  ;;  %v478_v29 = vld [vmem:[#allocation5 + $0xa50] sm:$0xff] }
 0x1a6   :  { %3173 = vmatprep.subr.bf16.mxu1 %v6422_v37  ;;  %v430_v37 = vld [vmem:[#allocation5 + $0x8d0] sm:$0xff]  ;;  %v227_v27 = vld [vmem:[#allocation5 + $0x278] sm:$0xff] }
 0x1a7   :  { %3270 = vmatpush1.bf16.msra.mxu0 %v6223_v36  ;;  %v179_v36 = vld [vmem:[#allocation5 + $0xf8] sm:$0xff] }
 0x1a8   :  { %3271 = vmatprep.subr.bf16.mxu0 %v6232_v38  ;;  %v434_v38 = vld [vmem:[#allocation5 + $0x8f0] sm:$0xff]  ;;  %v6034_v41 = vcombine.high %v175_v34, %v179_v36  ;;  %v6033_v48 = vcombine.low %v175_v34, %v179_v36  ;;  %v231_v36 = vld [vmem:[#allocation5 + $0x298] sm:$0xff] }
 0x1a9   :  { %3174 = vmatpush1.bf16.msra.mxu1 %v6421_v44  ;;  %v6288_v42 = vcombine.high %v430_v37, %v434_v38  ;;  %v183_v44 = vld [vmem:[#allocation5 + $0x118] sm:$0xff]  ;;  %v6287_v49 = vcombine.low %v430_v37, %v434_v38  ;;  %v486_v38 = vld [vmem:[#allocation5 + $0xa90] sm:$0xff] }
 0x1aa   :  { %3175 = vmatprep.subr.bf16.mxu1 %v6430_v46  ;;  %v438_v46 = vld [vmem:[#allocation5 + $0x910] sm:$0xff]  ;;  %v235_v37 = vld [vmem:[#allocation5 + $0x2b8] sm:$0xff] }
 0x1ab   :  { %3272 = vmatpush1.bf16.msra.mxu0 %v6231_v45  ;;  %v7743_v56 = vpop.f32.mrb[0].mxu1  ;;  %v187_v45 = vld [vmem:[#allocation5 + $0x138] sm:$0xff] }
 0x1ac   :  { %3273 = vmatprep.subr.bf16.mxu0 %v6240_v47  ;;  %v7745_v61 = vpop.f32.mrb[1].mxu1  ;;  %v442_v47 = vld [vmem:[#allocation5 + $0x930] sm:$0xff]  ;;  %v6042_v50 = vcombine.high %v183_v44, %v187_v45 }
 0x1ad   :  { %v2916_v1 = vpop.f32.mrb[2].mxu1  ;;  %3176 = vmatpush1.bf16.msra.mxu1 %v6429_v53  ;;  %v195_v53 = vld [vmem:[#allocation5 + $0x178] sm:$0xff]  ;;  %v6295_v59 = vcombine.low %v438_v46, %v442_v47 }
 0x1ae   :  { %v2917_v3 = vpop.f32.mrb[3].mxu1  ;;  %3177 = vmatprep.subr.bf16.mxu1 %v6438_v55  ;;  %v450_v55 = vld [vmem:[#allocation5 + $0x970] sm:$0xff]  ;;  %v6050_v60 = vcombine.high %v191_v52, %v195_v53  ;;  %v203_v1 = vld [vmem:[#allocation5 + $0x1b8] sm:$0xff] }
 0x1af   :  { %3274 = vmatpush1.bf16.msra.mxu0 %v6239_v54  ;;  %v446_v54 = vld [vmem:[#allocation5 + $0x950] sm:$0xff] }
 0x1b0   :  { %3275 = vmatprep.subr.bf16.mxu0 %v6248_v57  ;;  %v6041_v57 = vcombine.low %v183_v44, %v187_v45  ;;  %v6304_v63 = vcombine.high %v446_v54, %v450_v55  ;;  %v458_v3 = vld [vmem:[#allocation5 + $0x9b0] sm:$0xff]  ;;  %v239_v45 = vld [vmem:[#allocation5 + $0x2d8] sm:$0xff] }
 0x1b1   :  { %3178 = vmatpush1.bf16.msra.mxu1 %v6437_v2  ;;  %v454_v2 = vld [vmem:[#allocation5 + $0x990] sm:$0xff] }
 0x1b2   :  { %3179 = vmatprep.subr.bf16.mxu1 %v6446_v5  ;;  %v6303_v5 = vcombine.low %v446_v54, %v450_v55  ;;  %v6312_v7 = vcombine.high %v454_v2, %v458_v3  ;;  %v251_v54 = vld [vmem:[#allocation5 + $0x338] sm:$0xff]  ;;  %v502_v55 = vld [vmem:[#allocation5 + $0xb10] sm:$0xff] }
 0x1b3   :  { %3276 = vmatpush1.bf16.msra.mxu0 %v6247_v4  ;;  %v6049_v4 = vcombine.low %v191_v52, %v195_v53  ;;  %v247_v53 = vld [vmem:[#allocation5 + $0x318] sm:$0xff] }
 0x1b4   :  { %3277 = vmatprep.subr.bf16.mxu0 %v6256_v6  ;;  %v6058_v6 = vcombine.high %v199_v0, %v203_v1 }
 0x1b5   :  { %3180 = vmatpush1.bf16.msra.mxu1 %v6445_v11  ;;  %v466_v11 = vld [vmem:[#allocation5 + $0x9f0] sm:$0xff] }
 0x1b6   :  { %3370 = vmatprep.subr.bf16.mxu1 %v6010_v13  ;;  %v6311_v13 = vcombine.low %v454_v2, %v458_v3  ;;  %v6320_v15 = vcombine.high %v462_v10, %v466_v11  ;;  %v259_v2 = vld [vmem:[#allocation5 + $0x378] sm:$0xff]  ;;  %v510_v3 = vld [vmem:[#allocation5 + $0xb50] sm:$0xff] }
 0x1b7   :  { %3278 = vmatpush1.bf16.msra.mxu0 %v6255_v12  ;;  %v6057_v12 = vcombine.low %v199_v0, %v203_v1  ;;  %v255_v1 = vld [vmem:[#allocation5 + $0x358] sm:$0xff] }
 0x1b8   :  { %3288 = vmatprep.subr.bf16.mxu0 %v6264_v14  ;;  %3198 = vmatmul.mubr.bf16.vlgmr.msra.gmra.mrb[4].mxu1 %v7733_v43  ;;  %v6066_v14 = vcombine.high %v207_v8, %v211_v9 }
 0x1b9   :  { %3371 = vmatpush1.bf16.msra.mxu1 %v6009_v20  ;;  %3402 = vmatprep.mubr.bf16.mxu1 %v7711_v58  ;;  %v6296_v58 = vcombine.high %v438_v46, %v442_v47  ;;  %v474_v20 = vld [vmem:[#allocation5 + $0xa30] sm:$0xff]  ;;  %v243_v46 = vld [vmem:[#allocation5 + $0x2f8] sm:$0xff] }
 0x1ba   :  { %3280 = vmatmul.mubr.bf16.vlgmr.msra.gmra.mrb[4].mxu0 %v7719_v22  ;;  %3372 = vmatprep.subr.bf16.mxu1 %v6018_v23  ;;  %v6319_v23 = vcombine.low %v462_v10, %v466_v11  ;;  %v6328_v25 = vcombine.high %v470_v19, %v474_v20  ;;  %v494_v47 = vld [vmem:[#allocation5 + $0xad0] sm:$0xff]  ;;  %v267_v10 = vld [vmem:[#allocation5 + $0x3b8] sm:$0xff] }
 0x1bb   :  { %3289 = vmatpush1.bf16.msra.mxu0 %v6263_v21  ;;  %3320 = vmatprep.mubr.bf16.mxu0 %v7721_v28  ;;  %v6065_v21 = vcombine.low %v207_v8, %v211_v9  ;;  %v263_v9 = vld [vmem:[#allocation5 + $0x398] sm:$0xff]  ;;  %v518_v11 = vld [vmem:[#allocation5 + $0xb90] sm:$0xff] }
 0x1bc   :  { %3290 = vmatprep.subr.bf16.mxu0 %v6272_v24  ;;  %v6074_v24 = vcombine.high %v215_v16, %v219_v18 }
 0x1bd   :  { %3373 = vmatpush1.bf16.msra.mxu1 %v6017_v30  ;;  %v482_v30 = vld [vmem:[#allocation5 + $0xa70] sm:$0xff] }
 0x1be   :  { %3374 = vmatprep.subr.bf16.mxu1 %v6026_v32  ;;  %v6327_v32 = vcombine.low %v470_v19, %v474_v20  ;;  %v6336_v34 = vcombine.high %v478_v29, %v482_v30  ;;  %v275_v19 = vld [vmem:[#allocation5 + $0x3f8] sm:$0xff]  ;;  %v526_v20 = vld [vmem:[#allocation5 + $0xbd0] sm:$0xff] }
 0x1bf   :  { %3291 = vmatpush1.bf16.msra.mxu0 %v6271_v31  ;;  %v6073_v31 = vcombine.low %v215_v16, %v219_v18  ;;  %v271_v18 = vld [vmem:[#allocation5 + $0x3d8] sm:$0xff] }
 0x1c0   :  { %3292 = vmatprep.subr.bf16.mxu0 %v6280_v33  ;;  %v6082_v33 = vcombine.high %v223_v26, %v227_v27 }
 0x1c1   :  { %3375 = vmatpush1.bf16.msra.mxu1 %v6025_v39  ;;  %v490_v39 = vld [vmem:[#allocation5 + $0xab0] sm:$0xff] }
 0x1c2   :  { %3376 = vmatprep.subr.bf16.mxu1 %v6034_v41  ;;  %v6335_v41 = vcombine.low %v478_v29, %v482_v30  ;;  %v6344_v44 = vcombine.high %v486_v38, %v490_v39  ;;  %v283_v29 = vld [vmem:[#allocation5 + $0x438] sm:$0xff]  ;;  %v534_v30 = vld [vmem:[#allocation5 + $0xc10] sm:$0xff] }
 0x1c3   :  { %3293 = vmatpush1.bf16.msra.mxu0 %v6279_v40  ;;  %v6081_v40 = vcombine.low %v223_v26, %v227_v27  ;;  %v279_v27 = vld [vmem:[#allocation5 + $0x418] sm:$0xff] }
 0x1c4   :  { %3294 = vmatprep.subr.bf16.mxu0 %v6288_v42  ;;  %v6090_v42 = vcombine.high %v231_v36, %v235_v37 }
 0x1c5   :  { %3377 = vmatpush1.bf16.msra.mxu1 %v6033_v48  ;;  %v498_v48 = vld [vmem:[#allocation5 + $0xaf0] sm:$0xff] }
 0x1c6   :  { %3378 = vmatprep.subr.bf16.mxu1 %v6042_v50  ;;  %v6343_v50 = vcombine.low %v486_v38, %v490_v39  ;;  %v6352_v52 = vcombine.high %v494_v47, %v498_v48  ;;  %v291_v38 = vld [vmem:[#allocation5 + $0x478] sm:$0xff]  ;;  %v542_v39 = vld [vmem:[#allocation5 + $0xc50] sm:$0xff] }
 0x1c7   :  { %3295 = vmatpush1.bf16.msra.mxu0 %v6287_v49  ;;  %v6089_v49 = vcombine.low %v231_v36, %v235_v37  ;;  %v287_v37 = vld [vmem:[#allocation5 + $0x458] sm:$0xff] }
 0x1c8   :  { %3296 = vmatprep.subr.bf16.mxu0 %v6296_v58  ;;  %v6098_v58 = vcombine.high %v239_v45, %v243_v46 }
 0x1c9   :  { %3379 = vmatpush1.bf16.msra.mxu1 %v6041_v57  ;;  %v506_v57 = vld [vmem:[#allocation5 + $0xb30] sm:$0xff] }
 0x1ca   :  { %3380 = vmatprep.subr.bf16.mxu1 %v6050_v60  ;;  %v6351_v60 = vcombine.low %v494_v47, %v498_v48  ;;  %v6360_v0 = vcombine.high %v502_v55, %v506_v57  ;;  %v299_v47 = vld [vmem:[#allocation5 + $0x4b8] sm:$0xff]  ;;  %v550_v48 = vld [vmem:[#allocation5 + $0xc90] sm:$0xff] }
 0x1cb   :  { %3297 = vmatpush1.bf16.msra.mxu0 %v6295_v59  ;;  %v6097_v59 = vcombine.low %v239_v45, %v243_v46  ;;  %v295_v46 = vld [vmem:[#allocation5 + $0x498] sm:$0xff] }
 0x1cc   :  { %3298 = vmatprep.subr.bf16.mxu0 %v6304_v63  ;;  %v6106_v63 = vcombine.high %v247_v53, %v251_v54 }
 0x1cd   :  { %3381 = vmatpush1.bf16.msra.mxu1 %v6049_v4  ;;  %v514_v4 = vld [vmem:[#allocation5 + $0xb70] sm:$0xff] }
 0x1ce   :  { %3382 = vmatprep.subr.bf16.mxu1 %v6058_v6  ;;  %v6359_v6 = vcombine.low %v502_v55, %v506_v57  ;;  %v6368_v8 = vcombine.high %v510_v3, %v514_v4  ;;  %v303_v55 = vld [vmem:[#allocation5 + $0x4d8] sm:$0xff] }
 0x1cf   :  { %3299 = vmatpush1.bf16.msra.mxu0 %v6303_v5  ;;  %v6105_v5 = vcombine.low %v247_v53, %v251_v54  ;;  %v598_v53 = vlaneseq  ;;  %v307_v57 = vld [vmem:[#allocation5 + $0x4f8] sm:$0xff] }
 0x1d0   :  { %3300 = vmatprep.subr.bf16.mxu0 %v6312_v7  ;;  %v6114_v7 = vcombine.high %v255_v1, %v259_v2 }
 0x1d1   :  { %3383 = vmatpush1.bf16.msra.mxu1 %v6057_v12  ;;  %v522_v12 = vld [vmem:[#allocation5 + $0xbb0] sm:$0xff] }
 0x1d2   :  { %3384 = vmatprep.subr.bf16.mxu1 %v6066_v14  ;;  %v6367_v14 = vcombine.low %v510_v3, %v514_v4  ;;  %v6376_v16 = vcombine.high %v518_v11, %v522_v12  ;;  %v311_v3 = vld [vmem:[#allocation5 + $0x518] sm:$0xff] }
 0x1d3   :  { %3301 = vmatpush1.bf16.msra.mxu0 %v6311_v13  ;;  %v6113_v13 = vcombine.low %v255_v1, %v259_v2  ;;  %v7755_v1 = vshrl.u32 %v598_v53, 7  ;;  %v315_v4 = vld [vmem:[#allocation5 + $0x538] sm:$0xff] }
 0x1d4   :  { %3302 = vmatprep.subr.bf16.mxu0 %v6320_v15  ;;  %v6122_v15 = vcombine.high %v263_v9, %v267_v10 }
 0x1d5   :  { %3385 = vmatpush1.bf16.msra.mxu1 %v6065_v21  ;;  %v530_v21 = vld [vmem:[#allocation5 + $0xbf0] sm:$0xff] }
 0x1d6   :  { %3386 = vmatprep.subr.bf16.mxu1 %v6074_v24  ;;  %v6375_v24 = vcombine.low %v518_v11, %v522_v12  ;;  %v6384_v26 = vcombine.high %v526_v20, %v530_v21  ;;  %v319_v11 = vld [vmem:[#allocation5 + $0x558] sm:$0xff] }
 0x1d7   :  { %3303 = vmatpush1.bf16.msra.mxu0 %v6319_v23  ;;  %v6121_v23 = vcombine.low %v263_v9, %v267_v10  ;;  %v7758_v9 = vsub.s32 0, %v7755_v1  ;;  %v323_v12 = vld [vmem:[#allocation5 + $0x578] sm:$0xff] }
 0x1d8   :  { %3304 = vmatprep.subr.bf16.mxu0 %v6328_v25  ;;  %v6130_v25 = vcombine.high %v271_v18, %v275_v19 }
 0x1d9   :  { %3387 = vmatpush1.bf16.msra.mxu1 %v6073_v31  ;;  %v538_v31 = vld [vmem:[#allocation5 + $0xc30] sm:$0xff] }
 0x1da   :  { %3388 = vmatprep.subr.bf16.mxu1 %v6082_v33  ;;  %v6383_v33 = vcombine.low %v526_v20, %v530_v21  ;;  %v6392_v36 = vcombine.high %v534_v30, %v538_v31  ;;  %v6178_v20 = vcombine.high %v319_v11, %v323_v12 }
 0x1db   :  { %3305 = vmatpush1.bf16.msra.mxu0 %v6327_v32  ;;  %v6129_v32 = vcombine.low %v271_v18, %v275_v19  ;;  %v6169_v18 = vcombine.low %v311_v3, %v315_v4 }
 0x1dc   :  { %3306 = vmatprep.subr.bf16.mxu0 %v6336_v34  ;;  %v6138_v34 = vcombine.high %v279_v27, %v283_v29 }
 0x1dd   :  { %3389 = vmatpush1.bf16.msra.mxu1 %v6081_v40  ;;  %v546_v40 = vld [vmem:[#allocation5 + $0xc70] sm:$0xff] }
 0x1de   :  { %3390 = vmatprep.subr.bf16.mxu1 %v6090_v42  ;;  %v6391_v42 = vcombine.low %v534_v30, %v538_v31  ;;  %v6400_v45 = vcombine.high %v542_v39, %v546_v40  ;;  %v6177_v30 = vcombine.low %v319_v11, %v323_v12  ;;  %v367_v11 = vld [vmem:[#allocation5 + $0x6d8] sm:$0xff] }
 0x1df   :  { %3307 = vmatpush1.bf16.msra.mxu0 %v6335_v41  ;;  %v6137_v41 = vcombine.low %v279_v27, %v283_v29  ;;  %v582_v27 = vld [vmem:[#allocation5 + $0xd90] sm:$0xff]  ;;  %v371_v12 = vld [vmem:[#allocation5 + $0x6f8] sm:$0xff] }
 0x1e0   :  { %3308 = vmatprep.subr.bf16.mxu0 %v6344_v44  ;;  %v6146_v44 = vcombine.high %v287_v37, %v291_v38  ;;  %v586_v29 = vld [vmem:[#allocation5 + $0xdb0] sm:$0xff] }
 0x1e1   :  { %3391 = vmatpush1.bf16.msra.mxu1 %v6089_v49  ;;  %v554_v49 = vld [vmem:[#allocation5 + $0xcb0] sm:$0xff] }
 0x1e2   :  { %3392 = vmatprep.subr.bf16.mxu1 %v6098_v58  ;;  %v6399_v58 = vcombine.low %v542_v39, %v546_v40  ;;  %v6408_v54 = vcombine.high %v550_v48, %v554_v49  ;;  %v590_v40 = vld [vmem:[#allocation5 + $0xdd0] sm:$0xff] }
 0x1e3   :  { %3309 = vmatpush1.bf16.msra.mxu0 %v6343_v50  ;;  %v6145_v50 = vcombine.low %v287_v37, %v291_v38  ;;  %v339_v37 = vld [vmem:[#allocation5 + $0x5f8] sm:$0xff] }
 0x1e4   :  { %3310 = vmatprep.subr.bf16.mxu0 %v6352_v52  ;;  %v6154_v52 = vcombine.high %v295_v46, %v299_v47 }
 0x1e5   :  { %3393 = vmatpush1.bf16.msra.mxu1 %v6097_v59  ;;  %v558_v59 = vld [vmem:[#allocation5 + $0xcd0] sm:$0xff] }
 0x1e6   :  { %3394 = vmatprep.subr.bf16.mxu1 %v6106_v63  ;;  %v6407_v63 = vcombine.low %v550_v48, %v554_v49  ;;  %v6439_v48 = vcombine.low %v582_v27, %v586_v29 }
 0x1e7   :  { %3311 = vmatpush1.bf16.msra.mxu0 %v6351_v60  ;;  %v562_v60 = vld [vmem:[#allocation5 + $0xcf0] sm:$0xff] }
 0x1e8   :  { %3312 = vmatprep.subr.bf16.mxu0 %v6360_v0  ;;  %v6162_v0 = vcombine.high %v303_v55, %v307_v57  ;;  %v6416_v2 = vcombine.high %v558_v59, %v562_v60 }
 0x1e9   :  { %3395 = vmatpush1.bf16.msra.mxu1 %v6105_v5  ;;  %v566_v5 = vld [vmem:[#allocation5 + $0xd10] sm:$0xff] }
 0x1ea   :  { %3396 = vmatprep.subr.bf16.mxu1 %v6114_v7  ;;  %v6161_v7 = vcombine.low %v303_v55, %v307_v57  ;;  %v6878_v57 = vld [vmem:[#allocation8 + $0x4] ss:$16 sps:$4 sm:$0xff]  }
 0x1eb   :  { %3313 = vmatpush1.bf16.msra.mxu0 %v6359_v6  ;;  %v570_v6 = vld [vmem:[#allocation5 + $0xd30] sm:$0xff] }
 0x1ec   :  { %3314 = vmatprep.subr.bf16.mxu0 %v6368_v8  ;;  %v6415_v8 = vcombine.low %v558_v59, %v562_v60  ;;  %v6424_v10 = vcombine.high %v566_v5, %v570_v6  ;;  %v6423_v19 = vcombine.low %v566_v5, %v570_v6  ;;  %v351_v59 = vld [vmem:[#allocation5 + $0x658] sm:$0xff] }
 0x1ed   :  { %3397 = vmatpush1.bf16.msra.mxu1 %v6113_v13  ;;  %v7760_v13 = vld [vmem:[#allocation7] sm:$0xff]  ;;  %v355_v60 = vld [vmem:[#allocation5 + $0x678] sm:$0xff] }
 0x1ee   :  { %3398 = vmatprep.subr.bf16.mxu1 %v6122_v15  ;;  %v574_v15 = vld [vmem:[#allocation5 + $0xd50] sm:$0xff]  ;;  %v601_v21 = vrot.slane %v7760_v13, %v7758_v9  ;;  %v363_v5 = vld [vmem:[#allocation5 + $0x6b8] sm:$0xff] }
 0x1ef   :  { %3315 = vmatpush1.bf16.msra.mxu0 %v6367_v14  ;;  %v7763_v14 = vsub.s32 1, %v7755_v1 }
 0x1f0   :  { %3316 = vmatprep.subr.bf16.mxu0 %v6376_v16  ;;  %v578_v16 = vld [vmem:[#allocation5 + $0xd70] sm:$0xff] }
 0x1f1   :  { %3399 = vmatpush1.bf16.msra.mxu1 %v6121_v23  ;;  %v6432_v23 = vcombine.high %v574_v15, %v578_v16  ;;  %v6431_v31 = vcombine.low %v574_v15, %v578_v16  ;;  %v6882_v16 = vld [vmem:[#allocation8 + $0x40] ss:$16 sps:$4 sm:$0xff]  }
 0x1f2   :  { %3400 = vmatprep.subr.bf16.mxu1 %v6130_v25  ;;  %v331_v25 = vld [vmem:[#allocation5 + $0x5b8] sm:$0xff] }
 0x1f3   :  { %3317 = vmatpush1.bf16.msra.mxu0 %v6375_v24  ;;  %v327_v24 = vld [vmem:[#allocation5 + $0x598] sm:$0xff] }
 0x1f4   :  { %3318 = vmatprep.subr.bf16.mxu0 %v6384_v26  ;;  %v605_v26 = vrot.slane %v7760_v13, %v7763_v14 }
 0x1f5   :  { %3401 = vmatpush1.bf16.msra.mxu1 %v6129_v32  ;;  %v6186_v32 = vcombine.high %v327_v24, %v331_v25 }
 0x1f6   :  { %3411 = vmatprep.subr.bf16.mxu1 %v6138_v34  ;;  %v6440_v34 = vcombine.high %v582_v27, %v586_v29  ;;  %v2915_v38 = vadd.f32 %v7745_v61, %v605_v26  ;;  %v6890_v26 = vld [vmem:[#allocation8 + $0x84] ss:$16 sps:$4 sm:$0xff]  }
 0x1f7   :  { %3319 = vmatpush1.bf16.msra.mxu0 %v6383_v33  ;;  %v2913_v33 = vadd.f32 %v7743_v56, %v601_v21  ;;  %v379_v21 = vld [vmem:[#allocation5 + $0x738] sm:$0xff] }
 0x1f8   :  { %3329 = vmatprep.subr.bf16.mxu0 %v6392_v36  ;;  %3403 = vmatmul.mubr.bf16.vlgmr.msra.gmra.mrb[8].mxu1 %v7717_v17  ;;  %v6153_v17 = vcombine.low %v295_v46, %v299_v47  ;;  %v335_v36 = vld [vmem:[#allocation5 + $0x5d8] sm:$0xff] }
 0x1f9   :  { %3412 = vmatpush1.bf16.msra.mxu1 %v6137_v41  ;;  %3443 = vmatprep.mubr.bf16.mxu1 %v7713_v62  ;;  %v6170_v62 = vcombine.high %v311_v3, %v315_v4  ;;  %v594_v41 = vld [vmem:[#allocation5 + $0xdf0] sm:$0xff]  ;;  %v6194_v56 = vcombine.high %v335_v36, %v339_v37  ;;  %v6193_v53 = vcombine.low %v335_v36, %v339_v37  ;;  %v6881_v3 = vld [vmem:[#allocation8 + $0x24] ss:$16 sps:$4 sm:$0xff]  }
 0x1fa   :  { %3321 = vmatmul.mubr.bf16.vlgmr.msra.gmra.mrb[4].mxu0 %v7727_v35  ;;  %3413 = vmatprep.subr.bf16.mxu1 %v6146_v44  ;;  %v359_v4 = vld [vmem:[#allocation5 + $0x698] sm:$0xff] }
 0x1fb   :  { %3330 = vmatpush1.bf16.msra.mxu0 %v6391_v42  ;;  %3361 = vmatprep.mubr.bf16.mxu0 %v7561_v51  ;;  %v6217_v15 = vcombine.low %v359_v4, %v363_v5  ;;  %v383_v27 = vld [vmem:[#allocation5 + $0x758] sm:$0xff] }
 0x1fc   :  { %3331 = vmatprep.subr.bf16.mxu0 %v6400_v45  ;;  %v6185_v45 = vcombine.low %v327_v24, %v331_v25  ;;  %v6885_v24 = vld [vmem:[#allocation8 + $0x60] ss:$16 sps:$4 sm:$0xff]  }
 0x1fd   :  { %3414 = vmatpush1.bf16.msra.mxu1 %v6145_v50  ;;  %v6448_v50 = vcombine.high %v590_v40, %v594_v41  ;;  %v387_v29 = vld [vmem:[#allocation5 + $0x778] sm:$0xff] }
 0x1fe   :  { %3415 = vmatprep.subr.bf16.mxu1 %v6154_v52  ;;  %v347_v52 = vld [vmem:[#allocation5 + $0x638] sm:$0xff]  ;;  %v6241_v37 = vcombine.low %v383_v27, %v387_v29 }
 0x1ff   :  { %3332 = vmatpush1.bf16.msra.mxu0 %v6399_v58  ;;  %v343_v58 = vld [vmem:[#allocation5 + $0x618] sm:$0xff] }
 0x200   :  { %3333 = vmatprep.subr.bf16.mxu0 %v6408_v54  ;;  %v6447_v54 = vcombine.low %v590_v40, %v594_v41  ;;  %v6202_v55 = vcombine.high %v343_v58, %v347_v52  ;;  %v395_v36 = vld [vmem:[#allocation5 + $0x7b8] sm:$0xff] }
 0x201   :  { %3416 = vmatpush1.bf16.msra.mxu1 %v6153_v17  ;;  %v6201_v17 = vcombine.low %v343_v58, %v347_v52  ;;  %v6896_v40 = vld [vmem:[#allocation8 + $0xc4] ss:$16 sps:$4 sm:$0xff]   ;;  %v6897_v58 = vld [vmem:[#allocation8 + $0xe0] ss:$16 sps:$4 sm:$0xff]  }
 0x202   :  { %3417 = vmatprep.subr.bf16.mxu1 %v6162_v0  ;;  %v6876_v0 = vld [vmem:[#allocation8] ss:$16 sps:$4 sm:$0xff]  }
 0x203   :  { %3334 = vmatpush1.bf16.msra.mxu0 %v6407_v63  ;;  %v399_v41 = vld [vmem:[#allocation5 + $0x7d8] sm:$0xff] }
 0x204   :  { %3335 = vmatprep.subr.bf16.mxu0 %v6416_v2  ;;  %v6210_v2 = vcombine.high %v351_v59, %v355_v60 }
 0x205   :  { %3418 = vmatpush1.bf16.msra.mxu1 %v6161_v7  ;;  %v6209_v7 = vcombine.low %v351_v59, %v355_v60  ;;  %v6905_v60 = vld [vmem:[#allocation8 + $0x124] ss:$16 sps:$4 sm:$0xff]  }
 0x206   :  { %3419 = vmatprep.subr.bf16.mxu1 %v6170_v62  ;;  %v6218_v62 = vcombine.high %v359_v4, %v363_v5  ;;  %v6908_v4 = vld [vmem:[#allocation8 + $0x144] ss:$16 sps:$4 sm:$0xff]  }
 0x207   :  { %3336 = vmatpush1.bf16.msra.mxu0 %v6415_v8  ;;  %v6879_v8 = vld [vmem:[#allocation8 + $0x20] ss:$16 sps:$4 sm:$0xff]  }
 0x208   :  { %3337 = vmatprep.subr.bf16.mxu0 %v6424_v10  ;;  %v6884_v10 = vld [vmem:[#allocation8 + $0x44] ss:$16 sps:$4 sm:$0xff]  }
 0x209   :  { %3420 = vmatpush1.bf16.msra.mxu1 %v6169_v18  ;;  %v6226_v18 = vcombine.high %v367_v11, %v371_v12  ;;  %v431_v5 = vld [vmem:[#allocation5 + $0x8d8] sm:$0xff] }
 0x20a   :  { %3421 = vmatprep.subr.bf16.mxu1 %v6178_v20  ;;  %v375_v20 = vld [vmem:[#allocation5 + $0x718] sm:$0xff] }
 0x20b   :  { %3338 = vmatpush1.bf16.msra.mxu0 %v6423_v19  ;;  %v6887_v19 = vld [vmem:[#allocation8 + $0x64] ss:$16 sps:$4 sm:$0xff]   ;;  %v6234_v25 = vcombine.high %v375_v20, %v379_v21 }
 0x20c   :  { %3339 = vmatprep.subr.bf16.mxu0 %v6432_v23  ;;  %v6225_v23 = vcombine.low %v367_v11, %v371_v12  ;;  %v439_v11 = vld [vmem:[#allocation5 + $0x918] sm:$0xff] }
 0x20d   :  { %v3035_v39 = vpop.f32.mrb[0].mxu0  ;;  %3422 = vmatpush1.bf16.msra.mxu1 %v6177_v30  ;;  %v6233_v30 = vcombine.low %v375_v20, %v379_v21  ;;  %v443_v12 = vld [vmem:[#allocation5 + $0x938] sm:$0xff] }
 0x20e   :  { %v7771_v42 = vadd.f32 %v3035_v39, %v2913_v33  ;;  %v3037_v44 = vpop.f32.mrb[1].mxu0  ;;  %3423 = vmatprep.subr.bf16.mxu1 %v6186_v32  ;;  %v6242_v32 = vcombine.high %v383_v27, %v387_v29  ;;  %v6893_v33 = vld [vmem:[#allocation8 + $0xa4] ss:$16 sps:$4 sm:$0xff]   ;;  %v6297_v21 = vcombine.low %v439_v11, %v443_v12 }
 0x20f   :  { %v6776_v46 = vadd.f32 %v3037_v44, %v2915_v38  ;;  %v3039_v47 = vpop.f32.mrb[2].mxu0  ;;  %3340 = vmatpush1.bf16.msra.mxu0 %v6431_v31  ;;  %v6888_v31 = vld [vmem:[#allocation8 + $0x80] ss:$16 sps:$4 sm:$0xff]  }
 0x210   :  { %v3040_v49 = vpop.f32.mrb[3].mxu0  ;;  %3341 = vmatprep.subr.bf16.mxu0 %v6440_v34  ;;  %v391_v34 = vld [vmem:[#allocation5 + $0x798] sm:$0xff]  ;;  %vm3534_vm1 = vcmp.gt.f32.partialorder %v7771_v42, 0.0 }
 0x211   :  { %v3543_v61 = vmul.f32 0.2, %v6776_v46  ;;  %3424 = vmatpush1.bf16.msra.mxu1 %v6185_v45  ;;  %vm3535_vm0 = vcmp.gt.f32.partialorder %v6776_v46, 0.0  ;;  %v6891_v38 = vld [vmem:[#allocation8 + $0xa0] ss:$16 sps:$4 sm:$0xff]   ;;  %v6250_v39 = vcombine.high %v391_v34, %v395_v36  ;;  %v6249_v45 = vcombine.low %v391_v34, %v395_v36 }
 0x212   :  { %3425 = vmatprep.subr.bf16.mxu1 %v6194_v56  ;;  %v403_v44 = vld [vmem:[#allocation5 + $0x7f8] sm:$0xff] }
 0x213   :  { %3342 = vmatpush1.bf16.msra.mxu0 %v6439_v48  ;;  %v3551_v63 = vsel %vm3535_vm0, %v6776_v46, %v3543_v61  ;;  %v6894_v46 = vld [vmem:[#allocation8 + $0xc0] ss:$16 sps:$4 sm:$0xff]   ;;  %v6258_v47 = vcombine.high %v399_v41, %v403_v44  ;;  %v6899_v48 = vld [vmem:[#allocation8 + $0xe4] ss:$16 sps:$4 sm:$0xff]  }
 0x214   :  { %3343 = vmatprep.subr.bf16.mxu0 %v6448_v50  ;;  %v7773_v6 = vpack.c.bf16 %v3551_v63, %v3551_v63  ;;  %v407_v56 = vld [vmem:[#allocation5 + $0x818] sm:$0xff]  ;;  %v6257_v50 = vcombine.low %v399_v41, %v403_v44  ;;  %v3542_v44 = vmul.f32 0.2, %v7771_v42 }
 0x215   :  { %3426 = vmatpush1.bf16.msra.mxu1 %v6193_v53  ;;  %v411_v49 = vld [vmem:[#allocation5 + $0x838] sm:$0xff] }
 0x216   :  { %3427 = vmatprep.subr.bf16.mxu1 %v6202_v55  ;;  %v6266_v52 = vcombine.high %v407_v56, %v411_v49  ;;  %v6902_v61 = vld [vmem:[#allocation8 + $0x104] ss:$16 sps:$4 sm:$0xff]   ;;  %v6265_v55 = vcombine.low %v407_v56, %v411_v49 }
 0x217   :  { %3344 = vmatpush1.bf16.msra.mxu0 %v6447_v54  ;;  %v415_v53 = vld [vmem:[#allocation5 + $0x858] sm:$0xff] }
 0x218   :  { %5124 = vmatprep.subr.bf16.mxu0 %v6878_v57  ;;  %v419_v54 = vld [vmem:[#allocation5 + $0x878] sm:$0xff] }
 0x219   :  { %3428 = vmatpush1.bf16.msra.mxu1 %v6201_v17  ;;  %v6900_v57 = vld [vmem:[#allocation8 + $0x100] ss:$16 sps:$4 sm:$0xff]   ;;  %v6274_v59 = vcombine.high %v415_v53, %v419_v54 }
 0x21a   :  { %3362 = vmatmul.mubr.bf16.vlgmr.msra.gmra.mrb[4].mxu0 %v7733_v43  ;;  %3429 = vmatprep.subr.bf16.mxu1 %v6210_v2  ;;  %v423_v17 = vld [vmem:[#allocation5 + $0x898] sm:$0xff] }
 0x21b   :  { %5125 = vmatpush1.bf16.msra.mxu0 %v6876_v0  ;;  %5156 = vmatprep.mubr.bf16.mxu0 %v7773_v6  ;;  %v427_v63 = vld [vmem:[#allocation5 + $0x8b8] sm:$0xff]  ;;  %v6273_v0 = vcombine.low %v415_v53, %v419_v54 }
 0x21c   :  { %5126 = vmatprep.subr.bf16.mxu0 %v6881_v3  ;;  %v6903_v2 = vld [vmem:[#allocation8 + $0x120] ss:$16 sps:$4 sm:$0xff]   ;;  %v6282_v3 = vcombine.high %v423_v17, %v427_v63  ;;  %v6929_v54 = vld [vmem:[#allocation8 + $0x224] ss:$16 sps:$4 sm:$0xff]  }
 0x21d   :  { %3430 = vmatpush1.bf16.msra.mxu1 %v6209_v7  ;;  %v435_v7 = vld [vmem:[#allocation5 + $0x8f8] sm:$0xff] }
 0x21e   :  { %3431 = vmatprep.subr.bf16.mxu1 %v6218_v62  ;;  %v6906_v62 = vld [vmem:[#allocation8 + $0x140] ss:$16 sps:$4 sm:$0xff]  }
 0x21f   :  { %5127 = vmatpush1.bf16.msra.mxu0 %v6879_v8  ;;  %v6281_v8 = vcombine.low %v423_v17, %v427_v63  ;;  %v451_v20 = vld [vmem:[#allocation5 + $0x978] sm:$0xff] }
 0x220   :  { %5128 = vmatprep.subr.bf16.mxu0 %v6884_v10  ;;  %v6290_v10 = vcombine.high %v431_v5, %v435_v7  ;;  %v459_v27 = vld [vmem:[#allocation5 + $0x9b8] sm:$0xff] }
 0x221   :  { %3432 = vmatpush1.bf16.msra.mxu1 %v6217_v15  ;;  %v6909_v15 = vld [vmem:[#allocation8 + $0x160] ss:$16 sps:$4 sm:$0xff]   ;;  %v6932_v17 = vld [vmem:[#allocation8 + $0x244] ss:$16 sps:$4 sm:$0xff]  }
 0x222   :  { %3433 = vmatprep.subr.bf16.mxu1 %v6226_v18  ;;  %v6914_v18 = vld [vmem:[#allocation8 + $0x184] ss:$16 sps:$4 sm:$0xff]  }
 0x223   :  { %5129 = vmatpush1.bf16.msra.mxu0 %v6882_v16  ;;  %v6298_v16 = vcombine.high %v439_v11, %v443_v12  ;;  %v467_v34 = vld [vmem:[#allocation5 + $0x9f8] sm:$0xff] }
 0x224   :  { %5130 = vmatprep.subr.bf16.mxu0 %v6887_v19  ;;  %v447_v19 = vld [vmem:[#allocation5 + $0x958] sm:$0xff] }
 0x225   :  { %3434 = vmatpush1.bf16.msra.mxu1 %v6225_v23  ;;  %v6912_v23 = vld [vmem:[#allocation8 + $0x180] ss:$16 sps:$4 sm:$0xff]   ;;  %v6305_v29 = vcombine.low %v447_v19, %v451_v20  ;;  %v6938_v11 = vld [vmem:[#allocation8 + $0x284] ss:$16 sps:$4 sm:$0xff]  }
 0x226   :  { %3435 = vmatprep.subr.bf16.mxu1 %v6234_v25  ;;  %v6917_v25 = vld [vmem:[#allocation8 + $0x1a4] ss:$16 sps:$4 sm:$0xff]  }
 0x227   :  { %5131 = vmatpush1.bf16.msra.mxu0 %v6885_v24  ;;  %v6306_v24 = vcombine.high %v447_v19, %v451_v20  ;;  %v475_v41 = vld [vmem:[#allocation5 + $0xa38] sm:$0xff] }
 0x228   :  { %5132 = vmatprep.subr.bf16.mxu0 %v6890_v26  ;;  %v455_v26 = vld [vmem:[#allocation5 + $0x998] sm:$0xff] }
 0x229   :  { %3436 = vmatpush1.bf16.msra.mxu1 %v6233_v30  ;;  %v6915_v30 = vld [vmem:[#allocation8 + $0x1a0] ss:$16 sps:$4 sm:$0xff]   ;;  %v6313_v36 = vcombine.low %v455_v26, %v459_v27  ;;  %v6941_v19 = vld [vmem:[#allocation8 + $0x2a4] ss:$16 sps:$4 sm:$0xff]  }
 0x22a   :  { %3437 = vmatprep.subr.bf16.mxu1 %v6242_v32  ;;  %v6920_v32 = vld [vmem:[#allocation8 + $0x1c4] ss:$16 sps:$4 sm:$0xff]  }
 0x22b   :  { %5133 = vmatpush1.bf16.msra.mxu0 %v6888_v31  ;;  %v6314_v31 = vcombine.high %v455_v26, %v459_v27  ;;  %v479_v56 = vld [vmem:[#allocation5 + $0xa58] sm:$0xff] }
 0x22c   :  { %5134 = vmatprep.subr.bf16.mxu0 %v6893_v33  ;;  %v463_v33 = vld [vmem:[#allocation5 + $0x9d8] sm:$0xff] }
 0x22d   :  { %3438 = vmatpush1.bf16.msra.mxu1 %v6241_v37  ;;  %v6918_v37 = vld [vmem:[#allocation8 + $0x1c0] ss:$16 sps:$4 sm:$0xff]   ;;  %v6944_v26 = vld [vmem:[#allocation8 + $0x2c4] ss:$16 sps:$4 sm:$0xff]  }
 0x22e   :  { %3439 = vmatprep.subr.bf16.mxu1 %v6250_v39  ;;  %v6923_v39 = vld [vmem:[#allocation8 + $0x1e4] ss:$16 sps:$4 sm:$0xff]  }
 0x22f   :  { %5135 = vmatpush1.bf16.msra.mxu0 %v6891_v38  ;;  %v6322_v38 = vcombine.high %v463_v33, %v467_v34  ;;  %v483_v49 = vld [vmem:[#allocation5 + $0xa78] sm:$0xff] }
 0x230   :  { %5136 = vmatprep.subr.bf16.mxu0 %v6896_v40  ;;  %v471_v40 = vld [vmem:[#allocation5 + $0xa18] sm:$0xff] }
 0x231   :  { %3440 = vmatpush1.bf16.msra.mxu1 %v6249_v45  ;;  %v6321_v45 = vcombine.low %v463_v33, %v467_v34  ;;  %v495_v63 = vld [vmem:[#allocation5 + $0xad8] sm:$0xff] }
 0x232   :  { %3441 = vmatprep.subr.bf16.mxu1 %v6258_v47  ;;  %v6330_v47 = vcombine.high %v471_v40, %v475_v41  ;;  %v511_v12 = vld [vmem:[#allocation5 + $0xb58] sm:$0xff] }
 0x233   :  { %5137 = vmatpush1.bf16.msra.mxu0 %v6894_v46  ;;  %v6921_v46 = vld [vmem:[#allocation8 + $0x1e0] ss:$16 sps:$4 sm:$0xff]   ;;  %v6947_v33 = vld [vmem:[#allocation8 + $0x2e4] ss:$16 sps:$4 sm:$0xff]  }
 0x234   :  { %5138 = vmatprep.subr.bf16.mxu0 %v6899_v48  ;;  %v6926_v48 = vld [vmem:[#allocation8 + $0x204] ss:$16 sps:$4 sm:$0xff]  }
 0x235   :  { %3442 = vmatpush1.bf16.msra.mxu1 %v6257_v50  ;;  %v3550_v50 = vsel %vm3534_vm1, %v7771_v42, %v3542_v44  ;;  %v519_v20 = vld [vmem:[#allocation5 + $0xb98] sm:$0xff] }
 0x236   :  { %3452 = vmatprep.subr.bf16.mxu1 %v6266_v52  ;;  %v6924_v52 = vld [vmem:[#allocation8 + $0x200] ss:$16 sps:$4 sm:$0xff]   ;;  %v7782_v53 = vpack.c.bf16 %v3550_v50, %v3550_v50 }
 0x237   :  { %5139 = vmatpush1.bf16.msra.mxu0 %v6897_v58  ;;  %v6329_v58 = vcombine.low %v471_v40, %v475_v41  ;;  %v527_v27 = vld [vmem:[#allocation5 + $0xbd8] sm:$0xff] }
 0x238   :  { %5140 = vmatprep.subr.bf16.mxu0 %v6902_v61  ;;  %3444 = vmatmul.mubr.bf16.vlgmr.msra.gmra.mrb[8].mxu1 %v7719_v22  ;;  %v6911_v22 = vld [vmem:[#allocation8 + $0x164] ss:$16 sps:$4 sm:$0xff]   ;;  %v6338_v61 = vcombine.high %v479_v56, %v483_v49 }
 0x239   :  { %3453 = vmatpush1.bf16.msra.mxu1 %v6265_v55  ;;  %3484 = vmatprep.mubr.bf16.mxu1 %v7721_v28  ;;  %v6289_v28 = vcombine.low %v431_v5, %v435_v7  ;;  %v487_v55 = vld [vmem:[#allocation5 + $0xa98] sm:$0xff] }
 0x23a   :  { %3454 = vmatprep.subr.bf16.mxu1 %v6274_v59  ;;  %v6337_v59 = vcombine.low %v479_v56, %v483_v49  ;;  %v6935_v5 = vld [vmem:[#allocation8 + $0x264] ss:$16 sps:$4 sm:$0xff]  }
 0x23b   :  { %5141 = vmatpush1.bf16.msra.mxu0 %v6900_v57  ;;  %v491_v57 = vld [vmem:[#allocation5 + $0xab8] sm:$0xff] }
 0x23c   :  { %5142 = vmatprep.subr.bf16.mxu0 %v6905_v60  ;;  %v6927_v60 = vld [vmem:[#allocation8 + $0x220] ss:$16 sps:$4 sm:$0xff]   ;;  %v6346_v42 = vcombine.high %v487_v55, %v491_v57  ;;  %v6950_v40 = vld [vmem:[#allocation8 + $0x304] ss:$16 sps:$4 sm:$0xff]  }
 0x23d   :  { %3455 = vmatpush1.bf16.msra.mxu1 %v6273_v0  ;;  %v499_v0 = vld [vmem:[#allocation5 + $0xaf8] sm:$0xff] }
 0x23e   :  { %3456 = vmatprep.subr.bf16.mxu1 %v6282_v3  ;;  %v6930_v3 = vld [vmem:[#allocation8 + $0x240] ss:$16 sps:$4 sm:$0xff]  }
 0x23f   :  { %5143 = vmatpush1.bf16.msra.mxu0 %v6903_v2  ;;  %v6345_v2 = vcombine.low %v487_v55, %v491_v57  ;;  %v503_v7 = vld [vmem:[#allocation5 + $0xb18] sm:$0xff] }
 0x240   :  { %5144 = vmatprep.subr.bf16.mxu0 %v6908_v4  ;;  %v6354_v4 = vcombine.high %v495_v63, %v499_v0  ;;  %v535_v34 = vld [vmem:[#allocation5 + $0xc18] sm:$0xff] }
 0x241   :  { %3457 = vmatpush1.bf16.msra.mxu1 %v6281_v8  ;;  %v507_v8 = vld [vmem:[#allocation5 + $0xb38] sm:$0xff] }
 0x242   :  { %3458 = vmatprep.subr.bf16.mxu1 %v6290_v10  ;;  %v6933_v10 = vld [vmem:[#allocation8 + $0x260] ss:$16 sps:$4 sm:$0xff]  }
 0x243   :  { %5145 = vmatpush1.bf16.msra.mxu0 %v6906_v62  ;;  %v6353_v62 = vcombine.low %v495_v63, %v499_v0  ;;  %v543_v41 = vld [vmem:[#allocation5 + $0xc58] sm:$0xff] }
 0x244   :  { %5146 = vmatprep.subr.bf16.mxu0 %v6911_v22  ;;  %v6362_v22 = vcombine.high %v503_v7, %v507_v8  ;;  %v547_v44 = vld [vmem:[#allocation5 + $0xc78] sm:$0xff] }
 0x245   :  { %3459 = vmatpush1.bf16.msra.mxu1 %v6289_v28  ;;  %v515_v28 = vld [vmem:[#allocation5 + $0xb78] sm:$0xff]  ;;  %v6401_v50 = vcombine.low %v543_v41, %v547_v44 }
 0x246   :  { %3460 = vmatprep.subr.bf16.mxu1 %v6298_v16  ;;  %v6936_v16 = vld [vmem:[#allocation8 + $0x280] ss:$16 sps:$4 sm:$0xff]  }
 0x247   :  { %5147 = vmatpush1.bf16.msra.mxu0 %v6909_v15  ;;  %v6361_v15 = vcombine.low %v503_v7, %v507_v8  ;;  %v551_v56 = vld [vmem:[#allocation5 + $0xc98] sm:$0xff]  ;;  %v612_v8 = vsub.s32 3, %v7755_v1 }
 0x248   :  { %5148 = vmatprep.subr.bf16.mxu0 %v6914_v18  ;;  %v6370_v18 = vcombine.high %v511_v12, %v515_v28  ;;  %v555_v49 = vld [vmem:[#allocation5 + $0xcb8] sm:$0xff] }
 0x249   :  { %3461 = vmatpush1.bf16.msra.mxu1 %v6297_v21  ;;  %v523_v21 = vld [vmem:[#allocation5 + $0xbb8] sm:$0xff]  ;;  %v6409_v57 = vcombine.low %v551_v56, %v555_v49 }
 0x24a   :  { %3462 = vmatprep.subr.bf16.mxu1 %v6306_v24  ;;  %v6939_v24 = vld [vmem:[#allocation8 + $0x2a0] ss:$16 sps:$4 sm:$0xff]  }
 0x24b   :  { %5149 = vmatpush1.bf16.msra.mxu0 %v6912_v23  ;;  %v6369_v23 = vcombine.low %v511_v12, %v515_v28  ;;  %v563_v55 = vld [vmem:[#allocation5 + $0xcf8] sm:$0xff] }
 0x24c   :  { %5150 = vmatprep.subr.bf16.mxu0 %v6917_v25  ;;  %v6378_v25 = vcombine.high %v519_v20, %v523_v21  ;;  %v6957_v63 = vld [vmem:[#allocation8 + $0x360] ss:$16 sps:$4 sm:$0xff]  }
 0x24d   :  { %3463 = vmatpush1.bf16.msra.mxu1 %v6305_v29  ;;  %v531_v29 = vld [vmem:[#allocation5 + $0xbf8] sm:$0xff] }
 0x24e   :  { %3464 = vmatprep.subr.bf16.mxu1 %v6314_v31  ;;  %v6942_v31 = vld [vmem:[#allocation8 + $0x2c0] ss:$16 sps:$4 sm:$0xff]  }
 0x24f   :  { %5151 = vmatpush1.bf16.msra.mxu0 %v6915_v30  ;;  %v6377_v30 = vcombine.low %v519_v20, %v523_v21  ;;  %v587_v12 = vld [vmem:[#allocation5 + $0xdb8] sm:$0xff] }
 0x250   :  { %5152 = vmatprep.subr.bf16.mxu0 %v6920_v32  ;;  %v6386_v32 = vcombine.high %v527_v27, %v531_v29  ;;  %v6968_v21 = vld [vmem:[#allocation8 + $0x3c4] ss:$16 sps:$4 sm:$0xff]  }
 0x251   :  { %3465 = vmatpush1.bf16.msra.mxu1 %v6313_v36  ;;  %v539_v36 = vld [vmem:[#allocation5 + $0xc38] sm:$0xff] }
 0x252   :  { %3466 = vmatprep.subr.bf16.mxu1 %v6322_v38  ;;  %v6945_v38 = vld [vmem:[#allocation8 + $0x2e0] ss:$16 sps:$4 sm:$0xff]  }
 0x253   :  { %5153 = vmatpush1.bf16.msra.mxu0 %v6918_v37  ;;  %v6385_v37 = vcombine.low %v527_v27, %v531_v29 }
 0x254   :  { %5154 = vmatprep.subr.bf16.mxu0 %v6923_v39  ;;  %v6394_v39 = vcombine.high %v535_v34, %v539_v36 }
 0x255   :  { %3467 = vmatpush1.bf16.msra.mxu1 %v6321_v45  ;;  %v6393_v45 = vcombine.low %v535_v34, %v539_v36  ;;  %v6971_v34 = vld [vmem:[#allocation8 + $0x3e4] ss:$16 sps:$4 sm:$0xff]  }
 0x256   :  { %3468 = vmatprep.subr.bf16.mxu1 %v6330_v47  ;;  %v6402_v47 = vcombine.high %v543_v41, %v547_v44  ;;  %v6974_v41 = vld [vmem:[#allocation8 + $0xc] ss:$16 sps:$4 sm:$0xff]   ;;  %v6998_v44 = vld [vmem:[#allocation8 + $0x404] ss:$16 sps:$4 sm:$0xff]  }
 0x257   :  { %5155 = vmatpush1.bf16.msra.mxu0 %v6921_v46  ;;  %v6948_v46 = vld [vmem:[#allocation8 + $0x300] ss:$16 sps:$4 sm:$0xff]  }
 0x258   :  { %5165 = vmatprep.subr.bf16.mxu0 %v6926_v48  ;;  %v6953_v48 = vld [vmem:[#allocation8 + $0x324] ss:$16 sps:$4 sm:$0xff]  }
 0x259   :  { %3469 = vmatpush1.bf16.msra.mxu1 %v6329_v58  ;;  %v6951_v58 = vld [vmem:[#allocation8 + $0x320] ss:$16 sps:$4 sm:$0xff]  }
 0x25a   :  { %5157 = vmatmul.mubr.bf16.vlgmr.msra.gmra.mrb[8].mxu0 %v7782_v53  ;;  %3470 = vmatprep.subr.bf16.mxu1 %v6338_v61  ;;  %v6956_v61 = vld [vmem:[#allocation8 + $0x344] ss:$16 sps:$4 sm:$0xff]  }
 0x25b   :  { %5166 = vmatpush1.bf16.msra.mxu0 %v6924_v52  ;;  %v6410_v52 = vcombine.high %v551_v56, %v555_v49  ;;  %v6996_v56 = vld [vmem:[#allocation8 + $0x400] ss:$16 sps:$4 sm:$0xff]   ;;  %v7004_v49 = vld [vmem:[#allocation8 + $0x424] ss:$16 sps:$4 sm:$0xff]  }
 0x25c   :  { %5167 = vmatprep.subr.bf16.mxu0 %v6929_v54  ;;  %v559_v54 = vld [vmem:[#allocation5 + $0xcd8] sm:$0xff] }
 0x25d   :  { %3471 = vmatpush1.bf16.msra.mxu1 %v6337_v59  ;;  %v6954_v59 = vld [vmem:[#allocation8 + $0x340] ss:$16 sps:$4 sm:$0xff]  }
 0x25e   :  { %3472 = vmatprep.subr.bf16.mxu1 %v6346_v42  ;;  %v567_v42 = vld [vmem:[#allocation5 + $0xd18] sm:$0xff] }
 0x25f   :  { %5168 = vmatpush1.bf16.msra.mxu0 %v6927_v60  ;;  %v6418_v60 = vcombine.high %v559_v54, %v563_v55 }
 0x260   :  { %5169 = vmatprep.subr.bf16.mxu0 %v6932_v17  ;;  %v571_v17 = vld [vmem:[#allocation5 + $0xd38] sm:$0xff] }
 0x261   :  { %3473 = vmatpush1.bf16.msra.mxu1 %v6345_v2  ;;  %v6426_v0 = vcombine.high %v567_v42, %v571_v17  ;;  %v6962_v2 = vld [vmem:[#allocation8 + $0x384] ss:$16 sps:$4 sm:$0xff]   ;;  %v6425_v7 = vcombine.low %v567_v42, %v571_v17  ;;  %v6984_v42 = vld [vmem:[#allocation8 + $0x88] ss:$16 sps:$4 sm:$0xff]   ;;  %v6989_v17 = vld [vmem:[#allocation8 + $0xac] ss:$16 sps:$4 sm:$0xff]  }
 0x262   :  { %3474 = vmatprep.subr.bf16.mxu1 %v6354_v4  ;;  %v579_v4 = vld [vmem:[#allocation5 + $0xd78] sm:$0xff] }
 0x263   :  { %5170 = vmatpush1.bf16.msra.mxu0 %v6930_v3  ;;  %v575_v3 = vld [vmem:[#allocation5 + $0xd58] sm:$0xff] }
 0x264   :  { %5171 = vmatprep.subr.bf16.mxu0 %v6935_v5  ;;  %v7788_v5 = vsub.s32 2, %v7755_v1 }
 0x265   :  { %3475 = vmatpush1.bf16.msra.mxu1 %v6353_v62  ;;  %v6960_v62 = vld [vmem:[#allocation8 + $0x380] ss:$16 sps:$4 sm:$0xff]  }
 0x266   :  { %3476 = vmatprep.subr.bf16.mxu1 %v6362_v22  ;;  %v6965_v22 = vld [vmem:[#allocation8 + $0x3a4] ss:$16 sps:$4 sm:$0xff]   ;;  %v609_v28 = vrot.slane %v7760_v13, %v7788_v5 }
 0x267   :  { %5172 = vmatpush1.bf16.msra.mxu0 %v6933_v10  ;;  %v6434_v10 = vcombine.high %v575_v3, %v579_v4 }
 0x268   :  { %5173 = vmatprep.subr.bf16.mxu0 %v6938_v11  ;;  %v583_v11 = vld [vmem:[#allocation5 + $0xd98] sm:$0xff] }
 0x269   :  { %3477 = vmatpush1.bf16.msra.mxu1 %v6361_v15  ;;  %v613_v15 = vrot.slane %v7760_v13, %v612_v8  ;;  %v6966_v13 = vld [vmem:[#allocation8 + $0x3c0] ss:$16 sps:$4 sm:$0xff]  }
 0x26a   :  { %3478 = vmatprep.subr.bf16.mxu1 %v6370_v18  ;;  %v6963_v18 = vld [vmem:[#allocation8 + $0x3a0] ss:$16 sps:$4 sm:$0xff]  }
 0x26b   :  { %5174 = vmatpush1.bf16.msra.mxu0 %v6936_v16  ;;  %v6433_v16 = vcombine.low %v575_v3, %v579_v4  ;;  %v7026_v3 = vld [vmem:[#allocation8 + $0x4a0] ss:$16 sps:$4 sm:$0xff]   ;;  %v7034_v4 = vld [vmem:[#allocation8 + $0x4c4] ss:$16 sps:$4 sm:$0xff]  }
 0x26c   :  { %5175 = vmatprep.subr.bf16.mxu0 %v6941_v19  ;;  %v6442_v19 = vcombine.high %v583_v11, %v587_v12 }
 0x26d   :  { %3479 = vmatpush1.bf16.msra.mxu1 %v6369_v23  ;;  %v591_v23 = vld [vmem:[#allocation5 + $0xdd8] sm:$0xff] }
 0x26e   :  { %3480 = vmatprep.subr.bf16.mxu1 %v6378_v25 }
 0x26f   :  { %5176 = vmatpush1.bf16.msra.mxu0 %v6939_v24  ;;  %v595_v24 = vld [vmem:[#allocation5 + $0xdf8] sm:$0xff] }
 0x270   :  { %5177 = vmatprep.subr.bf16.mxu0 %v6944_v26 }
 0x271   :  { %3481 = vmatpush1.bf16.msra.mxu1 %v6377_v30  ;;  %v6441_v30 = vcombine.low %v583_v11, %v587_v12  ;;  %v6993_v11 = vld [vmem:[#allocation8 + $0xe8] ss:$16 sps:$4 sm:$0xff]   ;;  %v7001_v12 = vld [vmem:[#allocation8 + $0x10c] ss:$16 sps:$4 sm:$0xff]  }
 0x272   :  { %3482 = vmatprep.subr.bf16.mxu1 %v6386_v32  ;;  %v6450_v32 = vcombine.high %v591_v23, %v595_v24 }
 0x273   :  { %5178 = vmatpush1.bf16.msra.mxu0 %v6942_v31 }
 0x274   :  { %5179 = vmatprep.subr.bf16.mxu0 %v6947_v33 }
 0x275   :  { %3483 = vmatpush1.bf16.msra.mxu1 %v6385_v37  ;;  %v6449_v37 = vcombine.low %v591_v23, %v595_v24  ;;  %v7013_v23 = vld [vmem:[#allocation8 + $0x14c] ss:$16 sps:$4 sm:$0xff]   ;;  %v7050_v24 = vld [vmem:[#allocation8 + $0x520] ss:$16 sps:$4 sm:$0xff]  }
 0x276   :  { %3493 = vmatprep.subr.bf16.mxu1 %v6394_v39  ;;  %v6969_v39 = vld [vmem:[#allocation8 + $0x3e0] ss:$16 sps:$4 sm:$0xff]  }
 0x277   :  { %5180 = vmatpush1.bf16.msra.mxu0 %v6945_v38 }
 0x278   :  { %5181 = vmatprep.subr.bf16.mxu0 %v6950_v40  ;;  %3485 = vmatmul.mubr.bf16.vlgmr.msra.gmra.mrb[8].mxu1 %v7727_v35  ;;  %v6959_v35 = vld [vmem:[#allocation8 + $0x364] ss:$16 sps:$4 sm:$0xff]  }
 0x279   :  { %3494 = vmatpush1.bf16.msra.mxu1 %v6393_v45  ;;  %3525 = vmatprep.mubr.bf16.mxu1 %v7561_v51  ;;  %v6417_v51 = vcombine.low %v559_v54, %v563_v55  ;;  %v6978_v54 = vld [vmem:[#allocation8 + $0x48] ss:$16 sps:$4 sm:$0xff]   ;;  %v6983_v55 = vld [vmem:[#allocation8 + $0x6c] ss:$16 sps:$4 sm:$0xff]  }
 0x27a   :  { %3495 = vmatprep.subr.bf16.mxu1 %v6402_v47  ;;  %v6977_v47 = vld [vmem:[#allocation8 + $0x2c] ss:$16 sps:$4 sm:$0xff]  }
 0x27b   :  { %5182 = vmatpush1.bf16.msra.mxu0 %v6948_v46  ;;  %v6972_v46 = vld [vmem:[#allocation8 + $0x8] ss:$16 sps:$4 sm:$0xff]  }
 0x27c   :  { %5183 = vmatprep.subr.bf16.mxu0 %v6953_v48 }
 0x27d   :  { %3496 = vmatpush1.bf16.msra.mxu1 %v6401_v50  ;;  %v6975_v50 = vld [vmem:[#allocation8 + $0x28] ss:$16 sps:$4 sm:$0xff]  }
 0x27e   :  { %3497 = vmatprep.subr.bf16.mxu1 %v6410_v52  ;;  %v7002_v52 = vld [vmem:[#allocation8 + $0x420] ss:$16 sps:$4 sm:$0xff]  }
 0x27f   :  { %5184 = vmatpush1.bf16.msra.mxu0 %v6951_v58  ;;  %v6980_v58 = vld [vmem:[#allocation8 + $0x4c] ss:$16 sps:$4 sm:$0xff]  }
 0x280   :  { %5185 = vmatprep.subr.bf16.mxu0 %v6956_v61  ;;  %v7010_v61 = vld [vmem:[#allocation8 + $0x444] ss:$16 sps:$4 sm:$0xff]  }
 0x281   :  { %3498 = vmatpush1.bf16.msra.mxu1 %v6409_v57  ;;  %v7008_v57 = vld [vmem:[#allocation8 + $0x440] ss:$16 sps:$4 sm:$0xff]  }
 0x282   :  { %3499 = vmatprep.subr.bf16.mxu1 %v6418_v60  ;;  %v6986_v60 = vld [vmem:[#allocation8 + $0x8c] ss:$16 sps:$4 sm:$0xff]  }
 0x283   :  { %5186 = vmatpush1.bf16.msra.mxu0 %v6954_v59  ;;  %v6981_v59 = vld [vmem:[#allocation8 + $0x68] ss:$16 sps:$4 sm:$0xff]  }
 0x284   :  { %5187 = vmatprep.subr.bf16.mxu0 %v6959_v35  ;;  %v7022_v35 = vld [vmem:[#allocation8 + $0x484] ss:$16 sps:$4 sm:$0xff]  }
 0x285   :  { %3500 = vmatpush1.bf16.msra.mxu1 %v6417_v51  ;;  %v7020_v51 = vld [vmem:[#allocation8 + $0x480] ss:$16 sps:$4 sm:$0xff]  }
 0x286   :  { %3501 = vmatprep.subr.bf16.mxu1 %v6426_v0  ;;  %v6987_v0 = vld [vmem:[#allocation8 + $0xa8] ss:$16 sps:$4 sm:$0xff]  }
 0x287   :  { %5188 = vmatpush1.bf16.msra.mxu0 %v6957_v63  ;;  %v7028_v63 = vld [vmem:[#allocation8 + $0x4a4] ss:$16 sps:$4 sm:$0xff]  }
 0x288   :  { %5189 = vmatprep.subr.bf16.mxu0 %v6962_v2  ;;  %v6992_v2 = vld [vmem:[#allocation8 + $0xcc] ss:$16 sps:$4 sm:$0xff]  }
 0x289   :  { %3502 = vmatpush1.bf16.msra.mxu1 %v6425_v7  ;;  %v6990_v7 = vld [vmem:[#allocation8 + $0xc8] ss:$16 sps:$4 sm:$0xff]  }
 0x28a   :  { %3503 = vmatprep.subr.bf16.mxu1 %v6434_v10  ;;  %v7032_v10 = vld [vmem:[#allocation8 + $0x4c0] ss:$16 sps:$4 sm:$0xff]  }
 0x28b   :  { %5190 = vmatpush1.bf16.msra.mxu0 %v6960_v62  ;;  %v3199_v20 = vpop.f32.mrb[4].mxu1  ;;  %v6995_v62 = vld [vmem:[#allocation8 + $0xec] ss:$16 sps:$4 sm:$0xff]  }
 0x28c   :  { %5191 = vmatprep.subr.bf16.mxu0 %v6965_v22  ;;  %v6777_v25 = vadd.f32 %v3199_v20, %v609_v28  ;;  %v3201_v26 = vpop.f32.mrb[5].mxu1  ;;  %v7040_v22 = vld [vmem:[#allocation8 + $0x4e4] ss:$16 sps:$4 sm:$0xff]   ;;  %v7038_v28 = vld [vmem:[#allocation8 + $0x4e0] ss:$16 sps:$4 sm:$0xff]  }
 0x28d   :  { %v6778_v27 = vadd.f32 %v3201_v26, %v613_v15  ;;  %v3203_v29 = vpop.f32.mrb[6].mxu1  ;;  %3504 = vmatpush1.bf16.msra.mxu1 %v6433_v16  ;;  %v7046_v15 = vld [vmem:[#allocation8 + $0x504] ss:$16 sps:$4 sm:$0xff]   ;;  %v6999_v16 = vld [vmem:[#allocation8 + $0x108] ss:$16 sps:$4 sm:$0xff]  }
 0x28e   :  { %v3204_v31 = vpop.f32.mrb[7].mxu1  ;;  %3505 = vmatprep.subr.bf16.mxu1 %v6442_v19  ;;  %v3544_v36 = vmul.f32 0.2, %v6777_v25  ;;  %vm3536_vm3 = vcmp.gt.f32.partialorder %v6777_v25, 0.0  ;;  %v7044_v19 = vld [vmem:[#allocation8 + $0x500] ss:$16 sps:$4 sm:$0xff]  }
 0x28f   :  { %5192 = vmatpush1.bf16.msra.mxu0 %v6963_v18  ;;  %vm3537_vm2 = vcmp.gt.f32.partialorder %v6778_v27, 0.0  ;;  %v3545_v33 = vmul.f32 0.2, %v6778_v27  ;;  %v7007_v18 = vld [vmem:[#allocation8 + $0x12c] ss:$16 sps:$4 sm:$0xff]  }
 0x290   :  { %5193 = vmatprep.subr.bf16.mxu0 %v6968_v21  ;;  %v3552_v45 = vsel %vm3536_vm3, %v6777_v25, %v3544_v36  ;;  %v7052_v20 = vld [vmem:[#allocation8 + $0x524] ss:$16 sps:$4 sm:$0xff]   ;;  %v7005_v21 = vld [vmem:[#allocation8 + $0x128] ss:$16 sps:$4 sm:$0xff]   ;;  %v7056_v29 = vld [vmem:[#allocation8 + $0x540] ss:$16 sps:$4 sm:$0xff]  }
 0x291   :  { %3506 = vmatpush1.bf16.msra.mxu1 %v6441_v30  ;;  %v3553_v38 = vsel %vm3537_vm2, %v6778_v27, %v3545_v33  ;;  %v7799_v48 = vpack.c.bf16 %v3552_v45, %v3552_v45  ;;  %v7058_v25 = vld [vmem:[#allocation8 + $0x544] ss:$16 sps:$4 sm:$0xff]   ;;  %v7011_v26 = vld [vmem:[#allocation8 + $0x148] ss:$16 sps:$4 sm:$0xff]   ;;  %v7019_v27 = vld [vmem:[#allocation8 + $0x16c] ss:$16 sps:$4 sm:$0xff]  }
 0x292   :  { %3507 = vmatprep.subr.bf16.mxu1 %v6450_v32  ;;  %v7796_v40 = vpack.c.bf16 %v3553_v38, %v3553_v38  ;;  %v7064_v30 = vld [vmem:[#allocation8 + $0x564] ss:$16 sps:$4 sm:$0xff]   ;;  %v7017_v31 = vld [vmem:[#allocation8 + $0x168] ss:$16 sps:$4 sm:$0xff]   ;;  %v7062_v32 = vld [vmem:[#allocation8 + $0x560] ss:$16 sps:$4 sm:$0xff]  }
 0x293   :  { %5194 = vmatpush1.bf16.msra.mxu0 %v6966_v13  ;;  %v7025_v13 = vld [vmem:[#allocation8 + $0x18c] ss:$16 sps:$4 sm:$0xff]   ;;  %v7070_v33 = vld [vmem:[#allocation8 + $0x584] ss:$16 sps:$4 sm:$0xff]  }
 0x294   :  { %5195 = vmatprep.subr.bf16.mxu0 %v6971_v34  ;;  %5197 = vmatprep.mubr.bf16.mxu0 %v7796_v40  ;;  %v7023_v34 = vld [vmem:[#allocation8 + $0x188] ss:$16 sps:$4 sm:$0xff]   ;;  %v7031_v36 = vld [vmem:[#allocation8 + $0x1ac] ss:$16 sps:$4 sm:$0xff]   ;;  %v7076_v38 = vld [vmem:[#allocation8 + $0x5a4] ss:$16 sps:$4 sm:$0xff]  }
 0x295   :  { %3508 = vmatpush1.bf16.msra.mxu1 %v6449_v37  ;;  %v7068_v37 = vld [vmem:[#allocation8 + $0x580] ss:$16 sps:$4 sm:$0xff]   ;;  %v7082_v45 = vld [vmem:[#allocation8 + $0x5c4] ss:$16 sps:$4 sm:$0xff]  }
 0x296   :  { %5288 = vmatprep.subr.bf16.mxu1 %v6974_v41  ;;  %v7037_v41 = vld [vmem:[#allocation8 + $0x1cc] ss:$16 sps:$4 sm:$0xff]  }
 0x297   :  { %5196 = vmatpush1.bf16.msra.mxu0 %v6969_v39  ;;  %v7029_v39 = vld [vmem:[#allocation8 + $0x1a8] ss:$16 sps:$4 sm:$0xff]  }
 0x298   :  { %5206 = vmatprep.subr.bf16.mxu0 %v6998_v44  ;;  %3526 = vmatmul.mubr.bf16.vlgmr.msra.gmra.mrb[8].mxu1 %v7733_v43  ;;  %v7016_v43 = vld [vmem:[#allocation8 + $0x464] ss:$16 sps:$4 sm:$0xff]   ;;  %v7074_v44 = vld [vmem:[#allocation8 + $0x5a0] ss:$16 sps:$4 sm:$0xff]  }
 0x299   :  { %5289 = vmatpush1.bf16.msra.mxu1 %v6972_v46  ;;  %5320 = vmatprep.mubr.bf16.mxu1 %v7773_v6  ;;  %v7014_v6 = vld [vmem:[#allocation8 + $0x460] ss:$16 sps:$4 sm:$0xff]   ;;  %v7035_v46 = vld [vmem:[#allocation8 + $0x1c8] ss:$16 sps:$4 sm:$0xff]  }
 0x29a   :  { %5198 = vmatmul.mubr.bf16.vlgmr.msra.gmra.mrb[8].mxu0 %v7799_v48  ;;  %5290 = vmatprep.subr.bf16.mxu1 %v6977_v47  ;;  %v7043_v47 = vld [vmem:[#allocation8 + $0x1ec] ss:$16 sps:$4 sm:$0xff]  }
 0x29b   :  { %5207 = vmatpush1.bf16.msra.mxu0 %v6996_v56  ;;  %v7080_v56 = vld [vmem:[#allocation8 + $0x5c0] ss:$16 sps:$4 sm:$0xff]  }
 0x29c   :  { %5208 = vmatprep.subr.bf16.mxu0 %v7004_v49  ;;  %v7088_v49 = vld [vmem:[#allocation8 + $0x5e4] ss:$16 sps:$4 sm:$0xff]  }
 0x29d   :  { %5291 = vmatpush1.bf16.msra.mxu1 %v6975_v50  ;;  %v7041_v50 = vld [vmem:[#allocation8 + $0x1e8] ss:$16 sps:$4 sm:$0xff]  }
 0x29e   :  { %5292 = vmatprep.subr.bf16.mxu1 %v6980_v58  ;;  %v7049_v58 = vld [vmem:[#allocation8 + $0x20c] ss:$16 sps:$4 sm:$0xff]  }
 0x29f   :  { %5209 = vmatpush1.bf16.msra.mxu0 %v7002_v52  ;;  %v7086_v52 = vld [vmem:[#allocation8 + $0x5e0] ss:$16 sps:$4 sm:$0xff]  }
 0x2a0   :  { %5210 = vmatprep.subr.bf16.mxu0 %v7010_v61  ;;  %v7142_v61 = vld [vmem:[#allocation8 + $0x604] ss:$16 sps:$4 sm:$0xff]  }
 0x2a1   :  { %5293 = vmatpush1.bf16.msra.mxu1 %v6978_v54  ;;  %v7047_v54 = vld [vmem:[#allocation8 + $0x208] ss:$16 sps:$4 sm:$0xff]  }
 0x2a2   :  { %5294 = vmatprep.subr.bf16.mxu1 %v6983_v55  ;;  %v7055_v55 = vld [vmem:[#allocation8 + $0x22c] ss:$16 sps:$4 sm:$0xff]  }
 0x2a3   :  { %5211 = vmatpush1.bf16.msra.mxu0 %v7008_v57  ;;  %v7053_v57 = vld [vmem:[#allocation8 + $0x228] ss:$16 sps:$4 sm:$0xff]  }
 0x2a4   :  { %5212 = vmatprep.subr.bf16.mxu0 %v7016_v43  ;;  %v7061_v43 = vld [vmem:[#allocation8 + $0x24c] ss:$16 sps:$4 sm:$0xff]  }
 0x2a5   :  { %5295 = vmatpush1.bf16.msra.mxu1 %v6981_v59  ;;  %v7059_v59 = vld [vmem:[#allocation8 + $0x248] ss:$16 sps:$4 sm:$0xff]  }
 0x2a6   :  { %5296 = vmatprep.subr.bf16.mxu1 %v6986_v60  ;;  %v7067_v60 = vld [vmem:[#allocation8 + $0x26c] ss:$16 sps:$4 sm:$0xff]  }
 0x2a7   :  { %5213 = vmatpush1.bf16.msra.mxu0 %v7014_v6  ;;  %v7065_v6 = vld [vmem:[#allocation8 + $0x268] ss:$16 sps:$4 sm:$0xff]  }
 0x2a8   :  { %5214 = vmatprep.subr.bf16.mxu0 %v7022_v35  ;;  %v7073_v35 = vld [vmem:[#allocation8 + $0x28c] ss:$16 sps:$4 sm:$0xff]  }
 0x2a9   :  { %5297 = vmatpush1.bf16.msra.mxu1 %v6984_v42  ;;  %v7071_v42 = vld [vmem:[#allocation8 + $0x288] ss:$16 sps:$4 sm:$0xff]  }
 0x2aa   :  { %5298 = vmatprep.subr.bf16.mxu1 %v6989_v17  ;;  %v616_v17 = vsub.s32 4, %v7755_v1 }
 0x2ab   :  { %5215 = vmatpush1.bf16.msra.mxu0 %v7020_v51  ;;  %v7079_v51 = vld [vmem:[#allocation8 + $0x2ac] ss:$16 sps:$4 sm:$0xff]  }
 0x2ac   :  { %5216 = vmatprep.subr.bf16.mxu0 %v7028_v63 }
 0x2ad   :  { %5299 = vmatpush1.bf16.msra.mxu1 %v6987_v0  ;;  %v7077_v0 = vld [vmem:[#allocation8 + $0x2a8] ss:$16 sps:$4 sm:$0xff]  }
 0x2ae   :  { %5300 = vmatprep.subr.bf16.mxu1 %v6992_v2 }
 0x2af   :  { %5217 = vmatpush1.bf16.msra.mxu0 %v7026_v3  ;;  %v7085_v3 = vld [vmem:[#allocation8 + $0x2cc] ss:$16 sps:$4 sm:$0xff]  }
 0x2b0   :  { %5218 = vmatprep.subr.bf16.mxu0 %v7034_v4 }
 0x2b1   :  { %5301 = vmatpush1.bf16.msra.mxu1 %v6990_v7 }
 0x2b2   :  { %5302 = vmatprep.subr.bf16.mxu1 %v6995_v62 }
 0x2b3   :  { %5219 = vmatpush1.bf16.msra.mxu0 %v7032_v10  ;;  %v7083_v10 = vld [vmem:[#allocation8 + $0x2c8] ss:$16 sps:$4 sm:$0xff]  }
 0x2b4   :  { %5220 = vmatprep.subr.bf16.mxu0 %v7040_v22 }
 0x2b5   :  { %5303 = vmatpush1.bf16.msra.mxu1 %v6993_v11 }
 0x2b6   :  { %5304 = vmatprep.subr.bf16.mxu1 %v7001_v12  ;;  %v7091_v12 = vld [vmem:[#allocation8 + $0x2ec] ss:$16 sps:$4 sm:$0xff]  }
 0x2b7   :  { %5221 = vmatpush1.bf16.msra.mxu0 %v7038_v28 }
 0x2b8   :  { %5222 = vmatprep.subr.bf16.mxu0 %v7046_v15 }
 0x2b9   :  { %5305 = vmatpush1.bf16.msra.mxu1 %v6999_v16 }
 0x2ba   :  { %5306 = vmatprep.subr.bf16.mxu1 %v7007_v18 }
 0x2bb   :  { %5223 = vmatpush1.bf16.msra.mxu0 %v7044_v19  ;;  %v7089_v19 = vld [vmem:[#allocation8 + $0x2e8] ss:$16 sps:$4 sm:$0xff]  }
 0x2bc   :  { %5224 = vmatprep.subr.bf16.mxu0 %v7052_v20 }
 0x2bd   :  { %5307 = vmatpush1.bf16.msra.mxu1 %v7005_v21  ;;  %v7094_v21 = vld [vmem:[#allocation8 + $0x30c] ss:$16 sps:$4 sm:$0xff]  }
 0x2be   :  { %5308 = vmatprep.subr.bf16.mxu1 %v7013_v23 }
 0x2bf   :  { %5225 = vmatpush1.bf16.msra.mxu0 %v7050_v24  ;;  %v7140_v24 = vld [vmem:[#allocation8 + $0x600] ss:$16 sps:$4 sm:$0xff]  }
 0x2c0   :  { %5226 = vmatprep.subr.bf16.mxu0 %v7058_v25 }
 0x2c1   :  { %5309 = vmatpush1.bf16.msra.mxu1 %v7011_v26  ;;  %v7148_v26 = vld [vmem:[#allocation8 + $0x624] ss:$16 sps:$4 sm:$0xff]  }
 0x2c2   :  { %5310 = vmatprep.subr.bf16.mxu1 %v7019_v27  ;;  %v7092_v27 = vld [vmem:[#allocation8 + $0x308] ss:$16 sps:$4 sm:$0xff]  }
 0x2c3   :  { %5227 = vmatpush1.bf16.msra.mxu0 %v7056_v29  ;;  %v7097_v29 = vld [vmem:[#allocation8 + $0x32c] ss:$16 sps:$4 sm:$0xff]  }
 0x2c4   :  { %5228 = vmatprep.subr.bf16.mxu0 %v7064_v30  ;;  %v7146_v30 = vld [vmem:[#allocation8 + $0x620] ss:$16 sps:$4 sm:$0xff]  }
 0x2c5   :  { %5311 = vmatpush1.bf16.msra.mxu1 %v7017_v31  ;;  %v7154_v31 = vld [vmem:[#allocation8 + $0x644] ss:$16 sps:$4 sm:$0xff]  }
 0x2c6   :  { %5312 = vmatprep.subr.bf16.mxu1 %v7025_v13  ;;  %v7095_v13 = vld [vmem:[#allocation8 + $0x328] ss:$16 sps:$4 sm:$0xff]  }
 0x2c7   :  { %5229 = vmatpush1.bf16.msra.mxu0 %v7062_v32  ;;  %v7100_v32 = vld [vmem:[#allocation8 + $0x34c] ss:$16 sps:$4 sm:$0xff]  }
 0x2c8   :  { %5230 = vmatprep.subr.bf16.mxu0 %v7070_v33  ;;  %v7152_v33 = vld [vmem:[#allocation8 + $0x640] ss:$16 sps:$4 sm:$0xff]  }
 0x2c9   :  { %5313 = vmatpush1.bf16.msra.mxu1 %v7023_v34  ;;  %v7160_v34 = vld [vmem:[#allocation8 + $0x664] ss:$16 sps:$4 sm:$0xff]  }
 0x2ca   :  { %5314 = vmatprep.subr.bf16.mxu1 %v7031_v36  ;;  %v7098_v36 = vld [vmem:[#allocation8 + $0x348] ss:$16 sps:$4 sm:$0xff]  }
 0x2cb   :  { %5231 = vmatpush1.bf16.msra.mxu0 %v7068_v37  ;;  %v7103_v37 = vld [vmem:[#allocation8 + $0x36c] ss:$16 sps:$4 sm:$0xff]  }
 0x2cc   :  { %5232 = vmatprep.subr.bf16.mxu0 %v7076_v38  ;;  %v7158_v38 = vld [vmem:[#allocation8 + $0x660] ss:$16 sps:$4 sm:$0xff]  }
 0x2cd   :  { %5315 = vmatpush1.bf16.msra.mxu1 %v7029_v39  ;;  %v7166_v39 = vld [vmem:[#allocation8 + $0x684] ss:$16 sps:$4 sm:$0xff]  }
 0x2ce   :  { %5316 = vmatprep.subr.bf16.mxu1 %v7037_v41  ;;  %v7101_v41 = vld [vmem:[#allocation8 + $0x368] ss:$16 sps:$4 sm:$0xff]  }
 0x2cf   :  { %5233 = vmatpush1.bf16.msra.mxu0 %v7074_v44  ;;  %v7106_v44 = vld [vmem:[#allocation8 + $0x38c] ss:$16 sps:$4 sm:$0xff]  }
 0x2d0   :  { %5234 = vmatprep.subr.bf16.mxu0 %v7082_v45  ;;  %v7164_v45 = vld [vmem:[#allocation8 + $0x680] ss:$16 sps:$4 sm:$0xff]  }
 0x2d1   :  { %5317 = vmatpush1.bf16.msra.mxu1 %v7035_v46  ;;  %v7172_v46 = vld [vmem:[#allocation8 + $0x6a4] ss:$16 sps:$4 sm:$0xff]  }
 0x2d2   :  { %5318 = vmatprep.subr.bf16.mxu1 %v7043_v47  ;;  %v7104_v47 = vld [vmem:[#allocation8 + $0x388] ss:$16 sps:$4 sm:$0xff]  }
 0x2d3   :  { %5235 = vmatpush1.bf16.msra.mxu0 %v7080_v56  ;;  %v7109_v56 = vld [vmem:[#allocation8 + $0x3ac] ss:$16 sps:$4 sm:$0xff]  }
 0x2d4   :  { %5236 = vmatprep.subr.bf16.mxu0 %v7088_v49  ;;  %v7170_v49 = vld [vmem:[#allocation8 + $0x6a0] ss:$16 sps:$4 sm:$0xff]  }
 0x2d5   :  { %5319 = vmatpush1.bf16.msra.mxu1 %v7041_v50  ;;  %v7178_v50 = vld [vmem:[#allocation8 + $0x6c4] ss:$16 sps:$4 sm:$0xff]  }
 0x2d6   :  { %5329 = vmatprep.subr.bf16.mxu1 %v7049_v58  ;;  %v7107_v58 = vld [vmem:[#allocation8 + $0x3a8] ss:$16 sps:$4 sm:$0xff]  }
 0x2d7   :  { %5237 = vmatpush1.bf16.msra.mxu0 %v7086_v52  ;;  %v7112_v52 = vld [vmem:[#allocation8 + $0x3cc] ss:$16 sps:$4 sm:$0xff]  }
 0x2d8   :  { %5321 = vmatmul.mubr.bf16.vlgmr.msra.gmra.mrb[12].mxu1 %v7782_v53  ;;  %5247 = vmatprep.subr.bf16.mxu0 %v7142_v61  ;;  %v620_v53 = vsub.s32 5, %v7755_v1  ;;  %v7176_v61 = vld [vmem:[#allocation8 + $0x6c0] ss:$16 sps:$4 sm:$0xff]  }
 0x2d9   :  { %5330 = vmatpush1.bf16.msra.mxu1 %v7047_v54  ;;  %5361 = vmatprep.mubr.bf16.mxu1 %v7796_v40  ;;  %v7808_v40 = vld [vmem:[#allocation7] sm:$0xff]  ;;  %v7184_v54 = vld [vmem:[#allocation8 + $0x6e4] ss:$16 sps:$4 sm:$0xff]  }
 0x2da   :  { %5331 = vmatprep.subr.bf16.mxu1 %v7055_v55  ;;  %v617_v63 = vrot.slane %v7808_v40, %v616_v17  ;;  %v621_v2 = vrot.slane %v7808_v40, %v620_v53  ;;  %v7110_v55 = vld [vmem:[#allocation8 + $0x3c8] ss:$16 sps:$4 sm:$0xff]   ;;  %v7121_v53 = vld [vmem:[#allocation8 + $0x42c] ss:$16 sps:$4 sm:$0xff]  }
 0x2db   :  { %v7116_v17 = vld [vmem:[#allocation8 + $0x408] ss:$16 sps:$4 sm:$0xff]  }
 0x2dd   :  { %5332 = vmatpush1.bf16.msra.mxu1 %v7053_v57  ;;  %v7115_v57 = vld [vmem:[#allocation8 + $0x3ec] ss:$16 sps:$4 sm:$0xff]  }
 0x2de   :  { %5333 = vmatprep.subr.bf16.mxu1 %v7061_v43  ;;  %v7182_v43 = vld [vmem:[#allocation8 + $0x6e0] ss:$16 sps:$4 sm:$0xff]  }
 0x2e1   :  { %5334 = vmatpush1.bf16.msra.mxu1 %v7059_v59  ;;  %v7190_v59 = vld [vmem:[#allocation8 + $0x704] ss:$16 sps:$4 sm:$0xff]  }
 0x2e2   :  { %5335 = vmatprep.subr.bf16.mxu1 %v7067_v60  ;;  %v7113_v60 = vld [vmem:[#allocation8 + $0x3e8] ss:$16 sps:$4 sm:$0xff]  }
 0x2e5   :  { %5336 = vmatpush1.bf16.msra.mxu1 %v7065_v6  ;;  %v7118_v6 = vld [vmem:[#allocation8 + $0x40c] ss:$16 sps:$4 sm:$0xff]  }
 0x2e6   :  { %5337 = vmatprep.subr.bf16.mxu1 %v7073_v35  ;;  %v7188_v35 = vld [vmem:[#allocation8 + $0x700] ss:$16 sps:$4 sm:$0xff]  }
 0x2e9   :  { %5338 = vmatpush1.bf16.msra.mxu1 %v7071_v42  ;;  %v7196_v42 = vld [vmem:[#allocation8 + $0x724] ss:$16 sps:$4 sm:$0xff]  }
 0x2ea   :  { %5339 = vmatprep.subr.bf16.mxu1 %v7079_v51  ;;  %v7194_v51 = vld [vmem:[#allocation8 + $0x720] ss:$16 sps:$4 sm:$0xff]  }
 0x2ed   :  { %v3363_v4 = vpop.f32.mrb[4].mxu0  ;;  %5340 = vmatpush1.bf16.msra.mxu1 %v7077_v0  ;;  %v7119_v0 = vld [vmem:[#allocation8 + $0x428] ss:$16 sps:$4 sm:$0xff]  }
 0x2ee   :  { %v6779_v7 = vadd.f32 %v3363_v4, %v617_v63  ;;  %v3365_v62 = vpop.f32.mrb[5].mxu0  ;;  %5341 = vmatprep.subr.bf16.mxu1 %v7085_v3  ;;  %v7202_v63 = vld [vmem:[#allocation8 + $0x744] ss:$16 sps:$4 sm:$0xff]   ;;  %v7200_v3 = vld [vmem:[#allocation8 + $0x740] ss:$16 sps:$4 sm:$0xff]  }
 0x2ef   :  { %v6780_v22 = vadd.f32 %v3365_v62, %v621_v2  ;;  %v3367_v11 = vpop.f32.mrb[6].mxu0  ;;  %v7124_v2 = vld [vmem:[#allocation8 + $0x44c] ss:$16 sps:$4 sm:$0xff]   ;;  %v7208_v4 = vld [vmem:[#allocation8 + $0x764] ss:$16 sps:$4 sm:$0xff]  }
 0x2f0   :  { %vm3538_vm4 = vcmp.gt.f32.partialorder %v6779_v7, 0.0  ;;  %v3546_v28 = vmul.f32 0.2, %v6779_v7  ;;  %v3368_v15 = vpop.f32.mrb[7].mxu0  ;;  %v7127_v62 = vld [vmem:[#allocation8 + $0x46c] ss:$16 sps:$4 sm:$0xff]  }
 0x2f1   :  { %vm3539_vm5 = vcmp.gt.f32.partialorder %v6780_v22, 0.0  ;;  %v3547_v16 = vmul.f32 0.2, %v6780_v22  ;;  %5342 = vmatpush1.bf16.msra.mxu1 %v7083_v10  ;;  %v7206_v10 = vld [vmem:[#allocation8 + $0x760] ss:$16 sps:$4 sm:$0xff]  }
 0x2f2   :  { %v3554_v18 = vsel %vm3538_vm4, %v6779_v7, %v3546_v28  ;;  %5343 = vmatprep.subr.bf16.mxu1 %v7091_v12  ;;  %v7122_v7 = vld [vmem:[#allocation8 + $0x448] ss:$16 sps:$4 sm:$0xff]   ;;  %v7130_v11 = vld [vmem:[#allocation8 + $0x48c] ss:$16 sps:$4 sm:$0xff]   ;;  %v7212_v12 = vld [vmem:[#allocation8 + $0x780] ss:$16 sps:$4 sm:$0xff]  }
 0x2f3   :  { %v3555_v20 = vsel %vm3539_vm5, %v6780_v22, %v3547_v16  ;;  %v7814_v25 = vpack.c.bf16 %v3554_v18, %v3554_v18  ;;  %v7125_v22 = vld [vmem:[#allocation8 + $0x468] ss:$16 sps:$4 sm:$0xff]   ;;  %v7220_v28 = vld [vmem:[#allocation8 + $0x7a4] ss:$16 sps:$4 sm:$0xff]   ;;  %v7133_v16 = vld [vmem:[#allocation8 + $0x4ac] ss:$16 sps:$4 sm:$0xff]  }
 0x2f4   :  { %v7812_v23 = vpack.c.bf16 %v3555_v20, %v3555_v20  ;;  %v7128_v15 = vld [vmem:[#allocation8 + $0x488] ss:$16 sps:$4 sm:$0xff]   ;;  %v7218_v18 = vld [vmem:[#allocation8 + $0x7a0] ss:$16 sps:$4 sm:$0xff]  }
 0x2f5   :  { %5344 = vmatpush1.bf16.msra.mxu1 %v7089_v19  ;;  %v7226_v19 = vld [vmem:[#allocation8 + $0x7c4] ss:$16 sps:$4 sm:$0xff]   ;;  %v7131_v20 = vld [vmem:[#allocation8 + $0x4a8] ss:$16 sps:$4 sm:$0xff]  }
 0x2f6   :  { %5238 = vmatprep.mubr.bf16.mxu0 %v7812_v23  ;;  %5345 = vmatprep.subr.bf16.mxu1 %v7094_v21  ;;  %v7136_v21 = vld [vmem:[#allocation8 + $0x4cc] ss:$16 sps:$4 sm:$0xff]  }
 0x2f7   :  { %5239 = vmatmul.mubr.bf16.vlgmr.msra.gmra.mrb[8].mxu0 %v7814_v25 }
 0x2f8   :  { %5248 = vmatpush1.bf16.msra.mxu0 %v7140_v24  ;;  %v7232_v24 = vld [vmem:[#allocation8 + $0x7e4] ss:$16 sps:$4 sm:$0xff]  }
 0x2f9   :  { %5249 = vmatprep.subr.bf16.mxu0 %v7148_v26  ;;  %5346 = vmatpush1.bf16.msra.mxu1 %v7092_v27  ;;  %v7134_v26 = vld [vmem:[#allocation8 + $0x4c8] ss:$16 sps:$4 sm:$0xff]   ;;  %v7139_v27 = vld [vmem:[#allocation8 + $0x4ec] ss:$16 sps:$4 sm:$0xff]  }
 0x2fa   :  { %5347 = vmatprep.subr.bf16.mxu1 %v7097_v29  ;;  %v7230_v29 = vld [vmem:[#allocation8 + $0x7e0] ss:$16 sps:$4 sm:$0xff]  }
 0x2fc   :  { %5250 = vmatpush1.bf16.msra.mxu0 %v7146_v30  ;;  %v7262_v30 = vld [vmem:[#allocation11 + $0x4] ss:$8 sps:$4 sm:$0xff]  }
 0x2fd   :  { %5251 = vmatprep.subr.bf16.mxu0 %v7154_v31  ;;  %5348 = vmatpush1.bf16.msra.mxu1 %v7095_v13  ;;  %v7137_v31 = vld [vmem:[#allocation8 + $0x4e8] ss:$16 sps:$4 sm:$0xff]   ;;  %v7145_v13 = vld [vmem:[#allocation8 + $0x50c] ss:$16 sps:$4 sm:$0xff]  }
 0x2fe   :  { %5349 = vmatprep.subr.bf16.mxu1 %v7100_v32  ;;  %v7143_v32 = vld [vmem:[#allocation8 + $0x508] ss:$16 sps:$4 sm:$0xff]  }
 0x300   :  { %5252 = vmatpush1.bf16.msra.mxu0 %v7152_v33  ;;  %v7151_v33 = vld [vmem:[#allocation8 + $0x52c] ss:$16 sps:$4 sm:$0xff]  }
 0x301   :  { %5253 = vmatprep.subr.bf16.mxu0 %v7160_v34  ;;  %5350 = vmatpush1.bf16.msra.mxu1 %v7098_v36  ;;  %v7149_v34 = vld [vmem:[#allocation8 + $0x528] ss:$16 sps:$4 sm:$0xff]   ;;  %v7157_v36 = vld [vmem:[#allocation8 + $0x54c] ss:$16 sps:$4 sm:$0xff]  }
 0x302   :  { %5351 = vmatprep.subr.bf16.mxu1 %v7103_v37  ;;  %v7155_v37 = vld [vmem:[#allocation8 + $0x548] ss:$16 sps:$4 sm:$0xff]  }
 0x304   :  { %5254 = vmatpush1.bf16.msra.mxu0 %v7158_v38  ;;  %v7163_v38 = vld [vmem:[#allocation8 + $0x56c] ss:$16 sps:$4 sm:$0xff]  }
 0x305   :  { %5255 = vmatprep.subr.bf16.mxu0 %v7166_v39  ;;  %5352 = vmatpush1.bf16.msra.mxu1 %v7101_v41  ;;  %v7161_v39 = vld [vmem:[#allocation8 + $0x568] ss:$16 sps:$4 sm:$0xff]   ;;  %v7169_v41 = vld [vmem:[#allocation8 + $0x58c] ss:$16 sps:$4 sm:$0xff]  }
 0x306   :  { %5353 = vmatprep.subr.bf16.mxu1 %v7106_v44  ;;  %v7167_v44 = vld [vmem:[#allocation8 + $0x588] ss:$16 sps:$4 sm:$0xff]  }
 0x308   :  { %5256 = vmatpush1.bf16.msra.mxu0 %v7164_v45  ;;  %v7175_v45 = vld [vmem:[#allocation8 + $0x5ac] ss:$16 sps:$4 sm:$0xff]  }
 0x309   :  { %5257 = vmatprep.subr.bf16.mxu0 %v7172_v46  ;;  %5354 = vmatpush1.bf16.msra.mxu1 %v7104_v47  ;;  %v7173_v46 = vld [vmem:[#allocation8 + $0x5a8] ss:$16 sps:$4 sm:$0xff]   ;;  %v7181_v47 = vld [vmem:[#allocation8 + $0x5cc] ss:$16 sps:$4 sm:$0xff]  }
 0x30a   :  { %5355 = vmatprep.subr.bf16.mxu1 %v7109_v56  ;;  %v7179_v56 = vld [vmem:[#allocation8 + $0x5c8] ss:$16 sps:$4 sm:$0xff]  }
 0x30c   :  { %5258 = vmatpush1.bf16.msra.mxu0 %v7170_v49  ;;  %v7187_v49 = vld [vmem:[#allocation8 + $0x5ec] ss:$16 sps:$4 sm:$0xff]  }
 0x30d   :  { %5259 = vmatprep.subr.bf16.mxu0 %v7178_v50  ;;  %5356 = vmatpush1.bf16.msra.mxu1 %v7107_v58  ;;  %v7185_v50 = vld [vmem:[#allocation8 + $0x5e8] ss:$16 sps:$4 sm:$0xff]   ;;  %v7193_v58 = vld [vmem:[#allocation8 + $0x60c] ss:$16 sps:$4 sm:$0xff]  }
 0x30e   :  { %5357 = vmatprep.subr.bf16.mxu1 %v7112_v52  ;;  %v7191_v52 = vld [vmem:[#allocation8 + $0x608] ss:$16 sps:$4 sm:$0xff]  }
 0x310   :  { %5260 = vmatpush1.bf16.msra.mxu0 %v7176_v61  ;;  %v7199_v61 = vld [vmem:[#allocation8 + $0x62c] ss:$16 sps:$4 sm:$0xff]  }
 0x311   :  { %5261 = vmatprep.subr.bf16.mxu0 %v7184_v54  ;;  %5358 = vmatpush1.bf16.msra.mxu1 %v7110_v55  ;;  %v7197_v54 = vld [vmem:[#allocation8 + $0x628] ss:$16 sps:$4 sm:$0xff]   ;;  %v7205_v55 = vld [vmem:[#allocation8 + $0x64c] ss:$16 sps:$4 sm:$0xff]  }
 0x312   :  { %5359 = vmatprep.subr.bf16.mxu1 %v7115_v57  ;;  %v7203_v57 = vld [vmem:[#allocation8 + $0x648] ss:$16 sps:$4 sm:$0xff]  }
 0x314   :  { %5262 = vmatpush1.bf16.msra.mxu0 %v7182_v43  ;;  %v7211_v43 = vld [vmem:[#allocation8 + $0x66c] ss:$16 sps:$4 sm:$0xff]  }
 0x315   :  { %5263 = vmatprep.subr.bf16.mxu0 %v7190_v59  ;;  %5360 = vmatpush1.bf16.msra.mxu1 %v7113_v60  ;;  %v7209_v59 = vld [vmem:[#allocation8 + $0x668] ss:$16 sps:$4 sm:$0xff]   ;;  %v7217_v60 = vld [vmem:[#allocation8 + $0x68c] ss:$16 sps:$4 sm:$0xff]  }
 0x316   :  { %5370 = vmatprep.subr.bf16.mxu1 %v7118_v6  ;;  %v624_v6 = vsub.s32 6, %v7755_v1 }
 0x318   :  { %5264 = vmatpush1.bf16.msra.mxu0 %v7188_v35  ;;  %5362 = vmatmul.mubr.bf16.vlgmr.msra.gmra.mrb[12].mxu1 %v7799_v48  ;;  %v7214_v48 = vld [vmem:[#allocation8 + $0x784] ss:$16 sps:$4 sm:$0xff]   ;;  %v7215_v35 = vld [vmem:[#allocation8 + $0x688] ss:$16 sps:$4 sm:$0xff]  }
 0x319   :  { %5265 = vmatprep.subr.bf16.mxu0 %v7196_v42  ;;  %5371 = vmatpush1.bf16.msra.mxu1 %v7116_v17  ;;  %v628_v42 = vsub.s32 7, %v7755_v1  ;;  %v625_v17 = vrot.slane %v7808_v40, %v624_v6  ;;  %v7290_v6 = vld [vmem:[#allocation11 + $0xa0] ss:$8 sps:$4 sm:$0xff]   ;;  %v7335_v1 = vld [vmem:[#allocation11 + $0x190] ss:$8 sps:$4 sm:$0xff]  }
 0x31a   :  { %5402 = vmatprep.mubr.bf16.mxu1 %v7812_v23  ;;  %5372 = vmatprep.subr.bf16.mxu1 %v7121_v53  ;;  %v7224_v23 = vld [vmem:[#allocation8 + $0x7c0] ss:$16 sps:$4 sm:$0xff]  }
 0x31b   :  { %v629_v53 = vrot.slane %v7808_v40, %v628_v42  ;;  %v7293_v42 = vld [vmem:[#allocation11 + $0xb0] ss:$8 sps:$4 sm:$0xff]  }
 0x31c   :  { %5266 = vmatpush1.bf16.msra.mxu0 %v7194_v51  ;;  %v7221_v51 = vld [vmem:[#allocation8 + $0x6a8] ss:$16 sps:$4 sm:$0xff]  }
 0x31d   :  { %5267 = vmatprep.subr.bf16.mxu0 %v7202_v63  ;;  %5373 = vmatpush1.bf16.msra.mxu1 %v7119_v0  ;;  %v7229_v63 = vld [vmem:[#allocation8 + $0x6cc] ss:$16 sps:$4 sm:$0xff]  }
 0x31e   :  { %5374 = vmatprep.subr.bf16.mxu1 %v7124_v2 }
 0x320   :  { %5268 = vmatpush1.bf16.msra.mxu0 %v7200_v3 }
 0x321   :  { %5269 = vmatprep.subr.bf16.mxu0 %v7208_v4  ;;  %5375 = vmatpush1.bf16.msra.mxu1 %v7122_v7 }
 0x322   :  { %5376 = vmatprep.subr.bf16.mxu1 %v7127_v62  ;;  %v7227_v62 = vld [vmem:[#allocation8 + $0x6c8] ss:$16 sps:$4 sm:$0xff]  }
 0x324   :  { %5270 = vmatpush1.bf16.msra.mxu0 %v7206_v10 }
 0x325   :  { %5271 = vmatprep.subr.bf16.mxu0 %v7214_v48  ;;  %5377 = vmatpush1.bf16.msra.mxu1 %v7125_v22  ;;  %v7235_v22 = vld [vmem:[#allocation8 + $0x6ec] ss:$16 sps:$4 sm:$0xff]  }
 0x326   :  { %5378 = vmatprep.subr.bf16.mxu1 %v7130_v11 }
 0x328   :  { %5272 = vmatpush1.bf16.msra.mxu0 %v7212_v12 }
 0x329   :  { %5273 = vmatprep.subr.bf16.mxu0 %v7220_v28  ;;  %5379 = vmatpush1.bf16.msra.mxu1 %v7128_v15  ;;  %v7233_v28 = vld [vmem:[#allocation8 + $0x6e8] ss:$16 sps:$4 sm:$0xff]  }
 0x32a   :  { %5380 = vmatprep.subr.bf16.mxu1 %v7133_v16  ;;  %v7238_v16 = vld [vmem:[#allocation8 + $0x70c] ss:$16 sps:$4 sm:$0xff]  }
 0x32c   :  { %5274 = vmatpush1.bf16.msra.mxu0 %v7218_v18  ;;  %v7260_v18 = vld [vmem:[#allocation11] ss:$8 sps:$4 sm:$0xff]  }
 0x32d   :  { %5275 = vmatprep.subr.bf16.mxu0 %v7226_v19  ;;  %5381 = vmatpush1.bf16.msra.mxu1 %v7131_v20  ;;  %v7265_v20 = vld [vmem:[#allocation11 + $0x14] ss:$8 sps:$4 sm:$0xff]  }
 0x32e   :  { %5382 = vmatprep.subr.bf16.mxu1 %v7136_v21  ;;  %v7236_v21 = vld [vmem:[#allocation8 + $0x708] ss:$16 sps:$4 sm:$0xff]  }
 0x330   :  { %5276 = vmatpush1.bf16.msra.mxu0 %v7224_v23  ;;  %v7241_v23 = vld [vmem:[#allocation8 + $0x72c] ss:$16 sps:$4 sm:$0xff]  }
 0x331   :  { %5277 = vmatprep.subr.bf16.mxu0 %v7232_v24  ;;  %5383 = vmatpush1.bf16.msra.mxu1 %v7134_v26  ;;  %v7263_v24 = vld [vmem:[#allocation11 + $0x10] ss:$8 sps:$4 sm:$0xff]   ;;  %v7268_v26 = vld [vmem:[#allocation11 + $0x24] ss:$8 sps:$4 sm:$0xff]  }
 0x332   :  { %5384 = vmatprep.subr.bf16.mxu1 %v7139_v27  ;;  %v7239_v27 = vld [vmem:[#allocation8 + $0x728] ss:$16 sps:$4 sm:$0xff]  }
 0x334   :  { %5278 = vmatpush1.bf16.msra.mxu0 %v7230_v29  ;;  %v7244_v29 = vld [vmem:[#allocation8 + $0x74c] ss:$16 sps:$4 sm:$0xff]  }
 0x335   :  { %5864 = vmatprep.subr.bf16.mxu0 %v7262_v30  ;;  %5385 = vmatpush1.bf16.msra.mxu1 %v7137_v31  ;;  %v7266_v30 = vld [vmem:[#allocation11 + $0x20] ss:$8 sps:$4 sm:$0xff]   ;;  %v7271_v31 = vld [vmem:[#allocation11 + $0x34] ss:$8 sps:$4 sm:$0xff]  }
 0x336   :  { %5386 = vmatprep.subr.bf16.mxu1 %v7145_v13  ;;  %v7242_v13 = vld [vmem:[#allocation8 + $0x748] ss:$16 sps:$4 sm:$0xff]  }
 0x339   :  { %5387 = vmatpush1.bf16.msra.mxu1 %v7143_v32  ;;  %v7247_v32 = vld [vmem:[#allocation8 + $0x76c] ss:$16 sps:$4 sm:$0xff]  }
 0x33a   :  { %5388 = vmatprep.subr.bf16.mxu1 %v7151_v33  ;;  %v7269_v33 = vld [vmem:[#allocation11 + $0x30] ss:$8 sps:$4 sm:$0xff]  }
 0x33d   :  { %5389 = vmatpush1.bf16.msra.mxu1 %v7149_v34  ;;  %v7274_v34 = vld [vmem:[#allocation11 + $0x44] ss:$8 sps:$4 sm:$0xff]  }
 0x33e   :  { %5390 = vmatprep.subr.bf16.mxu1 %v7157_v36  ;;  %v7245_v36 = vld [vmem:[#allocation8 + $0x768] ss:$16 sps:$4 sm:$0xff]  }
 0x341   :  { %5391 = vmatpush1.bf16.msra.mxu1 %v7155_v37  ;;  %v7250_v37 = vld [vmem:[#allocation8 + $0x78c] ss:$16 sps:$4 sm:$0xff]  }
 0x342   :  { %5392 = vmatprep.subr.bf16.mxu1 %v7163_v38  ;;  %v7272_v38 = vld [vmem:[#allocation11 + $0x40] ss:$8 sps:$4 sm:$0xff]  }
 0x345   :  { %5393 = vmatpush1.bf16.msra.mxu1 %v7161_v39  ;;  %v7277_v39 = vld [vmem:[#allocation11 + $0x54] ss:$8 sps:$4 sm:$0xff]  }
 0x346   :  { %5394 = vmatprep.subr.bf16.mxu1 %v7169_v41  ;;  %v7248_v41 = vld [vmem:[#allocation8 + $0x788] ss:$16 sps:$4 sm:$0xff]  }
 0x349   :  { %5395 = vmatpush1.bf16.msra.mxu1 %v7167_v44  ;;  %v7253_v44 = vld [vmem:[#allocation8 + $0x7ac] ss:$16 sps:$4 sm:$0xff]  }
 0x34a   :  { %5396 = vmatprep.subr.bf16.mxu1 %v7175_v45  ;;  %v7275_v45 = vld [vmem:[#allocation11 + $0x50] ss:$8 sps:$4 sm:$0xff]  }
 0x34d   :  { %5397 = vmatpush1.bf16.msra.mxu1 %v7173_v46  ;;  %v7280_v46 = vld [vmem:[#allocation11 + $0x64] ss:$8 sps:$4 sm:$0xff]  }
 0x34e   :  { %5398 = vmatprep.subr.bf16.mxu1 %v7181_v47  ;;  %v7251_v47 = vld [vmem:[#allocation8 + $0x7a8] ss:$16 sps:$4 sm:$0xff]  }
 0x351   :  { %5399 = vmatpush1.bf16.msra.mxu1 %v7179_v56  ;;  %v7256_v56 = vld [vmem:[#allocation8 + $0x7cc] ss:$16 sps:$4 sm:$0xff]  }
 0x352   :  { %5400 = vmatprep.subr.bf16.mxu1 %v7187_v49  ;;  %v7278_v49 = vld [vmem:[#allocation11 + $0x60] ss:$8 sps:$4 sm:$0xff]  }
 0x355   :  { %5401 = vmatpush1.bf16.msra.mxu1 %v7185_v50  ;;  %v7283_v50 = vld [vmem:[#allocation11 + $0x74] ss:$8 sps:$4 sm:$0xff]  }
 0x356   :  { %5411 = vmatprep.subr.bf16.mxu1 %v7193_v58  ;;  %v7254_v58 = vld [vmem:[#allocation8 + $0x7c8] ss:$16 sps:$4 sm:$0xff]  }
 0x358   :  { %5403 = vmatmul.mubr.bf16.vlgmr.msra.gmra.mrb[12].mxu1 %v7814_v25  ;;  %v7223_v25 = vld [vmem:[#allocation8 + $0x6ac] ss:$16 sps:$4 sm:$0xff]  }
 0x359   :  { %5412 = vmatpush1.bf16.msra.mxu1 %v7191_v52  ;;  %v7259_v52 = vld [vmem:[#allocation8 + $0x7ec] ss:$16 sps:$4 sm:$0xff]  }
 0x35a   :  { %5413 = vmatprep.subr.bf16.mxu1 %v7199_v61  ;;  %v7281_v61 = vld [vmem:[#allocation11 + $0x70] ss:$8 sps:$4 sm:$0xff]  }
 0x35d   :  { %5414 = vmatpush1.bf16.msra.mxu1 %v7197_v54  ;;  %v7286_v54 = vld [vmem:[#allocation11 + $0x84] ss:$8 sps:$4 sm:$0xff]  }
 0x35e   :  { %5415 = vmatprep.subr.bf16.mxu1 %v7205_v55  ;;  %v7257_v55 = vld [vmem:[#allocation8 + $0x7e8] ss:$16 sps:$4 sm:$0xff]  }
 0x361   :  { %5416 = vmatpush1.bf16.msra.mxu1 %v7203_v57  ;;  %v7284_v57 = vld [vmem:[#allocation11 + $0x80] ss:$8 sps:$4 sm:$0xff]  }
 0x362   :  { %5417 = vmatprep.subr.bf16.mxu1 %v7211_v43  ;;  %v7289_v43 = vld [vmem:[#allocation11 + $0x94] ss:$8 sps:$4 sm:$0xff]  }
 0x365   :  { %5418 = vmatpush1.bf16.msra.mxu1 %v7209_v59  ;;  %v7287_v59 = vld [vmem:[#allocation11 + $0x90] ss:$8 sps:$4 sm:$0xff]  }
 0x366   :  { %5419 = vmatprep.subr.bf16.mxu1 %v7217_v60  ;;  %v7292_v60 = vld [vmem:[#allocation11 + $0xa4] ss:$8 sps:$4 sm:$0xff]  }
 0x369   :  { %5420 = vmatpush1.bf16.msra.mxu1 %v7215_v35  ;;  %v7295_v35 = vld [vmem:[#allocation11 + $0xb4] ss:$8 sps:$4 sm:$0xff]  }
 0x36a   :  { %5421 = vmatprep.subr.bf16.mxu1 %v7223_v25  ;;  %v7298_v25 = vld [vmem:[#allocation11 + $0xc4] ss:$8 sps:$4 sm:$0xff]  }
 0x36b   :  { %v3527_v0 = vpop.f32.mrb[8].mxu1 }
 0x36c   :  { %v6781_v2 = vadd.f32 %v3527_v0, %v625_v17  ;;  %v3529_v3 = vpop.f32.mrb[9].mxu1  ;;  %v7296_v17 = vld [vmem:[#allocation11 + $0xc0] ss:$8 sps:$4 sm:$0xff]  }
 0x36d   :  { %v6782_v4 = vadd.f32 %v3529_v3, %v629_v53  ;;  %v3531_v7 = vpop.f32.mrb[10].mxu1  ;;  %5422 = vmatpush1.bf16.msra.mxu1 %v7221_v51  ;;  %v7301_v53 = vld [vmem:[#allocation11 + $0xd4] ss:$8 sps:$4 sm:$0xff]   ;;  %v7299_v51 = vld [vmem:[#allocation11 + $0xd0] ss:$8 sps:$4 sm:$0xff]  }
 0x36e   :  { %vm3540_vm6 = vcmp.gt.f32.partialorder %v6781_v2, 0.0  ;;  %v3548_v10 = vmul.f32 0.2, %v6781_v2  ;;  %v3532_v48 = vpop.f32.mrb[11].mxu1  ;;  %5423 = vmatprep.subr.bf16.mxu1 %v7229_v63  ;;  %v7304_v63 = vld [vmem:[#allocation11 + $0xe4] ss:$8 sps:$4 sm:$0xff]  }
 0x36f   :  { %vm3541_vm7 = vcmp.gt.f32.partialorder %v6782_v4, 0.0  ;;  %v3549_v11 = vmul.f32 0.2, %v6782_v4  ;;  %v7302_v0 = vld [vmem:[#allocation11 + $0xe0] ss:$8 sps:$4 sm:$0xff]  }
 0x370   :  { %v3556_v12 = vsel %vm3540_vm6, %v6781_v2, %v3548_v10  ;;  %v7307_v2 = vld [vmem:[#allocation11 + $0xf4] ss:$8 sps:$4 sm:$0xff]   ;;  %v7305_v3 = vld [vmem:[#allocation11 + $0xf0] ss:$8 sps:$4 sm:$0xff]  }
 0x371   :  { %5424 = vmatpush1.bf16.msra.mxu1 %v7227_v62  ;;  %v3557_v40 = vsel %vm3541_vm7, %v6782_v4, %v3549_v11  ;;  %v7825_v19 = vpack.c.bf16 %v3556_v12, %v3556_v12  ;;  %v7310_v4 = vld [vmem:[#allocation11 + $0x104] ss:$8 sps:$4 sm:$0xff]   ;;  %v7829_v7 = vld [vmem:[#allocation10] sm:$0xf] }
 0x372   :  { %v3565_v15 = vpack.c.bf16 %v3557_v40, %v3557_v40  ;;  %5425 = vmatprep.subr.bf16.mxu1 %v7235_v22  ;;  %v3827_v62 = vrot.slane %v7829_v7, %v7758_v9  ;;  %v3831_v10 = vrot.slane %v7829_v7, %v7763_v14 }
 0x374   :  { %5279 = vmatprep.mubr.bf16.mxu0 %v3565_v15  ;;  %5443 = vmatprep.mubr.bf16.mxu1 %v3565_v15 }
 0x375   :  { %5280 = vmatmul.mubr.bf16.vlgmr.msra.gmra.mrb[8].mxu0 %v7825_v19  ;;  %5426 = vmatpush1.bf16.msra.mxu1 %v7233_v28 }
 0x376   :  { %5427 = vmatprep.subr.bf16.mxu1 %v7238_v16  ;;  %5865 = vmatpush1.bf16.msra.mxu0 %v7260_v18 }
 0x377   :  { %5866 = vmatprep.subr.bf16.mxu0 %v7265_v20 }
 0x379   :  { %5428 = vmatpush1.bf16.msra.mxu1 %v7236_v21  ;;  %v7308_v21 = vld [vmem:[#allocation11 + $0x100] ss:$8 sps:$4 sm:$0xff]  }
 0x37a   :  { %5429 = vmatprep.subr.bf16.mxu1 %v7241_v23  ;;  %5867 = vmatpush1.bf16.msra.mxu0 %v7263_v24  ;;  %v7313_v24 = vld [vmem:[#allocation11 + $0x114] ss:$8 sps:$4 sm:$0xff]  }
 0x37b   :  { %5868 = vmatprep.subr.bf16.mxu0 %v7268_v26  ;;  %v7311_v26 = vld [vmem:[#allocation11 + $0x110] ss:$8 sps:$4 sm:$0xff]  }
 0x37d   :  { %5430 = vmatpush1.bf16.msra.mxu1 %v7239_v27  ;;  %v7316_v27 = vld [vmem:[#allocation11 + $0x124] ss:$8 sps:$4 sm:$0xff]  }
 0x37e   :  { %5431 = vmatprep.subr.bf16.mxu1 %v7244_v29  ;;  %5869 = vmatpush1.bf16.msra.mxu0 %v7266_v30  ;;  %v7314_v29 = vld [vmem:[#allocation11 + $0x120] ss:$8 sps:$4 sm:$0xff]   ;;  %v7319_v30 = vld [vmem:[#allocation11 + $0x134] ss:$8 sps:$4 sm:$0xff]  }
 0x37f   :  { %5870 = vmatprep.subr.bf16.mxu0 %v7271_v31  ;;  %v7317_v31 = vld [vmem:[#allocation11 + $0x130] ss:$8 sps:$4 sm:$0xff]  }
 0x381   :  { %5432 = vmatpush1.bf16.msra.mxu1 %v7242_v13  ;;  %v7322_v13 = vld [vmem:[#allocation11 + $0x144] ss:$8 sps:$4 sm:$0xff]  }
 0x382   :  { %5433 = vmatprep.subr.bf16.mxu1 %v7247_v32  ;;  %5871 = vmatpush1.bf16.msra.mxu0 %v7269_v33  ;;  %v7320_v32 = vld [vmem:[#allocation11 + $0x140] ss:$8 sps:$4 sm:$0xff]   ;;  %v7325_v33 = vld [vmem:[#allocation11 + $0x154] ss:$8 sps:$4 sm:$0xff]  }
 0x383   :  { %5872 = vmatprep.subr.bf16.mxu0 %v7274_v34  ;;  %v7323_v34 = vld [vmem:[#allocation11 + $0x150] ss:$8 sps:$4 sm:$0xff]  }
 0x385   :  { %5434 = vmatpush1.bf16.msra.mxu1 %v7245_v36  ;;  %v7328_v36 = vld [vmem:[#allocation11 + $0x164] ss:$8 sps:$4 sm:$0xff]  }
 0x386   :  { %5435 = vmatprep.subr.bf16.mxu1 %v7250_v37  ;;  %5873 = vmatpush1.bf16.msra.mxu0 %v7272_v38  ;;  %v7326_v37 = vld [vmem:[#allocation11 + $0x160] ss:$8 sps:$4 sm:$0xff]   ;;  %v7331_v38 = vld [vmem:[#allocation11 + $0x174] ss:$8 sps:$4 sm:$0xff]  }
 0x387   :  { %5874 = vmatprep.subr.bf16.mxu0 %v7277_v39  ;;  %v3839_v39 = vrot.slane %v7829_v7, %v612_v8  ;;  %v7340_v8 = vld [vmem:[#allocation11 + $0x1a4] ss:$8 sps:$4 sm:$0xff]  }
 0x389   :  { %5436 = vmatpush1.bf16.msra.mxu1 %v7248_v41 }
 0x38a   :  { %5437 = vmatprep.subr.bf16.mxu1 %v7253_v44  ;;  %5875 = vmatpush1.bf16.msra.mxu0 %v7275_v45  ;;  %v7329_v44 = vld [vmem:[#allocation11 + $0x170] ss:$8 sps:$4 sm:$0xff]  }
 0x38b   :  { %5876 = vmatprep.subr.bf16.mxu0 %v7280_v46  ;;  %v7334_v46 = vld [vmem:[#allocation11 + $0x184] ss:$8 sps:$4 sm:$0xff]  }
 0x38d   :  { %5438 = vmatpush1.bf16.msra.mxu1 %v7251_v47 }
 0x38e   :  { %5439 = vmatprep.subr.bf16.mxu1 %v7256_v56  ;;  %5877 = vmatpush1.bf16.msra.mxu0 %v7278_v49 }
 0x38f   :  { %5878 = vmatprep.subr.bf16.mxu0 %v7283_v50 }
 0x391   :  { %5440 = vmatpush1.bf16.msra.mxu1 %v7254_v58  ;;  %v7332_v58 = vld [vmem:[#allocation11 + $0x180] ss:$8 sps:$4 sm:$0xff]  }
 0x392   :  { %5441 = vmatprep.subr.bf16.mxu1 %v7259_v52  ;;  %5879 = vmatpush1.bf16.msra.mxu0 %v7281_v61  ;;  %v7337_v52 = vld [vmem:[#allocation11 + $0x194] ss:$8 sps:$4 sm:$0xff]  }
 0x393   :  { %5880 = vmatprep.subr.bf16.mxu0 %v7286_v54 }
 0x395   :  { %5442 = vmatpush1.bf16.msra.mxu1 %v7257_v55  ;;  %v7338_v55 = vld [vmem:[#allocation11 + $0x1a0] ss:$8 sps:$4 sm:$0xff]  }
 0x396   :  { %5881 = vmatpush1.bf16.msra.mxu0 %v7284_v57  ;;  %v7343_v57 = vld [vmem:[#allocation11 + $0x1b4] ss:$8 sps:$4 sm:$0xff]  }
 0x397   :  { %5882 = vmatprep.subr.bf16.mxu0 %v7289_v43  ;;  %v7341_v43 = vld [vmem:[#allocation11 + $0x1b0] ss:$8 sps:$4 sm:$0xff]  }
 0x398   :  { %5444 = vmatmul.mubr.bf16.vlgmr.msra.gmra.mrb[12].mxu1 %v7825_v19 }
 0x39a   :  { %5883 = vmatpush1.bf16.msra.mxu0 %v7287_v59  ;;  %v7346_v59 = vld [vmem:[#allocation11 + $0x1c4] ss:$8 sps:$4 sm:$0xff]  }
 0x39b   :  { %5884 = vmatprep.subr.bf16.mxu0 %v7292_v60  ;;  %v7344_v60 = vld [vmem:[#allocation11 + $0x1c0] ss:$8 sps:$4 sm:$0xff]  }
 0x39e   :  { %5885 = vmatpush1.bf16.msra.mxu0 %v7290_v6  ;;  %v7349_v6 = vld [vmem:[#allocation11 + $0x1d4] ss:$8 sps:$4 sm:$0xff]  }
 0x39f   :  { %5886 = vmatprep.subr.bf16.mxu0 %v7295_v35  ;;  %v3835_v35 = vrot.slane %v7829_v7, %v7788_v5  ;;  %v5532_v7 = vld [vmem:[#allocation13] sm:$0x3] }
 0x3a2   :  { %5887 = vmatpush1.bf16.msra.mxu0 %v7293_v42  ;;  %v7347_v42 = vld [vmem:[#allocation11 + $0x1d0] ss:$8 sps:$4 sm:$0xff]  }
 0x3a3   :  { %5888 = vmatprep.subr.bf16.mxu0 %v7298_v25  ;;  %v7352_v25 = vld [vmem:[#allocation11 + $0x1e4] ss:$8 sps:$4 sm:$0xff]  }
 0x3a6   :  { %5889 = vmatpush1.bf16.msra.mxu0 %v7296_v17 }
 0x3a7   :  { %5890 = vmatprep.subr.bf16.mxu0 %v7301_v53  ;;  %v7350_v53 = vld [vmem:[#allocation11 + $0x1e0] ss:$8 sps:$4 sm:$0xff]  }
 0x3aa   :  { %5891 = vmatpush1.bf16.msra.mxu0 %v7299_v51  ;;  %v7355_v51 = vld [vmem:[#allocation11 + $0x1f4] ss:$8 sps:$4 sm:$0xff]  }
 0x3ab   :  { %5892 = vmatprep.subr.bf16.mxu0 %v7304_v63 }
 0x3ae   :  { %5893 = vmatpush1.bf16.msra.mxu0 %v7302_v0  ;;  %v7353_v0 = vld [vmem:[#allocation11 + $0x1f0] ss:$8 sps:$4 sm:$0xff]  }
 0x3af   :  { %5894 = vmatprep.subr.bf16.mxu0 %v7307_v2 }
 0x3b2   :  { %5895 = vmatpush1.bf16.msra.mxu0 %v7305_v3 }
 0x3b3   :  { %5905 = vmatprep.subr.bf16.mxu0 %v7310_v4  ;;  %v5952_v4 = vld [vmem:[#allocation14] sm:$0x3] }
 0x448   :  { %v5281_v48 = vpop.f32.mrb[8].mxu0 }
 0x449   :  { %v6783_v22 = vadd.f32 %v5281_v48, %v3827_v62  ;;  %v5283_v11 = vpop.f32.mrb[9].mxu0  ;;  %v5953_v62 = vunpack.c.l.bf16 %v5952_v4  ;;  %v5541_v48 = vrot.slane %v5532_v7, %v7763_v14 }
 0x44a   :  { %v6784_v12 = vadd.f32 %v5283_v11, %v3831_v10  ;;  %v5285_v40 = vpop.f32.mrb[10].mxu0  ;;  %v5537_v10 = vrot.slane %v5532_v7, %v7758_v9 }
 0x44b   :  { %vm5452_vm8 = vcmp.gt.f32.partialorder %v6783_v22, 0.0  ;;  %v5456_v28 = vmul.f32 0.2, %v6783_v22  ;;  %v5286_v15 = vpop.f32.mrb[11].mxu0  ;;  %v5962_v11 = vrot.slane %v5953_v62, %v7788_v5  ;;  %v6771_v5 = vld [vmem:[#allocation2] ss:$0 sm:$0xff] }
 0x44c   :  { %vm5453_vm9 = vcmp.gt.f32.partialorder %v6784_v12, 0.0  ;;  %v5457_v16 = vmul.f32 0.2, %v6784_v12 }
 0x44d   :  { %v5460_v18 = vsel %vm5452_vm8, %v6783_v22, %v5456_v28  ;;  %v5958_v22 = vrot.slane %v5953_v62, %v7758_v9 }
 0x44e   :  { %v5461_v19 = vsel %vm5453_vm9, %v6784_v12, %v5457_v16  ;;  %v5464_v23 = vpack.c.bf16 %v5460_v18, %v5460_v18 }
 0x44f   :  { %v5465_v20 = vpack.c.bf16 %v5461_v19, %v5461_v19  ;;  %v5968_v18 = vrot.slane %v5958_v22, %v7758_v9 }
 0x451   :  { %5896 = vmatprep.mubr.bf16.mxu0 %v5465_v20 }
 0x452   :  { %5897 = vmatmul.mubr.bf16.vlgmr.msra.gmra.mrb[12].mxu0 %v5464_v23 }
 0x453   :  { %5906 = vmatpush1.bf16.msra.mxu0 %v7308_v21  ;;  %v5972_v21 = vrot.slane %v5962_v11, %v7758_v9 }
 0x454   :  { %5907 = vmatprep.subr.bf16.mxu0 %v7313_v24 }
 0x457   :  { %5908 = vmatpush1.bf16.msra.mxu0 %v7311_v26 }
 0x458   :  { %5909 = vmatprep.subr.bf16.mxu0 %v7316_v27 }
 0x45b   :  { %5910 = vmatpush1.bf16.msra.mxu0 %v7314_v29 }
 0x45c   :  { %5911 = vmatprep.subr.bf16.mxu0 %v7319_v30 }
 0x45f   :  { %5912 = vmatpush1.bf16.msra.mxu0 %v7317_v31 }
 0x460   :  { %5913 = vmatprep.subr.bf16.mxu0 %v7322_v13 }
 0x463   :  { %5914 = vmatpush1.bf16.msra.mxu0 %v7320_v32 }
 0x464   :  { %5915 = vmatprep.subr.bf16.mxu0 %v7325_v33 }
 0x467   :  { %5916 = vmatpush1.bf16.msra.mxu0 %v7323_v34 }
 0x468   :  { %5917 = vmatprep.subr.bf16.mxu0 %v7328_v36 }
 0x46b   :  { %5918 = vmatpush1.bf16.msra.mxu0 %v7326_v37  ;;  %v5445_v41 = vpop.f32.mrb[12].mxu1 }
 0x46c   :  { %v5447_v45 = vpop.f32.mrb[13].mxu1  ;;  %5919 = vmatprep.subr.bf16.mxu0 %v7331_v38  ;;  %v6785_v17 = vadd.f32 %v5445_v41, %v3835_v35 }
 0x46d   :  { %v6786_v47 = vadd.f32 %v5447_v45, %v3839_v39  ;;  %v5449_v56 = vpop.f32.mrb[14].mxu1 }
 0x46e   :  { %v5450_v49 = vpop.f32.mrb[15].mxu1  ;;  %v5458_v63 = vmul.f32 0.2, %v6785_v17  ;;  %vm5454_vm11 = vcmp.gt.f32.partialorder %v6785_v17, 0.0 }
 0x46f   :  { %vm5455_vm10 = vcmp.gt.f32.partialorder %v6786_v47, 0.0  ;;  %v5459_v50 = vmul.f32 0.2, %v6786_v47  ;;  %5920 = vmatpush1.bf16.msra.mxu0 %v7329_v44 }
 0x470   :  { %5921 = vmatprep.subr.bf16.mxu0 %v7334_v46  ;;  %v5462_v2 = vsel %vm5454_vm11, %v6785_v17, %v5458_v63 }
 0x471   :  { %v5463_v61 = vsel %vm5455_vm10, %v6786_v47, %v5459_v50  ;;  %v5466_v3 = vpack.c.bf16 %v5462_v2, %v5462_v2 }
 0x472   :  { %v5467_v54 = vpack.c.bf16 %v5463_v61, %v5463_v61 }
 0x473   :  { %5922 = vmatpush1.bf16.msra.mxu0 %v7332_v58 }
 0x474   :  { %5937 = vmatprep.mubr.bf16.mxu0 %v5467_v54  ;;  %5923 = vmatprep.subr.bf16.mxu0 %v7337_v52 }
 0x477   :  { %5924 = vmatpush1.bf16.msra.mxu0 %v7335_v1 }
 0x478   :  { %5925 = vmatprep.subr.bf16.mxu0 %v7340_v8 }
 0x47b   :  { %5926 = vmatpush1.bf16.msra.mxu0 %v7338_v55 }
 0x47c   :  { %5927 = vmatprep.subr.bf16.mxu0 %v7343_v57 }
 0x47f   :  { %5928 = vmatpush1.bf16.msra.mxu0 %v7341_v43 }
 0x480   :  { %5929 = vmatprep.subr.bf16.mxu0 %v7346_v59 }
 0x483   :  { %5930 = vmatpush1.bf16.msra.mxu0 %v7344_v60 }
 0x484   :  { %5931 = vmatprep.subr.bf16.mxu0 %v7349_v6 }
 0x487   :  { %5932 = vmatpush1.bf16.msra.mxu0 %v7347_v42 }
 0x488   :  { %5933 = vmatprep.subr.bf16.mxu0 %v7352_v25 }
 0x48b   :  { %5934 = vmatpush1.bf16.msra.mxu0 %v7350_v53 }
 0x48c   :  { %5935 = vmatprep.subr.bf16.mxu0 %v7355_v51 }
 0x48f   :  { %5936 = vmatpush1.bf16.msra.mxu0 %v7353_v0 }
 0x492   :  { %5938 = vmatmul.mubr.bf16.vlgmr.msra.gmra.mrb[12].mxu0 %v5466_v3 }
 0x565   :  { %v5939_v12 = vpop.f32.mrb[12].mxu0 }
 0x566   :  { %v6787_v40 = vadd.f32 %v5939_v12, %v5537_v10  ;;  %v5941_v28 = vpop.f32.mrb[13].mxu0 }
 0x567   :  { %v6788_v15 = vadd.f32 %v5941_v28, %v5541_v48  ;;  %v5943_v16 = vpop.f32.mrb[14].mxu0 }
 0x568   :  { %vm5946_vm12 = vcmp.gt.f32.partialorder %v6787_v40, 0.0  ;;  %v5948_v19 = vmul.f32 0.2, %v6787_v40  ;;  %v5944_v20 = vpop.f32.mrb[15].mxu0 }
 0x569   :  { %vm5947_vm13 = vcmp.gt.f32.partialorder %v6788_v15, 0.0  ;;  %v5949_v23 = vmul.f32 0.2, %v6788_v15 }
 0x56a   :  { %v5950_v24 = vsel %vm5946_vm12, %v6787_v40, %v5948_v19 }
 0x56b   :  { %v5951_v14 = vsel %vm5947_vm13, %v6788_v15, %v5949_v23  ;;  %v5973_v26 = vmul.f32 %v5968_v18, %v5950_v24 }
 0x56c   :  { %v5974_v27 = vmul.f32 %v5972_v21, %v5951_v14 }
 0x56e   :  { %v5975_v29 = vadd.f32 %v5974_v27, %v5973_v26 }
 0x570   :  { %5976 = vadd.xlane.f32.xlu0 %v5975_v29 }
 0x5fd   :  { %v5977_v30 = vpop.xlane.xlu0 %5976 }
 0x5fe   :  { %v5985_v31 = vadd.f32 %v6771_v5, %v5977_v30 }
 0x600   :  { %v6772_v13 = vmul.f32 -1.442695, %v5985_v31 }
 0x602   :  { %7356 = vpow2.f32 %v6772_v13 }
 0x60c   :  { %v7357_v32 = vpop.eup %7356 }
 0x60d   :  { %v5989_v33 = vadd.f32 1.0, %v7357_v32 }
 0x60f   :  { %7358 = vrcp.f32 %v5989_v33 }
 0x619   :  { %v7359_v34 = vpop.eup %7358 }
 0x61a   :  { %5993 = vst.msk [vmem:[%s7858_s9] sm:$0xff] %vm5992_vm14, %v7359_v34 }
 0x61b   :  { %5998 = vsyncpa [#allocation4], 1 }
 0x61c   :  { %5999 = vsyncpa [#allocation6], 1 }
 0x61d   :  { %6000 = vsyncpa [#allocation9], 1 }
 0x61e   :  { %6001 = vsyncpa [#allocation12], 1 }
 0x61f   :  { %6002 = vsyncpa [#allocation15], 1 }

</bundles_post_ra>
